<compile_context>
chip_gen: v7x
topology: tpu7x:2x2x1
jax: 0.10.0
libtpu: 0.0.40
codegen_flags: <defaults>
</compile_context>

<pallas_src>
import functools
import math

import numpy as np
import jax
import jax.numpy as jnp
from jax.experimental import pallas as pl
from jax.experimental.pallas import tpu as pltpu


# ----------------------------------------------------------------------------
# Helpers
# ----------------------------------------------------------------------------
def _layernorm(x, gamma, beta, eps):
    mu = jnp.mean(x, axis=-1, keepdims=True)
    var = jnp.mean((x - mu) ** 2, axis=-1, keepdims=True)
    return (x - mu) * jax.lax.rsqrt(var + eps) * gamma + beta


# ----------------------------------------------------------------------------
# Pallas kernels
# ----------------------------------------------------------------------------
def transformer_stack_kernel(
    x_ref, cos_ref, sin_ref,
    ln1_g_ref, ln1_b_ref,
    wq_ref, bq_ref, wk_ref, bk_ref, wv_ref, bv_ref,
    wo_ref, bo_ref,
    ln2_g_ref, ln2_b_ref,
    wup_ref, bup_ref, wdown_ref, bdown_ref,
    fin_g_ref, fin_b_ref,
    o_ref,
    acc_ref,
    *, num_heads, attn_dim, eps,
):
    l = pl.program_id(1)
    n_layers = pl.num_programs(1)

    # ---- carry the activation in f32 across the layer grid axis ----
    @pl.when(l == 0)
    def _():
        acc_ref[...] = x_ref[0].astype(jnp.float32)

    x = acc_ref[...]                                      # (T, D) f32
    T, D = x.shape
    H, ad = num_heads, attn_dim

    # ---- pre-attention LayerNorm (f32 statistics) ----
    xn = _layernorm(x, ln1_g_ref[0], ln1_b_ref[0], eps)
    xn_h = jnp.broadcast_to(xn.astype(jnp.bfloat16), (H, T, D))   # (H, T, D) bf16

    # ---- QKV projections, batched over heads (MXU, bf16 in / f32 acc) ----
    q = jnp.einsum("htd,hde->hte", xn_h, wq_ref[0],
                   preferred_element_type=jnp.float32) + bq_ref[0]
    k = jnp.einsum("htd,hde->hte", xn_h, wk_ref[0],
                   preferred_element_type=jnp.float32) + bk_ref[0]
    v = jnp.einsum("htd,hde->hte", xn_h, wv_ref[0],
                   preferred_element_type=jnp.float32) + bv_ref[0]

    # ---- RoPE via even/odd lane swizzle (no DxD matmul) ----
    # torch: t_perm[..., 2i] = -t[..., 2i+1] ; t_perm[..., 2i+1] = t[..., 2i]
    cos = cos_ref[...][None, :, :]                        # (1, T, ad)
    sin = sin_ref[...][None, :, :]
    lane = jax.lax.broadcasted_iota(jnp.int32, (1, 1, ad), 2)
    is_even = (lane % 2) == 0

    def _rope(t):
        nxt = pltpu.roll(t, ad - 1, 2)                    # nxt[..., j] = t[..., j+1 mod ad]
        prv = pltpu.roll(t, 1, 2)                         # prv[..., j] = t[..., j-1 mod ad]
        t_perm = jnp.where(is_even, -nxt, prv)
        return cos * t + t_perm * sin

    scale = 1.0 / math.sqrt(ad)
    rq = (_rope(q) * scale).astype(jnp.bfloat16)          # fold 1/sqrt(ad) into q
    rk = _rope(k).astype(jnp.bfloat16)
    vb = v.astype(jnp.bfloat16)

    # ---- causal attention, all heads batched, deferred softmax normalization ----
    s = jnp.einsum("hqe,hke->hqk", rq, rk,
                   preferred_element_type=jnp.float32)             # (H, T, T)
    row = jax.lax.broadcasted_iota(jnp.int32, (1, T, T), 1)
    col = jax.lax.broadcasted_iota(jnp.int32, (1, T, T), 2)
    s = jnp.where(col <= row, s, -jnp.inf)
    m = jnp.max(s, axis=-1, keepdims=True)
    e = jnp.exp(s - m)                                             # in [0, 1]
    denom = jnp.sum(e, axis=-1, keepdims=True)                     # (H, T, 1)
    attn_un = jnp.einsum("hqk,hke->hqe", e.astype(jnp.bfloat16), vb,
                         preferred_element_type=jnp.float32)       # (H, T, ad)
    attn = attn_un * pl.reciprocal(denom, approx=True)             # normalize small tensor

    # ---- output projection: per-head partials accumulated over heads ----
    proj = jnp.einsum("hte,hed->htd", attn.astype(jnp.bfloat16), wo_ref[0],
                      preferred_element_type=jnp.float32)          # (H, T, D)
    x2 = x + jnp.sum(proj, axis=0) + bo_ref[0]                     # residual 1 (f32)

    # ---- pre-MLP LayerNorm + GELU MLP ----
    x2n = _layernorm(x2, ln2_g_ref[0], ln2_b_ref[0], eps).astype(jnp.bfloat16)
    h_up = jnp.dot(x2n, wup_ref[0], preferred_element_type=jnp.float32) + bup_ref[0]
    h_act = jax.nn.gelu(h_up, approximate=True).astype(jnp.bfloat16)
    mlp = jnp.dot(h_act, wdown_ref[0], preferred_element_type=jnp.float32) + bdown_ref[0]
    x3 = x2 + mlp                                                  # residual 2 (f32)

    acc_ref[...] = x3

    @pl.when(l == n_layers - 1)
    def _():
        # Fused final LayerNorm (f32 stats) -> LM head kernel is a pure matmul + bias
        # and the LN is not recomputed per vocab tile.
        o_ref[0] = _layernorm(x3, fin_g_ref[...], fin_b_ref[...], eps).astype(o_ref.dtype)


def lm_head_kernel(x_ref, w_ref, bias_ref, o_ref):
    logits = jnp.dot(x_ref[0], w_ref[...],
                     preferred_element_type=jnp.float32) + bias_ref[...]
    o_ref[0] = logits.astype(o_ref.dtype)


# ----------------------------------------------------------------------------
# Wrappers (pallas_call plumbing)
# ----------------------------------------------------------------------------
def run_transformer_stack(x, cos, sin, sp, final_g, final_b,
                          *, num_heads, attn_dim, eps=1e-5):
    B, T, D = x.shape
    L = sp["ln1_g"].shape[0]

    weights = [
        sp["ln1_g"], sp["ln1_b"],
        sp["wq"], sp["bq"], sp["wk"], sp["bk"], sp["wv"], sp["bv"],
        sp["wo"], sp["bo"],
        sp["ln2_g"], sp["ln2_b"],
        sp["wup"], sp["bup"], sp["wdown"], sp["bdown"],
    ]

    def layer_spec(arr):
        nd = arr.ndim
        # Block the leading [L, ...] axis by 1 and index it with the layer grid axis ->
        # BlockSpec double-buffers / prefetches layer l+1's weights while layer l computes.
        return pl.BlockSpec((1,) + arr.shape[1:],
                            lambda b, l, nd=nd: (l,) + (0,) * (nd - 1))

    in_specs = [
        pl.BlockSpec((1, T, D), lambda b, l: (b, 0, 0)),            # x (resident per b)
        pl.BlockSpec(cos.shape, lambda b, l: (0, 0)),               # cos (T, ad)
        pl.BlockSpec(sin.shape, lambda b, l: (0, 0)),               # sin (T, ad)
    ] + [layer_spec(w) for w in weights] + [
        pl.BlockSpec((1, D), lambda b, l: (0, 0)),                  # final LN gamma
        pl.BlockSpec((1, D), lambda b, l: (0, 0)),                  # final LN beta
    ]

    kern = functools.partial(
        transformer_stack_kernel, num_heads=num_heads, attn_dim=attn_dim, eps=eps
    )
    return pl.pallas_call(
        kern,
        out_shape=jax.ShapeDtypeStruct((B, T, D), jnp.bfloat16),    # bf16 inter-kernel acts
        grid=(B, L),
        in_specs=in_specs,
        out_specs=pl.BlockSpec((1, T, D), lambda b, l: (b, 0, 0)),
        scratch_shapes=[pltpu.VMEM((T, D), jnp.float32)],           # f32 activation carry
        compiler_params=pltpu.CompilerParams(
            dimension_semantics=("parallel", "arbitrary")),
    )(x, cos, sin, *weights, final_g, final_b)


def _pick_vocab_tile(V):
    if V % 128 != 0:
        return V
    for tv in (2048, 1024, 512, 256, 128):
        if V % tv == 0:
            return tv
    return V


def run_final_head(x, w_lm, b_lm, *, vocab_tile=None):
    B, T, D = x.shape
    V = w_lm.shape[1]
    TV = vocab_tile if vocab_tile is not None else _pick_vocab_tile(V)
    assert V % TV == 0
    nvt = V // TV

    in_specs = [
        pl.BlockSpec((1, T, D), lambda b, j: (b, 0, 0)),            # resident per b
        pl.BlockSpec((D, TV), lambda b, j: (0, j)),                 # stream w_lm over vocab
        pl.BlockSpec((1, TV), lambda b, j: (0, j)),
    ]
    return pl.pallas_call(
        lm_head_kernel,
        out_shape=jax.ShapeDtypeStruct((B, T, V), jnp.float32),
        grid=(B, nvt),
        in_specs=in_specs,
        out_specs=pl.BlockSpec((1, T, TV), lambda b, j: (b, 0, j)), # lane-dense output
        compiler_params=pltpu.CompilerParams(
            dimension_semantics=("parallel", "parallel")),
    )(x, w_lm, b_lm)


# ----------------------------------------------------------------------------
# Parameter init + model glue
# ----------------------------------------------------------------------------
def init_params(key, vocab_size, model_dim, num_heads, num_layers):
    D, H, L = model_dim, num_heads, num_layers
    ad = D // H
    bf16 = jnp.bfloat16
    k_emb, k_lm, k_blk = jax.random.split(key, 3)
    lkeys = jax.random.split(k_blk, L)

    wq, wk, wv, wo, wup, wdown = [], [], [], [], [], []
    for l in range(L):
        sk = jax.random.split(lkeys[l], 4)
        # W_qkv columns laid out (head, {q,k,v}, attn_dim), as in torch's
        # qkv.view(B, T, H, 3, attn_dim); stored head-major as (H, D, ad).
        w_qkv = 0.02 * jax.random.normal(sk[0], (D, 3 * D), jnp.float32)
        w_qkv = w_qkv.reshape(D, H, 3, ad)
        wq.append(jnp.transpose(w_qkv[:, :, 0, :], (1, 0, 2)))
        wk.append(jnp.transpose(w_qkv[:, :, 1, :], (1, 0, 2)))
        wv.append(jnp.transpose(w_qkv[:, :, 2, :], (1, 0, 2)))
        # W_o rows are head-major -> (H, ad, D) for per-head partial projection.
        wo.append((0.02 * jax.random.normal(sk[1], (D, D), jnp.float32)).reshape(H, ad, D))
        wup.append(0.02 * jax.random.normal(sk[2], (D, 4 * D), jnp.float32))
        wdown.append(0.02 * jax.random.normal(sk[3], (4 * D, D), jnp.float32))

    stack = {
        "ln1_g": jnp.ones((L, 1, D), jnp.float32),
        "ln1_b": jnp.zeros((L, 1, D), jnp.float32),
        "wq": jnp.stack(wq).astype(bf16), "wk": jnp.stack(wk).astype(bf16),
        "wv": jnp.stack(wv).astype(bf16),
        "bq": jnp.zeros((L, H, 1, ad), jnp.float32),
        "bk": jnp.zeros((L, H, 1, ad), jnp.float32),
        "bv": jnp.zeros((L, H, 1, ad), jnp.float32),
        "wo": jnp.stack(wo).astype(bf16),
        "bo": jnp.zeros((L, 1, D), jnp.float32),
        "ln2_g": jnp.ones((L, 1, D), jnp.float32),
        "ln2_b": jnp.zeros((L, 1, D), jnp.float32),
        "wup": jnp.stack(wup).astype(bf16),
        "bup": jnp.zeros((L, 1, 4 * D), jnp.float32),
        "wdown": jnp.stack(wdown).astype(bf16),
        "bdown": jnp.zeros((L, 1, D), jnp.float32),
    }
    return {
        "embedding": 0.02 * jax.random.normal(k_emb, (vocab_size, D), jnp.float32),
        "stack": stack,
        "final_g": jnp.ones((1, D), jnp.float32),
        "final_b": jnp.zeros((1, D), jnp.float32),
        "w_lm": (0.02 * jax.random.normal(k_lm, (D, vocab_size), jnp.float32)).astype(bf16),
        "b_lm": jnp.zeros((1, vocab_size), jnp.float32),
    }


def make_rope_constants(block_size, attn_dim):
    # Matches torch: m = 1..T ; thetas = 10000 ** (-2*(arange(2, ad+2)//2)/ad)
    m = np.arange(1, block_size + 1, dtype=np.float32)[:, None]             # (T, 1)
    thetas = (10000.0 ** (-2.0 * (np.arange(2, attn_dim + 2) // 2) / attn_dim)
              ).astype(np.float32)[None, :]                                  # (1, ad)
    ang = m * thetas                                                         # (T, ad)
    return jnp.asarray(np.cos(ang)), jnp.asarray(np.sin(ang))


def kale_gpt3_forward(tokens, params, *, model_dim, num_heads, max_block_size,
                      lm_vocab_tile=None):
    block_size = min(tokens.shape[1], max_block_size)
    tokens = tokens[:, -block_size:]
    attn_dim = model_dim // num_heads

    # Embedding lookup (plain-JAX glue).
    reps = jnp.take(params["embedding"], tokens, axis=0)                     # (B, T, D)

    cos, sin = make_rope_constants(block_size, attn_dim)

    reps = run_transformer_stack(
        reps, cos, sin, params["stack"], params["final_g"], params["final_b"],
        num_heads=num_heads, attn_dim=attn_dim,
    )
    logits = run_final_head(
        reps, params["w_lm"], params["b_lm"], vocab_tile=lm_vocab_tile,
    )
    return logits


# ----------------------------------------------------------------------------
if __name__ == "__main__":
    # Small but lane-aligned demo shapes: attn_dim = 128, model_dim = 256.
    vocab_size = 512
    model_dim = 256
    num_heads = 2
    num_layers = 2
    max_block_size = 8
    batch = 2
    seq = 8

    key = jax.random.PRNGKey(0)
    pkey, tkey = jax.random.split(key)
    params = init_params(pkey, vocab_size, model_dim, num_heads, num_layers)
    tokens = jax.random.randint(tkey, (batch, seq), 0, vocab_size, dtype=jnp.int32)

    logits = kale_gpt3_forward(
        tokens, params,
        model_dim=model_dim, num_heads=num_heads, max_block_size=max_block_size,
        lm_vocab_tile=256,   # exercise the vocab-tiled LM head (2 tiles)
    )
    logits = jax.block_until_ready(logits)
    assert logits.shape == (batch, seq, vocab_size)
    assert bool(jnp.all(jnp.isfinite(logits)))
    print("KERNEL_OK")
</pallas_src>

<mosaic_0001>
module attributes {stable_mosaic.version = 11 : i64} {
  func.func @transformer_stack_kernel(%arg0: i32, %arg1: i32, %arg2: memref<1x8x256xf32, #tpu.memory_space<vmem>>, %arg3: memref<8x128xf32, #tpu.memory_space<vmem>>, %arg4: memref<8x128xf32, #tpu.memory_space<vmem>>, %arg5: memref<1x1x256xf32, #tpu.memory_space<vmem>>, %arg6: memref<1x1x256xf32, #tpu.memory_space<vmem>>, %arg7: memref<1x2x256x128xbf16, #tpu.memory_space<vmem>>, %arg8: memref<1x2x1x128xf32, #tpu.memory_space<vmem>>, %arg9: memref<1x2x256x128xbf16, #tpu.memory_space<vmem>>, %arg10: memref<1x2x1x128xf32, #tpu.memory_space<vmem>>, %arg11: memref<1x2x256x128xbf16, #tpu.memory_space<vmem>>, %arg12: memref<1x2x1x128xf32, #tpu.memory_space<vmem>>, %arg13: memref<1x2x128x256xbf16, #tpu.memory_space<vmem>>, %arg14: memref<1x1x256xf32, #tpu.memory_space<vmem>>, %arg15: memref<1x1x256xf32, #tpu.memory_space<vmem>>, %arg16: memref<1x1x256xf32, #tpu.memory_space<vmem>>, %arg17: memref<1x256x1024xbf16, #tpu.memory_space<vmem>>, %arg18: memref<1x1x1024xf32, #tpu.memory_space<vmem>>, %arg19: memref<1x1024x256xbf16, #tpu.memory_space<vmem>>, %arg20: memref<1x1x256xf32, #tpu.memory_space<vmem>>, %arg21: memref<1x256xf32, #tpu.memory_space<vmem>>, %arg22: memref<1x256xf32, #tpu.memory_space<vmem>>, %arg23: memref<1x8x256xbf16, #tpu.memory_space<vmem>>, %arg24: memref<8x256xf32, #tpu.memory_space<vmem>>) attributes {dimension_semantics = [#tpu.dimension_semantics<parallel>, #tpu.dimension_semantics<arbitrary>], iteration_bounds = array<i64: 2, 2>, scalar_prefetch = 0 : i64, scratch_operands = 1 : i64, tpu.core_type = #tpu.core_type<tc>, window_params = [{transform_indices = @transform_0, window_bounds = array<i64: 1, 8, 256>}, {pipeline_mode = #tpu.pipeline_mode<synchronous>, transform_indices = @transform_1, window_bounds = array<i64: 8, 128>}, {pipeline_mode = #tpu.pipeline_mode<synchronous>, transform_indices = @transform_2, window_bounds = array<i64: 8, 128>}, {transform_indices = @transform_3, window_bounds = array<i64: 1, 1, 256>}, {transform_indices = @transform_4, window_bounds = array<i64: 1, 1, 256>}, {transform_indices = @transform_5, window_bounds = array<i64: 1, 2, 256, 128>}, {transform_indices = @transform_6, window_bounds = array<i64: 1, 2, 1, 128>}, {transform_indices = @transform_7, window_bounds = array<i64: 1, 2, 256, 128>}, {transform_indices = @transform_8, window_bounds = array<i64: 1, 2, 1, 128>}, {transform_indices = @transform_9, window_bounds = array<i64: 1, 2, 256, 128>}, {transform_indices = @transform_10, window_bounds = array<i64: 1, 2, 1, 128>}, {transform_indices = @transform_11, window_bounds = array<i64: 1, 2, 128, 256>}, {transform_indices = @transform_12, window_bounds = array<i64: 1, 1, 256>}, {transform_indices = @transform_13, window_bounds = array<i64: 1, 1, 256>}, {transform_indices = @transform_14, window_bounds = array<i64: 1, 1, 256>}, {transform_indices = @transform_15, window_bounds = array<i64: 1, 256, 1024>}, {transform_indices = @transform_16, window_bounds = array<i64: 1, 1, 1024>}, {transform_indices = @transform_17, window_bounds = array<i64: 1, 1024, 256>}, {transform_indices = @transform_18, window_bounds = array<i64: 1, 1, 256>}, {pipeline_mode = #tpu.pipeline_mode<synchronous>, transform_indices = @transform_19, window_bounds = array<i64: 1, 256>}, {pipeline_mode = #tpu.pipeline_mode<synchronous>, transform_indices = @transform_20, window_bounds = array<i64: 1, 256>}, {transform_indices = @transform_21, window_bounds = array<i64: 1, 8, 256>}]} {
    %c0_i32 = arith.constant 0 : i32
    %0 = arith.cmpi eq, %arg1, %c0_i32 : i32
    %1 = arith.extui %0 : i1 to i32
    %c0_i32_0 = arith.constant 0 : i32
    %2 = arith.cmpi ne, %1, %c0_i32_0 : i32
    scf.if %2 {
      %c0_101 = arith.constant 0 : index
      %c0_102 = arith.constant 0 : index
      %c0_103 = arith.constant 0 : index
      %196 = vector.load %arg2[%c0_101, %c0_102, %c0_103] : memref<1x8x256xf32, #tpu.memory_space<vmem>>, vector<1x8x256xf32>
      %197 = vector.shape_cast %196 : vector<1x8x256xf32> to vector<8x256xf32>
      %c0_104 = arith.constant 0 : index
      %c0_105 = arith.constant 0 : index
      %198 = vector.load %arg24[%c0_104, %c0_105] : memref<8x256xf32, #tpu.memory_space<vmem>>, vector<8x256xf32>
      tpu.vector_store %arg24[%c0_104, %c0_105], %197 {strides = array<i32>} : memref<8x256xf32, #tpu.memory_space<vmem>>, vector<8x256xf32>,
    } else {
    }
    %c0 = arith.constant 0 : index
    %c0_1 = arith.constant 0 : index
    %3 = vector.load %arg24[%c0, %c0_1] : memref<8x256xf32, #tpu.memory_space<vmem>>, vector<8x256xf32>
    %c0_2 = arith.constant 0 : index
    %c0_3 = arith.constant 0 : index
    %c0_4 = arith.constant 0 : index
    %4 = vector.load %arg5[%c0_2, %c0_3, %c0_4] : memref<1x1x256xf32, #tpu.memory_space<vmem>>, vector<1x1x256xf32>
    %5 = vector.shape_cast %4 : vector<1x1x256xf32> to vector<1x256xf32>
    %c0_5 = arith.constant 0 : index
    %c0_6 = arith.constant 0 : index
    %c0_7 = arith.constant 0 : index
    %6 = vector.load %arg6[%c0_5, %c0_6, %c0_7] : memref<1x1x256xf32, #tpu.memory_space<vmem>>, vector<1x1x256xf32>
    %7 = vector.shape_cast %6 : vector<1x1x256xf32> to vector<1x256xf32>
    %cst = arith.constant dense<0.000000e+00> : vector<8xf32>
    %8 = vector.multi_reduction <add>, %3, %cst [1] : vector<8x256xf32> to vector<8xf32>
    %9 = vector.shape_cast %8 : vector<8xf32> to vector<8x1xf32>
    %cst_8 = arith.constant 2.560000e+02 : f32
    %10 = vector.broadcast %cst_8 : f32 to vector<8x1xf32>
    %11 = arith.divf %9, %10 : vector<8x1xf32>
    %12 = vector.broadcast %11 : vector<8x1xf32> to vector<8x256xf32>
    %13 = arith.subf %3, %12 : vector<8x256xf32>
    %14 = arith.mulf %13, %13 : vector<8x256xf32>
    %cst_9 = arith.constant dense<0.000000e+00> : vector<8xf32>
    %15 = vector.multi_reduction <add>, %14, %cst_9 [1] : vector<8x256xf32> to vector<8xf32>
    %16 = vector.shape_cast %15 : vector<8xf32> to vector<8x1xf32>
    %cst_10 = arith.constant 2.560000e+02 : f32
    %17 = vector.broadcast %cst_10 : f32 to vector<8x1xf32>
    %18 = arith.divf %16, %17 : vector<8x1xf32>
    %19 = vector.broadcast %11 : vector<8x1xf32> to vector<8x256xf32>
    %20 = arith.subf %3, %19 : vector<8x256xf32>
    %cst_11 = arith.constant 9.99999974E-6 : f32
    %21 = vector.broadcast %cst_11 : f32 to vector<8x1xf32>
    %22 = arith.addf %18, %21 : vector<8x1xf32>
    %23 = math.rsqrt %22 : vector<8x1xf32>
    %24 = vector.broadcast %23 : vector<8x1xf32> to vector<8x256xf32>
    %25 = arith.mulf %20, %24 : vector<8x256xf32>
    %26 = vector.broadcast %5 : vector<1x256xf32> to vector<8x256xf32>
    %27 = arith.mulf %25, %26 : vector<8x256xf32>
    %28 = vector.broadcast %7 : vector<1x256xf32> to vector<8x256xf32>
    %29 = arith.addf %27, %28 : vector<8x256xf32>
    %30 = arith.truncf %29 : vector<8x256xf32> to vector<8x256xbf16>
    %31 = vector.shape_cast %30 : vector<8x256xbf16> to vector<1x8x256xbf16>
    %32 = vector.broadcast %31 : vector<1x8x256xbf16> to vector<2x8x256xbf16>
    %c0_12 = arith.constant 0 : index
    %c0_13 = arith.constant 0 : index
    %c0_14 = arith.constant 0 : index
    %c0_15 = arith.constant 0 : index
    %33 = vector.load %arg7[%c0_12, %c0_13, %c0_14, %c0_15] : memref<1x2x256x128xbf16, #tpu.memory_space<vmem>>, vector<1x2x256x128xbf16>
    %34 = vector.shape_cast %33 : vector<1x2x256x128xbf16> to vector<2x256x128xbf16>
    "tpu.trace_start"() <{level = 10 : i32, message = "htd,hde->hte"}> : () -> ()
    %cst_16 = arith.constant dense<0.000000e+00> : vector<2x8x128xf32>
    %35 = tpu.matmul %32, %34, %cst_16 {dimension_numbers = #tpu.dot_dimension_numbers<[2], [1], [1], [2], [0, 0, 0, 1, 1, 2], [0], [0]>} : vector<2x8x256xbf16>, vector<2x256x128xbf16>, vector<2x8x128xf32> -> vector<2x8x128xf32>
    "tpu.trace_stop"() : () -> ()
    %c0_17 = arith.constant 0 : index
    %c0_18 = arith.constant 0 : index
    %c0_19 = arith.constant 0 : index
    %c0_20 = arith.constant 0 : index
    %36 = vector.load %arg8[%c0_17, %c0_18, %c0_19, %c0_20] : memref<1x2x1x128xf32, #tpu.memory_space<vmem>>, vector<1x2x1x128xf32>
    %37 = vector.shape_cast %36 : vector<1x2x1x128xf32> to vector<2x1x128xf32>
    %38 = vector.broadcast %37 : vector<2x1x128xf32> to vector<2x8x128xf32>
    %39 = arith.addf %35, %38 : vector<2x8x128xf32>
    %c0_21 = arith.constant 0 : index
    %c0_22 = arith.constant 0 : index
    %c0_23 = arith.constant 0 : index
    %c0_24 = arith.constant 0 : index
    %40 = vector.load %arg9[%c0_21, %c0_22, %c0_23, %c0_24] : memref<1x2x256x128xbf16, #tpu.memory_space<vmem>>, vector<1x2x256x128xbf16>
    %41 = vector.shape_cast %40 : vector<1x2x256x128xbf16> to vector<2x256x128xbf16>
    "tpu.trace_start"() <{level = 10 : i32, message = "htd,hde->hte"}> : () -> ()
    %cst_25 = arith.constant dense<0.000000e+00> : vector<2x8x128xf32>
    %42 = tpu.matmul %32, %41, %cst_25 {dimension_numbers = #tpu.dot_dimension_numbers<[2], [1], [1], [2], [0, 0, 0, 1, 1, 2], [0], [0]>} : vector<2x8x256xbf16>, vector<2x256x128xbf16>, vector<2x8x128xf32> -> vector<2x8x128xf32>
    "tpu.trace_stop"() : () -> ()
    %c0_26 = arith.constant 0 : index
    %c0_27 = arith.constant 0 : index
    %c0_28 = arith.constant 0 : index
    %c0_29 = arith.constant 0 : index
    %43 = vector.load %arg10[%c0_26, %c0_27, %c0_28, %c0_29] : memref<1x2x1x128xf32, #tpu.memory_space<vmem>>, vector<1x2x1x128xf32>
    %44 = vector.shape_cast %43 : vector<1x2x1x128xf32> to vector<2x1x128xf32>
    %45 = vector.broadcast %44 : vector<2x1x128xf32> to vector<2x8x128xf32>
    %46 = arith.addf %42, %45 : vector<2x8x128xf32>
    %c0_30 = arith.constant 0 : index
    %c0_31 = arith.constant 0 : index
    %c0_32 = arith.constant 0 : index
    %c0_33 = arith.constant 0 : index
    %47 = vector.load %arg11[%c0_30, %c0_31, %c0_32, %c0_33] : memref<1x2x256x128xbf16, #tpu.memory_space<vmem>>, vector<1x2x256x128xbf16>
    %48 = vector.shape_cast %47 : vector<1x2x256x128xbf16> to vector<2x256x128xbf16>
    "tpu.trace_start"() <{level = 10 : i32, message = "htd,hde->hte"}> : () -> ()
    %cst_34 = arith.constant dense<0.000000e+00> : vector<2x8x128xf32>
    %49 = tpu.matmul %32, %48, %cst_34 {dimension_numbers = #tpu.dot_dimension_numbers<[2], [1], [1], [2], [0, 0, 0, 1, 1, 2], [0], [0]>} : vector<2x8x256xbf16>, vector<2x256x128xbf16>, vector<2x8x128xf32> -> vector<2x8x128xf32>
    "tpu.trace_stop"() : () -> ()
    %c0_35 = arith.constant 0 : index
    %c0_36 = arith.constant 0 : index
    %c0_37 = arith.constant 0 : index
    %c0_38 = arith.constant 0 : index
    %50 = vector.load %arg12[%c0_35, %c0_36, %c0_37, %c0_38] : memref<1x2x1x128xf32, #tpu.memory_space<vmem>>, vector<1x2x1x128xf32>
    %51 = vector.shape_cast %50 : vector<1x2x1x128xf32> to vector<2x1x128xf32>
    %52 = vector.broadcast %51 : vector<2x1x128xf32> to vector<2x8x128xf32>
    %53 = arith.addf %49, %52 : vector<2x8x128xf32>
    %c0_39 = arith.constant 0 : index
    %c0_40 = arith.constant 0 : index
    %54 = vector.load %arg3[%c0_39, %c0_40] : memref<8x128xf32, #tpu.memory_space<vmem>>, vector<8x128xf32>
    %55 = vector.shape_cast %54 : vector<8x128xf32> to vector<1x8x128xf32>
    %c0_41 = arith.constant 0 : index
    %c0_42 = arith.constant 0 : index
    %56 = vector.load %arg4[%c0_41, %c0_42] : memref<8x128xf32, #tpu.memory_space<vmem>>, vector<8x128xf32>
    %57 = vector.shape_cast %56 : vector<8x128xf32> to vector<1x8x128xf32>
    %58 = tpu.iota {dimensions = array<i32: 2>} : vector<1x1x128xi32>
    %c2_i32 = arith.constant 2 : i32
    %c0_i32_43 = arith.constant 0 : i32
    %59 = arith.cmpi eq, %c2_i32, %c0_i32_43 : i32
    %c1_i32 = arith.constant 1 : i32
    %60 = arith.select %59, %c1_i32, %c2_i32 : i32
    %61 = vector.broadcast %60 : i32 to vector<1x1x128xi32>
    %62 = arith.remsi %58, %61 : vector<1x1x128xi32>
    %c0_i32_44 = arith.constant 0 : i32
    %63 = vector.broadcast %c0_i32_44 : i32 to vector<1x1x128xi32>
    %64 = arith.cmpi ne, %62, %63 : vector<1x1x128xi32>
    %c0_i32_45 = arith.constant 0 : i32
    %65 = vector.broadcast %c0_i32_45 : i32 to vector<1x1x128xi32>
    %66 = arith.cmpi slt, %62, %65 : vector<1x1x128xi32>
    %c0_i32_46 = arith.constant 0 : i32
    %67 = arith.cmpi slt, %60, %c0_i32_46 : i32
    %68 = vector.broadcast %67 : i1 to vector<1x1x128xi1>
    %69 = vector.broadcast %68 : vector<1x1x128xi1> to vector<1x1x128xi1>
    %70 = arith.xori %66, %69 : vector<1x1x128xi1>
    %71 = arith.andi %70, %64 : vector<1x1x128xi1>
    %72 = vector.broadcast %60 : i32 to vector<1x1x128xi32>
    %73 = arith.addi %62, %72 : vector<1x1x128xi32>
    %74 = arith.select %71, %73, %62 : vector<1x1x128xi1>, vector<1x1x128xi32>
    %c0_i32_47 = arith.constant 0 : i32
    %75 = vector.broadcast %c0_i32_47 : i32 to vector<1x1x128xi32>
    %76 = arith.cmpi eq, %74, %75 : vector<1x1x128xi32>
    %c127_i32 = arith.constant 127 : i32
    %77 = tpu.dynamic_rotate %39 by %c127_i32 dim 2 : vector<2x8x128xf32>, i32 -> vector<2x8x128xf32>
    %c1_i32_48 = arith.constant 1 : i32
    %78 = tpu.dynamic_rotate %39 by %c1_i32_48 dim 2 : vector<2x8x128xf32>, i32 -> vector<2x8x128xf32>
    %cst_49 = arith.constant 0.000000e+00 : f32
    %79 = vector.broadcast %cst_49 : f32 to vector<2x8x128xf32>
    %80 = arith.subf %79, %77 : vector<2x8x128xf32>
    %81 = vector.shape_cast %76 : vector<1x1x128xi1> to vector<1x1x128xi1>
    %82 = vector.broadcast %81 : vector<1x1x128xi1> to vector<2x8x128xi1>
    %83 = arith.select %82, %80, %78 : vector<2x8x128xi1>, vector<2x8x128xf32>
    %84 = vector.broadcast %55 : vector<1x8x128xf32> to vector<2x8x128xf32>
    %85 = arith.mulf %84, %39 : vector<2x8x128xf32>
    %86 = vector.broadcast %57 : vector<1x8x128xf32> to vector<2x8x128xf32>
    %87 = arith.mulf %83, %86 : vector<2x8x128xf32>
    %88 = arith.addf %85, %87 : vector<2x8x128xf32>
    %cst_50 = arith.constant 0.0883883461 : f32
    %89 = vector.broadcast %cst_50 : f32 to vector<2x8x128xf32>
    %90 = arith.mulf %88, %89 : vector<2x8x128xf32>
    %91 = arith.truncf %90 : vector<2x8x128xf32> to vector<2x8x128xbf16>
    %c127_i32_51 = arith.constant 127 : i32
    %92 = tpu.dynamic_rotate %46 by %c127_i32_51 dim 2 : vector<2x8x128xf32>, i32 -> vector<2x8x128xf32>
    %c1_i32_52 = arith.constant 1 : i32
    %93 = tpu.dynamic_rotate %46 by %c1_i32_52 dim 2 : vector<2x8x128xf32>, i32 -> vector<2x8x128xf32>
    %cst_53 = arith.constant 0.000000e+00 : f32
    %94 = vector.broadcast %cst_53 : f32 to vector<2x8x128xf32>
    %95 = arith.subf %94, %92 : vector<2x8x128xf32>
    %96 = vector.shape_cast %76 : vector<1x1x128xi1> to vector<1x1x128xi1>
    %97 = vector.broadcast %96 : vector<1x1x128xi1> to vector<2x8x128xi1>
    %98 = arith.select %97, %95, %93 : vector<2x8x128xi1>, vector<2x8x128xf32>
    %99 = vector.broadcast %55 : vector<1x8x128xf32> to vector<2x8x128xf32>
    %100 = arith.mulf %99, %46 : vector<2x8x128xf32>
    %101 = vector.broadcast %57 : vector<1x8x128xf32> to vector<2x8x128xf32>
    %102 = arith.mulf %98, %101 : vector<2x8x128xf32>
    %103 = arith.addf %100, %102 : vector<2x8x128xf32>
    %104 = arith.truncf %103 : vector<2x8x128xf32> to vector<2x8x128xbf16>
    %105 = arith.truncf %53 : vector<2x8x128xf32> to vector<2x8x128xbf16>
    "tpu.trace_start"() <{level = 10 : i32, message = "hqe,hke->hqk"}> : () -> ()
    %cst_54 = arith.constant dense<0.000000e+00> : vector<2x8x8xf32>
    %106 = tpu.matmul %91, %104, %cst_54 {dimension_numbers = #tpu.dot_dimension_numbers<[2], [2], [1], [1], [0, 0, 0, 1, 1, 1], [0], [0]>} : vector<2x8x128xbf16>, vector<2x8x128xbf16>, vector<2x8x8xf32> -> vector<2x8x8xf32>
    "tpu.trace_stop"() : () -> ()
    %107 = tpu.iota {dimensions = array<i32: 1>} : vector<1x8x8xi32>
    %108 = tpu.iota {dimensions = array<i32: 2>} : vector<1x8x8xi32>
    %109 = arith.cmpi sle, %108, %107 : vector<1x8x8xi32>
    %cst_55 = arith.constant 0xFF800000 : f32
    %110 = vector.shape_cast %109 : vector<1x8x8xi1> to vector<1x8x8xi1>
    %111 = vector.broadcast %110 : vector<1x8x8xi1> to vector<2x8x8xi1>
    %112 = vector.broadcast %cst_55 : f32 to vector<2x8x8xf32>
    %113 = arith.select %111, %106, %112 : vector<2x8x8xi1>, vector<2x8x8xf32>
    %cst_56 = arith.constant dense<0xFF800000> : vector<2x8xf32>
    %114 = vector.multi_reduction <maximumf>, %113, %cst_56 [2] : vector<2x8x8xf32> to vector<2x8xf32>
    %115 = vector.shape_cast %114 : vector<2x8xf32> to vector<2x8x1xf32>
    %116 = vector.broadcast %115 : vector<2x8x1xf32> to vector<2x8x8xf32>
    %117 = arith.subf %113, %116 : vector<2x8x8xf32>
    %118 = math.exp %117 : vector<2x8x8xf32>
    %cst_57 = arith.constant dense<0.000000e+00> : vector<2x8xf32>
    %119 = vector.multi_reduction <add>, %118, %cst_57 [2] : vector<2x8x8xf32> to vector<2x8xf32>
    %120 = vector.shape_cast %119 : vector<2x8xf32> to vector<2x8x1xf32>
    %121 = arith.truncf %118 : vector<2x8x8xf32> to vector<2x8x8xbf16>
    "tpu.trace_start"() <{level = 10 : i32, message = "hqk,hke->hqe"}> : () -> ()
    %cst_58 = arith.constant dense<0.000000e+00> : vector<2x8x128xf32>
    %122 = tpu.matmul %121, %105, %cst_58 {dimension_numbers = #tpu.dot_dimension_numbers<[2], [1], [1], [2], [0, 0, 0, 1, 1, 2], [0], [0]>} : vector<2x8x8xbf16>, vector<2x8x128xbf16>, vector<2x8x128xf32> -> vector<2x8x128xf32>
    "tpu.trace_stop"() : () -> ()
    %123 = tpu.reciprocal %120 {approx = true} : vector<2x8x1xf32> -> vector<2x8x1xf32>
    %124 = vector.broadcast %123 : vector<2x8x1xf32> to vector<2x8x128xf32>
    %125 = arith.mulf %122, %124 : vector<2x8x128xf32>
    %126 = arith.truncf %125 : vector<2x8x128xf32> to vector<2x8x128xbf16>
    %c0_59 = arith.constant 0 : index
    %c0_60 = arith.constant 0 : index
    %c0_61 = arith.constant 0 : index
    %c0_62 = arith.constant 0 : index
    %127 = vector.load %arg13[%c0_59, %c0_60, %c0_61, %c0_62] : memref<1x2x128x256xbf16, #tpu.memory_space<vmem>>, vector<1x2x128x256xbf16>
    %128 = vector.shape_cast %127 : vector<1x2x128x256xbf16> to vector<2x128x256xbf16>
    "tpu.trace_start"() <{level = 10 : i32, message = "hte,hed->htd"}> : () -> ()
    %cst_63 = arith.constant dense<0.000000e+00> : vector<2x8x256xf32>
    %129 = tpu.matmul %126, %128, %cst_63 {dimension_numbers = #tpu.dot_dimension_numbers<[2], [1], [1], [2], [0, 0, 0, 1, 1, 2], [0], [0]>} : vector<2x8x128xbf16>, vector<2x128x256xbf16>, vector<2x8x256xf32> -> vector<2x8x256xf32>
    "tpu.trace_stop"() : () -> ()
    %cst_64 = arith.constant dense<0.000000e+00> : vector<8x256xf32>
    %130 = vector.multi_reduction <add>, %129, %cst_64 [0] : vector<2x8x256xf32> to vector<8x256xf32>
    %131 = arith.addf %3, %130 : vector<8x256xf32>
    %c0_65 = arith.constant 0 : index
    %c0_66 = arith.constant 0 : index
    %c0_67 = arith.constant 0 : index
    %132 = vector.load %arg14[%c0_65, %c0_66, %c0_67] : memref<1x1x256xf32, #tpu.memory_space<vmem>>, vector<1x1x256xf32>
    %133 = vector.shape_cast %132 : vector<1x1x256xf32> to vector<1x256xf32>
    %134 = vector.broadcast %133 : vector<1x256xf32> to vector<8x256xf32>
    %135 = arith.addf %131, %134 : vector<8x256xf32>
    %c0_68 = arith.constant 0 : index
    %c0_69 = arith.constant 0 : index
    %c0_70 = arith.constant 0 : index
    %136 = vector.load %arg15[%c0_68, %c0_69, %c0_70] : memref<1x1x256xf32, #tpu.memory_space<vmem>>, vector<1x1x256xf32>
    %137 = vector.shape_cast %136 : vector<1x1x256xf32> to vector<1x256xf32>
    %c0_71 = arith.constant 0 : index
    %c0_72 = arith.constant 0 : index
    %c0_73 = arith.constant 0 : index
    %138 = vector.load %arg16[%c0_71, %c0_72, %c0_73] : memref<1x1x256xf32, #tpu.memory_space<vmem>>, vector<1x1x256xf32>
    %139 = vector.shape_cast %138 : vector<1x1x256xf32> to vector<1x256xf32>
    %cst_74 = arith.constant dense<0.000000e+00> : vector<8xf32>
    %140 = vector.multi_reduction <add>, %135, %cst_74 [1] : vector<8x256xf32> to vector<8xf32>
    %141 = vector.shape_cast %140 : vector<8xf32> to vector<8x1xf32>
    %cst_75 = arith.constant 2.560000e+02 : f32
    %142 = vector.broadcast %cst_75 : f32 to vector<8x1xf32>
    %143 = arith.divf %141, %142 : vector<8x1xf32>
    %144 = vector.broadcast %143 : vector<8x1xf32> to vector<8x256xf32>
    %145 = arith.subf %135, %144 : vector<8x256xf32>
    %146 = arith.mulf %145, %145 : vector<8x256xf32>
    %cst_76 = arith.constant dense<0.000000e+00> : vector<8xf32>
    %147 = vector.multi_reduction <add>, %146, %cst_76 [1] : vector<8x256xf32> to vector<8xf32>
    %148 = vector.shape_cast %147 : vector<8xf32> to vector<8x1xf32>
    %cst_77 = arith.constant 2.560000e+02 : f32
    %149 = vector.broadcast %cst_77 : f32 to vector<8x1xf32>
    %150 = arith.divf %148, %149 : vector<8x1xf32>
    %151 = vector.broadcast %143 : vector<8x1xf32> to vector<8x256xf32>
    %152 = arith.subf %135, %151 : vector<8x256xf32>
    %cst_78 = arith.constant 9.99999974E-6 : f32
    %153 = vector.broadcast %cst_78 : f32 to vector<8x1xf32>
    %154 = arith.addf %150, %153 : vector<8x1xf32>
    %155 = math.rsqrt %154 : vector<8x1xf32>
    %156 = vector.broadcast %155 : vector<8x1xf32> to vector<8x256xf32>
    %157 = arith.mulf %152, %156 : vector<8x256xf32>
    %158 = vector.broadcast %137 : vector<1x256xf32> to vector<8x256xf32>
    %159 = arith.mulf %157, %158 : vector<8x256xf32>
    %160 = vector.broadcast %139 : vector<1x256xf32> to vector<8x256xf32>
    %161 = arith.addf %159, %160 : vector<8x256xf32>
    %162 = arith.truncf %161 : vector<8x256xf32> to vector<8x256xbf16>
    %c0_79 = arith.constant 0 : index
    %c0_80 = arith.constant 0 : index
    %c0_81 = arith.constant 0 : index
    %163 = vector.load %arg17[%c0_79, %c0_80, %c0_81] : memref<1x256x1024xbf16, #tpu.memory_space<vmem>>, vector<1x256x1024xbf16>
    %164 = vector.shape_cast %163 : vector<1x256x1024xbf16> to vector<256x1024xbf16>
    %cst_82 = arith.constant dense<0.000000e+00> : vector<8x1024xf32>
    %165 = tpu.matmul %162, %164, %cst_82 {dimension_numbers = #tpu.dot_dimension_numbers<[1], [0], [0], [1], [0, 0, 1, 1], [], []>} : vector<8x256xbf16>, vector<256x1024xbf16>, vector<8x1024xf32> -> vector<8x1024xf32>
    %c0_83 = arith.constant 0 : index
    %c0_84 = arith.constant 0 : index
    %c0_85 = arith.constant 0 : index
    %166 = vector.load %arg18[%c0_83, %c0_84, %c0_85] : memref<1x1x1024xf32, #tpu.memory_space<vmem>>, vector<1x1x1024xf32>
    %167 = vector.shape_cast %166 : vector<1x1x1024xf32> to vector<1x1024xf32>
    %168 = vector.broadcast %167 : vector<1x1024xf32> to vector<8x1024xf32>
    %169 = arith.addf %165, %168 : vector<8x1024xf32>
    %170 = arith.mulf %169, %169 : vector<8x1024xf32>
    %171 = arith.mulf %169, %170 : vector<8x1024xf32>
    %cst_86 = arith.constant 4.471500e-02 : f32
    %172 = vector.broadcast %cst_86 : f32 to vector<8x1024xf32>
    %173 = arith.mulf %172, %171 : vector<8x1024xf32>
    %174 = arith.addf %169, %173 : vector<8x1024xf32>
    %cst_87 = arith.constant 0.797884583 : f32
    %175 = vector.broadcast %cst_87 : f32 to vector<8x1024xf32>
    %176 = arith.mulf %175, %174 : vector<8x1024xf32>
    %177 = math.tanh %176 : vector<8x1024xf32>
    %cst_88 = arith.constant 1.000000e+00 : f32
    %178 = vector.broadcast %cst_88 : f32 to vector<8x1024xf32>
    %179 = arith.addf %178, %177 : vector<8x1024xf32>
    %cst_89 = arith.constant 5.000000e-01 : f32
    %180 = vector.broadcast %cst_89 : f32 to vector<8x1024xf32>
    %181 = arith.mulf %180, %179 : vector<8x1024xf32>
    %182 = arith.mulf %169, %181 : vector<8x1024xf32>
    %183 = arith.truncf %182 : vector<8x1024xf32> to vector<8x1024xbf16>
    %c0_90 = arith.constant 0 : index
    %c0_91 = arith.constant 0 : index
    %c0_92 = arith.constant 0 : index
    %184 = vector.load %arg19[%c0_90, %c0_91, %c0_92] : memref<1x1024x256xbf16, #tpu.memory_space<vmem>>, vector<1x1024x256xbf16>
    %185 = vector.shape_cast %184 : vector<1x1024x256xbf16> to vector<1024x256xbf16>
    %cst_93 = arith.constant dense<0.000000e+00> : vector<8x256xf32>
    %186 = tpu.matmul %183, %185, %cst_93 {dimension_numbers = #tpu.dot_dimension_numbers<[1], [0], [0], [1], [0, 0, 1, 1], [], []>} : vector<8x1024xbf16>, vector<1024x256xbf16>, vector<8x256xf32> -> vector<8x256xf32>
    %c0_94 = arith.constant 0 : index
    %c0_95 = arith.constant 0 : index
    %c0_96 = arith.constant 0 : index
    %187 = vector.load %arg20[%c0_94, %c0_95, %c0_96] : memref<1x1x256xf32, #tpu.memory_space<vmem>>, vector<1x1x256xf32>
    %188 = vector.shape_cast %187 : vector<1x1x256xf32> to vector<1x256xf32>
    %189 = vector.broadcast %188 : vector<1x256xf32> to vector<8x256xf32>
    %190 = arith.addf %186, %189 : vector<8x256xf32>
    %191 = arith.addf %135, %190 : vector<8x256xf32>
    %c0_97 = arith.constant 0 : index
    %c0_98 = arith.constant 0 : index
    %192 = vector.load %arg24[%c0_97, %c0_98] : memref<8x256xf32, #tpu.memory_space<vmem>>, vector<8x256xf32>
    tpu.vector_store %arg24[%c0_97, %c0_98], %191 {strides = array<i32>} : memref<8x256xf32, #tpu.memory_space<vmem>>, vector<8x256xf32>,
    %c1_i32_99 = arith.constant 1 : i32
    %193 = arith.cmpi eq, %arg1, %c1_i32_99 : i32
    %194 = arith.extui %193 : i1 to i32
    %c0_i32_100 = arith.constant 0 : i32
    %195 = arith.cmpi ne, %194, %c0_i32_100 : i32
    scf.if %195 {
      %c0_101 = arith.constant 0 : index
      %c0_102 = arith.constant 0 : index
      %196 = vector.load %arg21[%c0_101, %c0_102] : memref<1x256xf32, #tpu.memory_space<vmem>>, vector<1x256xf32>
      %c0_103 = arith.constant 0 : index
      %c0_104 = arith.constant 0 : index
      %197 = vector.load %arg22[%c0_103, %c0_104] : memref<1x256xf32, #tpu.memory_space<vmem>>, vector<1x256xf32>
      %cst_105 = arith.constant dense<0.000000e+00> : vector<8xf32>
      %198 = vector.multi_reduction <add>, %191, %cst_105 [1] : vector<8x256xf32> to vector<8xf32>
      %199 = vector.shape_cast %198 : vector<8xf32> to vector<8x1xf32>
      %cst_106 = arith.constant 2.560000e+02 : f32
      %200 = vector.broadcast %cst_106 : f32 to vector<8x1xf32>
      %201 = arith.divf %199, %200 : vector<8x1xf32>
      %202 = vector.broadcast %201 : vector<8x1xf32> to vector<8x256xf32>
      %203 = arith.subf %191, %202 : vector<8x256xf32>
      %204 = arith.mulf %203, %203 : vector<8x256xf32>
      %cst_107 = arith.constant dense<0.000000e+00> : vector<8xf32>
      %205 = vector.multi_reduction <add>, %204, %cst_107 [1] : vector<8x256xf32> to vector<8xf32>
      %206 = vector.shape_cast %205 : vector<8xf32> to vector<8x1xf32>
      %cst_108 = arith.constant 2.560000e+02 : f32
      %207 = vector.broadcast %cst_108 : f32 to vector<8x1xf32>
      %208 = arith.divf %206, %207 : vector<8x1xf32>
      %209 = vector.broadcast %201 : vector<8x1xf32> to vector<8x256xf32>
      %210 = arith.subf %191, %209 : vector<8x256xf32>
      %cst_109 = arith.constant 9.99999974E-6 : f32
      %211 = vector.broadcast %cst_109 : f32 to vector<8x1xf32>
      %212 = arith.addf %208, %211 : vector<8x1xf32>
      %213 = math.rsqrt %212 : vector<8x1xf32>
      %214 = vector.broadcast %213 : vector<8x1xf32> to vector<8x256xf32>
      %215 = arith.mulf %210, %214 : vector<8x256xf32>
      %216 = vector.broadcast %196 : vector<1x256xf32> to vector<8x256xf32>
      %217 = arith.mulf %215, %216 : vector<8x256xf32>
      %218 = vector.broadcast %197 : vector<1x256xf32> to vector<8x256xf32>
      %219 = arith.addf %217, %218 : vector<8x256xf32>
      %220 = arith.truncf %219 : vector<8x256xf32> to vector<8x256xbf16>
      %c0_110 = arith.constant 0 : index
      %c0_111 = arith.constant 0 : index
      %c0_112 = arith.constant 0 : index
      %221 = vector.load %arg23[%c0_110, %c0_111, %c0_112] : memref<1x8x256xbf16, #tpu.memory_space<vmem>>, vector<1x8x256xbf16>
      %222 = vector.shape_cast %221 : vector<1x8x256xbf16> to vector<8x256xbf16>
      %223 = vector.shape_cast %220 : vector<8x256xbf16> to vector<1x8x256xbf16>
      tpu.vector_store %arg23[%c0_110, %c0_111, %c0_112], %223 {strides = array<i32>} : memref<1x8x256xbf16, #tpu.memory_space<vmem>>, vector<1x8x256xbf16>,
    } else {
    }
    return
  }
  func.func @transform_0(%arg0: i32, %arg1: i32) -> (i32, i32, i32) {
    %c0_i32 = arith.constant 0 : i32
    %c0_i32_0 = arith.constant 0 : i32
    %c0_i32_1 = arith.constant 0 : i32
    return %arg0, %c0_i32, %c0_i32_0 : i32, i32, i32
  }
  func.func @transform_1(%arg0: i32, %arg1: i32) -> (i32, i32) {
    %c0_i32 = arith.constant 0 : i32
    %c0_i32_0 = arith.constant 0 : i32
    %c0_i32_1 = arith.constant 0 : i32
    return %c0_i32, %c0_i32_0 : i32, i32
  }
  func.func @transform_2(%arg0: i32, %arg1: i32) -> (i32, i32) {
    %c0_i32 = arith.constant 0 : i32
    %c0_i32_0 = arith.constant 0 : i32
    %c0_i32_1 = arith.constant 0 : i32
    return %c0_i32, %c0_i32_0 : i32, i32
  }
  func.func @transform_3(%arg0: i32, %arg1: i32) -> (i32, i32, i32) {
    %c0_i32 = arith.constant 0 : i32
    %c0_i32_0 = arith.constant 0 : i32
    %c0_i32_1 = arith.constant 0 : i32
    return %arg1, %c0_i32, %c0_i32_0 : i32, i32, i32
  }
  func.func @transform_4(%arg0: i32, %arg1: i32) -> (i32, i32, i32) {
    %c0_i32 = arith.constant 0 : i32
    %c0_i32_0 = arith.constant 0 : i32
    %c0_i32_1 = arith.constant 0 : i32
    return %arg1, %c0_i32, %c0_i32_0 : i32, i32, i32
  }
  func.func @transform_5(%arg0: i32, %arg1: i32) -> (i32, i32, i32, i32) {
    %c0_i32 = arith.constant 0 : i32
    %c0_i32_0 = arith.constant 0 : i32
    %c0_i32_1 = arith.constant 0 : i32
    %c0_i32_2 = arith.constant 0 : i32
    return %arg1, %c0_i32, %c0_i32_0, %c0_i32_1 : i32, i32, i32, i32
  }
  func.func @transform_6(%arg0: i32, %arg1: i32) -> (i32, i32, i32, i32) {
    %c0_i32 = arith.constant 0 : i32
    %c0_i32_0 = arith.constant 0 : i32
    %c0_i32_1 = arith.constant 0 : i32
    %c0_i32_2 = arith.constant 0 : i32
    return %arg1, %c0_i32, %c0_i32_0, %c0_i32_1 : i32, i32, i32, i32
  }
  func.func @transform_7(%arg0: i32, %arg1: i32) -> (i32, i32, i32, i32) {
    %c0_i32 = arith.constant 0 : i32
    %c0_i32_0 = arith.constant 0 : i32
    %c0_i32_1 = arith.constant 0 : i32
    %c0_i32_2 = arith.constant 0 : i32
    return %arg1, %c0_i32, %c0_i32_0, %c0_i32_1 : i32, i32, i32, i32
  }
  func.func @transform_8(%arg0: i32, %arg1: i32) -> (i32, i32, i32, i32) {
    %c0_i32 = arith.constant 0 : i32
    %c0_i32_0 = arith.constant 0 : i32
    %c0_i32_1 = arith.constant 0 : i32
    %c0_i32_2 = arith.constant 0 : i32
    return %arg1, %c0_i32, %c0_i32_0, %c0_i32_1 : i32, i32, i32, i32
  }
  func.func @transform_9(%arg0: i32, %arg1: i32) -> (i32, i32, i32, i32) {
    %c0_i32 = arith.constant 0 : i32
    %c0_i32_0 = arith.constant 0 : i32
    %c0_i32_1 = arith.constant 0 : i32
    %c0_i32_2 = arith.constant 0 : i32
    return %arg1, %c0_i32, %c0_i32_0, %c0_i32_1 : i32, i32, i32, i32
  }
  func.func @transform_10(%arg0: i32, %arg1: i32) -> (i32, i32, i32, i32) {
    %c0_i32 = arith.constant 0 : i32
    %c0_i32_0 = arith.constant 0 : i32
    %c0_i32_1 = arith.constant 0 : i32
    %c0_i32_2 = arith.constant 0 : i32
    return %arg1, %c0_i32, %c0_i32_0, %c0_i32_1 : i32, i32, i32, i32
  }
  func.func @transform_11(%arg0: i32, %arg1: i32) -> (i32, i32, i32, i32) {
    %c0_i32 = arith.constant 0 : i32
    %c0_i32_0 = arith.constant 0 : i32
    %c0_i32_1 = arith.constant 0 : i32
    %c0_i32_2 = arith.constant 0 : i32
    return %arg1, %c0_i32, %c0_i32_0, %c0_i32_1 : i32, i32, i32, i32
  }
  func.func @transform_12(%arg0: i32, %arg1: i32) -> (i32, i32, i32) {
    %c0_i32 = arith.constant 0 : i32
    %c0_i32_0 = arith.constant 0 : i32
    %c0_i32_1 = arith.constant 0 : i32
    return %arg1, %c0_i32, %c0_i32_0 : i32, i32, i32
  }
  func.func @transform_13(%arg0: i32, %arg1: i32) -> (i32, i32, i32) {
    %c0_i32 = arith.constant 0 : i32
    %c0_i32_0 = arith.constant 0 : i32
    %c0_i32_1 = arith.constant 0 : i32
    return %arg1, %c0_i32, %c0_i32_0 : i32, i32, i32
  }
  func.func @transform_14(%arg0: i32, %arg1: i32) -> (i32, i32, i32) {
    %c0_i32 = arith.constant 0 : i32
    %c0_i32_0 = arith.constant 0 : i32
    %c0_i32_1 = arith.constant 0 : i32
    return %arg1, %c0_i32, %c0_i32_0 : i32, i32, i32
  }
  func.func @transform_15(%arg0: i32, %arg1: i32) -> (i32, i32, i32) {
    %c0_i32 = arith.constant 0 : i32
    %c0_i32_0 = arith.constant 0 : i32
    %c0_i32_1 = arith.constant 0 : i32
    return %arg1, %c0_i32, %c0_i32_0 : i32, i32, i32
  }
  func.func @transform_16(%arg0: i32, %arg1: i32) -> (i32, i32, i32) {
    %c0_i32 = arith.constant 0 : i32
    %c0_i32_0 = arith.constant 0 : i32
    %c0_i32_1 = arith.constant 0 : i32
    return %arg1, %c0_i32, %c0_i32_0 : i32, i32, i32
  }
  func.func @transform_17(%arg0: i32, %arg1: i32) -> (i32, i32, i32) {
    %c0_i32 = arith.constant 0 : i32
    %c0_i32_0 = arith.constant 0 : i32
    %c0_i32_1 = arith.constant 0 : i32
    return %arg1, %c0_i32, %c0_i32_0 : i32, i32, i32
  }
  func.func @transform_18(%arg0: i32, %arg1: i32) -> (i32, i32, i32) {
    %c0_i32 = arith.constant 0 : i32
    %c0_i32_0 = arith.constant 0 : i32
    %c0_i32_1 = arith.constant 0 : i32
    return %arg1, %c0_i32, %c0_i32_0 : i32, i32, i32
  }
  func.func @transform_19(%arg0: i32, %arg1: i32) -> (i32, i32) {
    %c0_i32 = arith.constant 0 : i32
    %c0_i32_0 = arith.constant 0 : i32
    %c0_i32_1 = arith.constant 0 : i32
    return %c0_i32, %c0_i32_0 : i32, i32
  }
  func.func @transform_20(%arg0: i32, %arg1: i32) -> (i32, i32) {
    %c0_i32 = arith.constant 0 : i32
    %c0_i32_0 = arith.constant 0 : i32
    %c0_i32_1 = arith.constant 0 : i32
    return %c0_i32, %c0_i32_0 : i32, i32
  }
  func.func @transform_21(%arg0: i32, %arg1: i32) -> (i32, i32, i32) {
    %c0_i32 = arith.constant 0 : i32
    %c0_i32_0 = arith.constant 0 : i32
    %c0_i32_1 = arith.constant 0 : i32
    return %arg0, %c0_i32, %c0_i32_0 : i32, i32, i32
  }
}

</mosaic_0001>

<bundles_post_ra>
// kernel: tpu_custom_call.1
= control target key start
LH: loop header
LB: loop body
LE: loop exit
PB: predicated region body
PF: predicated region fallthrough
CT: control target
= control target key end

     0   :  { %s8268_s0 = inlined_call_operand.hbm [shape: f32[2,8,256], index: 0, kind: input, shape index: {}]   ;;  %s8269_s1 = inlined_call_operand.hbm [shape: f32[8,128], index: 1, kind: input, shape index: {}]   ;;  %s8270_s2 = inlined_call_operand.hbm [shape: f32[8,128], index: 2, kind: input, shape index: {}]   ;;  %s8271_s3 = inlined_call_operand.vmem [shape: f32[2,1,256], index: 3, kind: input, shape index: {}]   ;;  %s8272_s4 = inlined_call_operand.vmem [shape: f32[2,1,256], index: 4, kind: input, shape index: {}]   ;;  %s8273_s5 = inlined_call_operand.hbm [shape: bf16[2,2,256,128], index: 5, kind: input, shape index: {}]   ;;  %s8274_s6 = inlined_call_operand.vmem [shape: f32[2,2,1,128], index: 6, kind: input, shape index: {}]   ;;  %s8275_s7 = inlined_call_operand.hbm [shape: bf16[2,2,256,128], index: 7, kind: input, shape index: {}]   ;;  %s8276_s8 = inlined_call_operand.hbm [shape: f32[2,2,1,128], index: 8, kind: input, shape index: {}]   ;;  %s8277_s9 = inlined_call_operand.hbm [shape: bf16[2,2,256,128], index: 9, kind: input, shape index: {}]   ;;  %s8278_s10 = inlined_call_operand.vmem [shape: f32[2,2,1,128], index: 10, kind: input, shape index: {}]   ;;  %s8279_s11 = inlined_call_operand.hbm [shape: bf16[2,2,128,256], index: 11, kind: input, shape index: {}]   ;;  %s8280_s12 = inlined_call_operand.vmem [shape: f32[2,1,256], index: 12, kind: input, shape index: {}]   ;;  %s8281_s13 = inlined_call_operand.vmem [shape: f32[2,1,256], index: 13, kind: input, shape index: {}]   ;;  %s8282_s14 = inlined_call_operand.vmem [shape: f32[2,1,256], index: 14, kind: input, shape index: {}]   ;;  %s8283_s15 = inlined_call_operand.hbm [shape: bf16[2,256,1024], index: 15, kind: input, shape index: {}]   ;;  %s8284_s16 = inlined_call_operand.vmem [shape: f32[2,1,1024], index: 16, kind: input, shape index: {}]   ;;  %s8285_s17 = inlined_call_operand.hbm [shape: bf16[2,1024,256], index: 17, kind: input, shape index: {}]   ;;  %s8286_s18 = inlined_call_operand.vmem [shape: f32[2,1,256], index: 18, kind: input, shape index: {}]   ;;  %s8287_s19 = inlined_call_operand.vmem [shape: f32[1,256], index: 19, kind: input, shape index: {}]   ;;  %s8288_s20 = inlined_call_operand.vmem [shape: f32[1,256], index: 20, kind: input, shape index: {}]   ;;  %s8289_s21 = inlined_call_operand.hbm [shape: bf16[2,8,256], index: 21, kind: output, shape index: {}]  }
   0x1   :  { %8354 = sst [smem:[#allocation52_spill]] %s8268_s0 }
   0x2   :  { %8355 = sst [smem:[#allocation53_spill]] %s8269_s1 }
   0x3   :  { %8356 = sst [smem:[#allocation54_spill]] %s8270_s2 }
   0x4   :  { %8357 = sst [smem:[#allocation55_spill]] %s8271_s3 }
   0x5   :  { %8358 = sst [smem:[#allocation56_spill]] %s8272_s4 }
   0x6   :  { %8359 = sst [smem:[#allocation57_spill]] %s8273_s5 }
   0x7   :  { %8360 = sst [smem:[#allocation58_spill]] %s8274_s6 }
   0x8   :  { %8361 = sst [smem:[#allocation59_spill]] %s8275_s7 }
   0x9   :  { %8362 = sst [smem:[#allocation60_spill]] %s8276_s8 }
   0xa   :  { %8363 = sst [smem:[#allocation61_spill]] %s8277_s9 }
   0xb   :  { %8364 = sst [smem:[#allocation62_spill]] %s8278_s10 }
   0xc   :  { %8365 = sst [smem:[#allocation63_spill]] %s8279_s11 }
   0xd   :  { %8366 = sst [smem:[#allocation64_spill]] %s8280_s12 }
   0xe   :  { %8367 = sst [smem:[#allocation65_spill]] %s8281_s13 }
   0xf   :  { %8368 = sst [smem:[#allocation66_spill]] %s8282_s14 }
  0x10   :  { %8369 = sst [smem:[#allocation67_spill]] %s8283_s15 }
  0x11   :  { %8370 = sst [smem:[#allocation68_spill]] %s8284_s16 }
  0x12   :  { %8371 = sst [smem:[#allocation69_spill]] %s8285_s17 }
  0x13   :  { %8372 = sst [smem:[#allocation70_spill]] %s8286_s18 }
  0x14   :  { %8373 = sst [smem:[#allocation71_spill]] %s8287_s19 }
  0x15   :  { %8374 = sst [smem:[#allocation72_spill]] %s8288_s20 }
  0x16   :  { %8375 = sst [smem:[#allocation73_spill]] %s8289_s21 }
  0x17   :  { %26 = vsyncpa [#allocation4], 0 }
  0x18   :  { %28 = vsyncpa [#allocation4 + $0x1], 0 }
  0x19   :  { %29 = vsyncpa [#allocation7], 0 }
  0x1a   :  { %30 = vsyncpa [#allocation10], 0 }
  0x1b   :  { %32 = vsyncpa [#allocation10 + $0x1], 0 }
  0x1c   :  { %33 = vsyncpa [#allocation13], 0 }
  0x1d   :  { %35 = vsyncpa [#allocation13 + $0x1], 0 }
  0x1e   :  { %36 = vsyncpa [#allocation16], 0 }
  0x1f   :  { %38 = vsyncpa [#allocation16 + $0x1], 0 }
  0x20   :  { %39 = vsyncpa [#allocation19], 0 }
  0x21   :  { %41 = vsyncpa [#allocation19 + $0x1], 0 }
  0x22   :  { %42 = vsyncpa [#allocation5], 0 }
  0x23   :  { %44 = vsyncpa [#allocation5 + $0x1], 0  ;;  %s7022_s2 = smov 0   ;;  %s7024_s25 = smov 0  }
  0x24   :  { %s7026_s26 = smov 0   ;;  %s7028_s27 = smov 0  }
  0x25   :  { %s7030_s3 = smov 0   ;;  %s7032_s28 = smov 0  }
  0x26   :  { %s7034_s29 = smov 0   ;;  %s7036_s0 = smov 0  }
  0x27   :  { %s7038_s4 = smov 0   ;;  %s7040_s30 = smov 0  }
  0x28   :  { %s7042_s5 = smov 0  }
  0x29 LB: > { %8376 = sst [smem:[#allocation28_spill]] %s6850_s25  ;;  %s7076_s22 = sadd.s32 4294967295, %s6886_s5   ;;  %s6886_s5 = sphi %s7042_s5, %s50_s5   ;;  %s6882_s30 = sphi %s7040_s30, %s8495_s30   ;;  %s6878_s4 = sphi %s7038_s4, %s8494_s4   ;;  %s6874_s0 = sphi %s7036_s0, %s8493_s0   ;;  %s6870_s29 = sphi %s7034_s29, %s8492_s29   ;;  %s6866_s28 = sphi %s7032_s28, %s8491_s28   ;;  %s6862_s3 = sphi %s7030_s3, %s8490_s3   ;;  %s6858_s27 = sphi %s7028_s27, %s8489_s27   ;;  %s6854_s26 = sphi %s7026_s26, %s8488_s26   ;;  %s6850_s25 = sphi %s7024_s25, %s8487_s25   ;;  %s6846_s2 = sphi %s7022_s2, %s8486_s2  }
  0x2a   : > { %8377 = sst [smem:[#allocation29_spill]] %s6854_s26  ;;  %p8298_p0 = scmp.eq.s32.totalorder %s6886_s5, 0 }
  0x2b   : > { %8378 = sst [smem:[#allocation30_spill]] %s6858_s27  ;;  %p8297_p1 = scmp.eq.s32.totalorder %s7076_s22, 0 }
  0x2c   : > { %8379 = sst [smem:[#allocation31_spill]] %s6862_s3  ;;  %p196_p2 = scmp.ne.s32.totalorder %s6854_s26, %s6850_s25 }
  0x2d   : > { %8380 = sst [smem:[#allocation32_spill]] %s6866_s28  ;;  %p202_p3 = scmp.ne.s32.totalorder %s6850_s25, %s6846_s2 }
  0x2e   : > { %8381 = sst [smem:[#allocation33_spill]] %s6870_s29  ;;  %p5286_p5 = scmp.ge.s32.totalorder %s6886_s5, 1 }
  0x2f   : > { %8382 = sst [smem:[#allocation34_spill]] %s6874_s0  ;;  %p198_p6 = por %p196_p2, %p8298_p0 }
  0x30   : > { %8383 = sst [smem:[#allocation35_spill]] %s6878_s4  ;;  %p7090_p7 = por %p202_p3, %p8297_p1 }
  0x31   : > { %8384 = sst [smem:[#allocation36_spill]] %s6882_s30  ;;  %p619_p8 = scmp.lt.s32.totalorder %s6886_s5, 5 }
  0x32   : > { %8385 = sst [smem:[#allocation37_spill]] %s6886_s5  ;;  %s6888_s23 = smov [#allocation6]  }
  0x33   : > { %8386 = sst [smem:[#allocation38_spill]] %s7076_s22  ;;  %p7095_p9 = pnand %p5286_p5, %p619_p8 }
  0x34   : > { %s8387_s1 = scalar_select %p7090_p7, 1, 0 }
  0x35   : > { %s8389_s24 = scalar_select %p7095_p9, 1, 0 }
  0x36   : > { %8388 = sst [smem:[#allocation39_spill]] %s8387_s1  ;;  %s632_s21 = sshll.u32 %s6888_s23, 4  ;;  %s633_s21 = int_to_ptr.vmem [resolvable:$true] %s632_s21 }
  0x37   : > { %8390 = sst [smem:[#allocation40_spill]] %s8389_s24  ;;  %p8296_p10 = scmp.lt.s32.totalorder %s6886_s5, 4 }
  0x38   : > { %p5935_p11 = pneg %p7095_p9  ;;  %s7115_s20 = sand.u32 1, %s6886_s5  }
  0x39   : > { %p7104_p12 = pnand %p8296_p10, %p198_p6  ;;  %s7118_s19 = sand.u32 1, %s6854_s26  }
  0x3a   : > { %p7110_p13 = pnand %p5935_p11, %p8297_p1  ;;  %s8393_s16 = sld [smem:[#allocation53_spill]] }
  0x3b   : > { %s8391_s2 = scalar_select %p7104_p12, 1, 0 }
  0x3c   : > { %s8392_s0 = scalar_select %p7110_p13, 1, 0 }
  0x3d   : > { %p8307_p3 = pneg %p7110_p13 }
  0x40   : > { %s6448_s14 = scalar_lea.hbm %s8393_s16, 128 }
  0x41   : > { %p6449_p2 = scmp.ne.s32.totalorder %s8393_s16, %s6448_s14  ;;  %p6455_p8 = scmp.lt.u32.totalorder %s6448_s14, %s8393_s16 }
  0x43   : > { %p6451_p5 = pnand %p8307_p3, %p6449_p2 }
  0x45   : > { %p6452_p6 = pneg %p6451_p5 }
  0x47   : > { %p6457_p11 = pnand %p6455_p8, %p6452_p6 }
  0x49   : > { %6460 = shalt.err (!%p6457_p11)
}
  0x4a   : > { %s6461_s29 = scalar_lea.vmem %s633_s21, 128  ;;  %p6469_p0 = scmp.lt.s32.totalorder %s633_s21, %s633_s21 }
  0x4b   : > { %p6462_p10 = scmp.ne.s32.totalorder %s633_s21, %s6461_s29  ;;  %p6470_p7 = scmp.lt.s32.totalorder %s6461_s29, %s6461_s29 }
  0x4d   : > { %p6464_p4 = pnand %p6462_p10, %p8307_p3  ;;  %p6471_p9 = por %p6470_p7, %p6469_p0 }
  0x4f   : > { %p6465_p1 = pneg %p6464_p4 }
  0x51   : > { %p6472_p12 = pnand %p6471_p9, %p6465_p1 }
  0x53   : > { %6475 = shalt.err (!%p6472_p12)
}
  0x54   : > { %5938 = dma.hbm_to_vmem [thread:$0]  (!%p7110_p13), %s8393_s16, 128, %s633_s21, [#allocation7]  }
  0x55   : > { %s7143_s6 = sshll.u32 %s7118_s19, 8  ;;  %s7146_s10 = sshll.u32 %s6878_s4, 12 }
  0x56   : > { %s8394_s29 = sld [smem:[#allocation57_spill]]  ;;  %s697_s12 = scalar_lea.vmem [#allocation9], %s7143_s6 }
  0x57   : > { %s704_s13 = sshll.u32 %s697_s12, 4  ;;  %p8396_p1 = scmp.ne.s32.totalorder %s8391_s2, 0  ;;  %s7155_s13 = int_to_ptr.vmem [resolvable:$true] %s704_s13 }
  0x59   : > { %p7162_p4 = pneg %p8396_p1 }
  0x5b   : > { %s8397_s25 = scalar_select %p7162_p4, 1, 0 }
  0x5c   : > { %s8395_s23 = smov %s8394_s29  ;;  %s7152_s1 = scalar_lea.hbm %s8394_s29, %s7146_s10 }
  0x5d   : > { %s6476_s16 = scalar_lea.hbm %s7152_s1, 4096  ;;  %s6481_s29 = scalar_lea.hbm %s8395_s23, 8192 }
  0x5e   : > { %p6477_p0 = scmp.ne.s32.totalorder %s7152_s1, %s6476_s16  ;;  %p6482_p10 = scmp.lt.u32.totalorder %s7152_s1, %s8395_s23 }
  0x5f   : > { %p6483_p12 = scmp.lt.u32.totalorder %s6481_s29, %s6476_s16  ;;  %p6485_p5 = scmp.lt.u32.totalorder %s6476_s16, %s7152_s1 }
  0x60   : > { %p6479_p7 = pnand %p7162_p4, %p6477_p0 }
  0x61   : > { %p6484_p2 = por %p6483_p12, %p6482_p10 }
  0x62   : > { %p6480_p9 = pneg %p6479_p7 }
  0x63   : > { %p6486_p6 = por %p6485_p5, %p6484_p2 }
  0x65   : > { %p6487_p8 = pnand %p6486_p6, %p6480_p9 }
  0x67   : > { %6490 = shalt.err (!%p6487_p8)
}
  0x68   : > { %s6491_s21 = scalar_lea.vmem %s7155_s13, 4096  ;;  %s6889_s14 = smov [#allocation9]  }
  0x69   : > { %p6492_p11 = scmp.ne.s32.totalorder %s7155_s13, %s6491_s21  ;;  %s6496_s18 = sshll.u32 %s6889_s14, 4  ;;  %s6497_s18 = int_to_ptr.vmem [resolvable:$false] %s6496_s18 }
  0x6a   : > { %s6498_s24 = scalar_lea.vmem %s6497_s18, 8192  ;;  %p6499_p3 = scmp.lt.s32.totalorder %s7155_s13, %s6497_s18 }
  0x6b   : > { %p6494_p0 = pnand %p6492_p11, %p7162_p4  ;;  %p6500_p13 = scmp.lt.s32.totalorder %s6498_s24, %s6491_s21 }
  0x6d   : > { %p6495_p7 = pneg %p6494_p0  ;;  %p6501_p10 = por %p6500_p13, %p6499_p3 }
  0x6f   : > { %p6502_p12 = pnand %p6501_p10, %p6495_p7 }
  0x71   : > { %6505 = shalt.err (!%p6502_p12)
}
  0x72   : > { %s8316_s16 = smov 64   ;;  %s8318_s29 = smov 4  }
  0x73   : > { %s8398_s12 = scalar_lea.sflag [#allocation10], %s7115_s20  ;;  %s5299_s21 = sshll.u32 %s7118_s19, 1 }
  0x74   : > { %5948 = dma.hbm_to_vmem [thread:$0]  (!%p8396_p1), %s7152_s1, 4096, %s7155_s13, %s8398_s12, %s8316_s16, %s8316_s16, %s8318_s29  }
  0x75   : > { %s5738_s14 = sshll.u32 %s6878_s4, 5  ;;  %s8399_s8 = sld [smem:[#allocation60_spill]] }
  0x76   : > { %s746_s17 = scalar_lea.vmem [#allocation12], %s5299_s21  ;;  %s8315_s9 = scalar_lea.sflag [#allocation13], %s7115_s20 }
  0x77   : > { %s753_s15 = sshll.u32 %s746_s17, 4  ;;  %s7197_s15 = int_to_ptr.vmem [resolvable:$true] %s753_s15 }
  0x7b   : > { %s7195_s23 = scalar_lea.hbm %s8399_s8, %s5738_s14  ;;  %s6511_s12 = scalar_lea.hbm %s8399_s8, 64 }
  0x7c   : > { %s6506_s7 = scalar_lea.hbm %s7195_s23, 32  ;;  %p6512_p2 = scmp.lt.u32.totalorder %s7195_s23, %s8399_s8 }
  0x7d   : > { %p6507_p13 = scmp.ne.s32.totalorder %s7195_s23, %s6506_s7  ;;  %p6513_p5 = scmp.lt.u32.totalorder %s6511_s12, %s6506_s7 }
  0x7e   : > { %p6515_p8 = scmp.lt.u32.totalorder %s6506_s7, %s7195_s23 }
  0x7f   : > { %p6509_p3 = pnand %p6507_p13, %p7162_p4  ;;  %p6514_p6 = por %p6513_p5, %p6512_p2 }
  0x81   : > { %p6510_p9 = pneg %p6509_p3  ;;  %p6516_p11 = por %p6515_p8, %p6514_p6 }
  0x83   : > { %p6517_p0 = pnand %p6516_p11, %p6510_p9 }
  0x85   : > { %6520 = shalt.err (!%p6517_p0)
}
  0x86   : > { %s6521_s17 = scalar_lea.vmem %s7197_s15, 32  ;;  %s6892_s21 = smov [#allocation12]  }
  0x87   : > { %p6522_p7 = scmp.ne.s32.totalorder %s7197_s15, %s6521_s17  ;;  %s6526_s24 = sshll.u32 %s6892_s21, 4  ;;  %s6527_s24 = int_to_ptr.vmem [resolvable:$false] %s6526_s24 }
  0x88   : > { %s6528_s1 = scalar_lea.vmem %s6527_s24, 64  ;;  %p6529_p13 = scmp.lt.s32.totalorder %s7197_s15, %s6527_s24 }
  0x89   : > { %p6524_p10 = pnand %p6522_p7, %p7162_p4  ;;  %p6530_p3 = scmp.lt.s32.totalorder %s6528_s1, %s6521_s17 }
  0x8b   : > { %p6525_p12 = pneg %p6524_p10  ;;  %p6531_p2 = por %p6530_p3, %p6529_p13 }
  0x8d   : > { %p6532_p5 = pnand %p6531_p2, %p6525_p12 }
  0x8f   : > { %6535 = shalt.err (!%p6532_p5)
}
  0x90   : > { %s6893_s7 = smov 16   ;;  %s6894_s13 = smov 1  }
  0x91   : > { %5954 = dma.hbm_to_vmem [thread:$0]  (!%p8396_p1), %s7195_s23, 32, %s7197_s15, %s8315_s9, %s6893_s7, %s6893_s7, %s6894_s13  }
  0x92   : > { %s8400_s11 = sld [smem:[#allocation63_spill]]  ;;  %s795_s17 = scalar_lea.vmem [#allocation15], %s7143_s6 }
  0x93   : > { %s802_s21 = sshll.u32 %s795_s17, 4  ;;  %s8325_s24 = scalar_lea.sflag [#allocation16], %s7115_s20  ;;  %s7230_s21 = int_to_ptr.vmem [resolvable:$true] %s802_s21 }
  0x98   : > { %s7227_s18 = scalar_lea.hbm %s8400_s11, %s7146_s10  ;;  %s6541_s7 = scalar_lea.hbm %s8400_s11, 8192 }
  0x99   : > { %s6536_s1 = scalar_lea.hbm %s7227_s18, 4096  ;;  %p6542_p11 = scmp.lt.u32.totalorder %s7227_s18, %s8400_s11 }
  0x9a   : > { %p6537_p9 = scmp.ne.s32.totalorder %s7227_s18, %s6536_s1  ;;  %p6543_p0 = scmp.lt.u32.totalorder %s6541_s7, %s6536_s1 }
  0x9b   : > { %p6545_p10 = scmp.lt.u32.totalorder %s6536_s1, %s7227_s18 }
  0x9c   : > { %p6539_p6 = pnand %p6537_p9, %p7162_p4  ;;  %p6544_p7 = por %p6543_p0, %p6542_p11 }
  0x9e   : > { %p6540_p8 = pneg %p6539_p6  ;;  %p6546_p12 = por %p6545_p10, %p6544_p7 }
  0xa0   : > { %p6547_p13 = pnand %p6546_p12, %p6540_p8 }
  0xa2   : > { %6550 = shalt.err (!%p6547_p13)
}
  0xa3   : > { %s6551_s14 = scalar_lea.vmem %s7230_s21, 4096  ;;  %s6895_s17 = smov [#allocation15]  }
  0xa4   : > { %p6552_p3 = scmp.ne.s32.totalorder %s7230_s21, %s6551_s14  ;;  %s6556_s15 = sshll.u32 %s6895_s17, 4  ;;  %s6557_s15 = int_to_ptr.vmem [resolvable:$false] %s6556_s15 }
  0xa5   : > { %s6558_s23 = scalar_lea.vmem %s6557_s15, 8192  ;;  %p6559_p9 = scmp.lt.s32.totalorder %s7230_s21, %s6557_s15 }
  0xa6   : > { %p6554_p2 = pnand %p6552_p3, %p7162_p4  ;;  %p6560_p6 = scmp.lt.s32.totalorder %s6558_s23, %s6551_s14 }
  0xa8   : > { %p6555_p5 = pneg %p6554_p2  ;;  %p6561_p11 = por %p6560_p6, %p6559_p9 }
  0xaa   : > { %p6562_p0 = pnand %p6561_p11, %p6555_p5 }
  0xac   : > { %6565 = shalt.err (!%p6562_p0)
}
  0xad   : > { %s8323_s1 = smov 128   ;;  %s8324_s7 = smov 8  }
  0xae   : > { %5960 = dma.hbm_to_vmem [thread:$0]  (!%p8396_p1), %s7227_s18, 4096, %s7230_s21, %s8325_s24, %s8323_s1, %s8323_s1, %s8324_s7  }
  0xaf   : > { %s6898_s13 = smov [#allocation8]   ;;  %s8401_s15 = sld [smem:[#allocation54_spill]] }
  0xb0   : > { %s643_s12 = sshll.u32 %s6898_s13, 4  ;;  %p8402_p7 = scmp.ne.s32.totalorder %s8392_s0, 0  ;;  %s644_s12 = int_to_ptr.vmem [resolvable:$true] %s643_s12 }
  0xb2   : > { %p8403_p10 = pneg %p8402_p7 }
  0xb5   : > { %s6566_s23 = scalar_lea.hbm %s8401_s15, 128 }
  0xb6   : > { %p6567_p8 = scmp.ne.s32.totalorder %s8401_s15, %s6566_s23  ;;  %p6573_p3 = scmp.lt.u32.totalorder %s6566_s23, %s8401_s15 }
  0xb8   : > { %p6569_p12 = pnand %p6567_p8, %p8403_p10 }
  0xba   : > { %p6570_p13 = pneg %p6569_p12 }
  0xbc   : > { %p6575_p2 = pnand %p6573_p3, %p6570_p13 }
  0xbe   : > { %6578 = shalt.err (!%p6575_p2)
}
  0xbf   : > { %s6579_s18 = scalar_lea.vmem %s644_s12, 128  ;;  %p8404_p9 = pmov %p8403_p10 }
  0xc0   : > { %p6580_p5 = scmp.ne.s32.totalorder %s644_s12, %s6579_s18  ;;  %p6587_p0 = scmp.lt.s32.totalorder %s644_s12, %s644_s12 }
  0xc1   : > { %p6588_p1 = scmp.lt.s32.totalorder %s6579_s18, %s6579_s18 }
  0xc2   : > { %p6582_p6 = pnand %p6580_p5, %p8404_p9 }
  0xc3   : > { %p6589_p4 = por %p6588_p1, %p6587_p0 }
  0xc4   : > { %p6583_p11 = pneg %p6582_p6 }
  0xc6   : > { %p6590_p8 = pnand %p6589_p4, %p6583_p11 }
  0xc8   : > { %6593 = shalt.err (!%p6590_p8)
}
  0xc9   : > { %5941 = dma.hbm_to_vmem [thread:$0]  (!%p8402_p7), %s8401_s15, 128, %s644_s12, [#allocation7]  }
  0xca   : > { %s5285_s8 = sadd.s32 4294967294, %s6886_s5   ;;  %s59_s0 = sadd.s32 1, %s6878_s4 }
  0xcb   : > { %s62_s29 = sadd.s32 1, %s6882_s30  ;;  %p60_p1 = scmp.ge.s32.totalorder %s59_s0, 2 }
  0xcc   : > { %s69_s21 = sadd.s32 1, %s6866_s28  ;;  %p76_p4 = scmp.ne.s32.totalorder %s6866_s28, %s6862_s3 }
  0xcd   : > { %p82_p10 = scmp.ne.s32.totalorder %s6862_s3, %s6858_s27  ;;  %s8497_s0 = smov (%p60_p1, %s59_s0), 0 }
  0xce   : > { %8405 = sst [smem:[#allocation41_spill]] %s8497_s0  ;;  %s8499_s29 = smov (!%p60_p1, %s62_s29), %s6882_s30 }
  0xcf   : > { %p8406_p12 = scmp.eq.s32.totalorder %s6886_s5, 0  ;;  %p8408_p13 = scmp.eq.s32.totalorder %s7076_s22, 0 }
  0xd0   : > { %p64_p2 = scmp.ge.s32.totalorder %s8499_s29, 2  ;;  %s186_s14 = ssub.s32 %s6878_s4, %s8497_s0 }
  0xd1   : > { %p7292_p7 = por %p8406_p12, %p76_p4  ;;  %p7301_p3 = por %p8408_p13, %p82_p10 }
  0xd2   : > { %p187_p5 = scmp.eq.s32.totalorder %s186_s14, 0  ;;  %p8410_p9 = scmp.eq.s32.totalorder %s7076_s22, 3 }
  0xd3   : > { %s8409_s12 = scalar_select %p7301_p3, 1, 0 }
  0xd4   : > { %p7309_p6 = por %p8410_p9, %p76_p4  ;;  %s8501_s29 = smov (%p64_p2, %s8499_s29), 0 }
  0xd5   : > { %8413 = sst [smem:[#allocation43_spill]] %s8501_s29  ;;  %s8414_s23 = sadd.s32 1, %s6854_s26 }
  0xd6   : > { %s8411_s17 = scalar_select %p7309_p6, 1, 0 }
  0xd7   : > { %s7318_s18 = scalar_select %p187_p5, %s6854_s26, %s8414_s23  }
  0xd8   : > { %8412 = sst [smem:[#allocation42_spill]] %s8411_s17  ;;  %s66_s9 = ssub.s32 %s6882_s30, %s8501_s29 }
  0xd9   : > { %8415 = sst [smem:[#allocation44_spill]] %s7318_s18  ;;  %p612_p11 = scmp.eq.s32.totalorder %s5285_s8, 3 }
  0xda   : > { %p67_p0 = scmp.eq.s32.totalorder %s66_s9, 0  ;;  %s660_s16 = sand.u32 1, %s6866_s28  }
  0xdb   : > { %p7326_p8 = por %p612_p11, %p82_p10  ;;  %s5290_s7 = sshll.u32 %s660_s16, 4 }
  0xdc   : > { %s7331_s14 = scalar_select %p67_p0, %s6866_s28, %s69_s21  }
  0xdd   : > { %s8416_s1 = scalar_select %p7326_p8, 1, 0 }
  0xde   : > { %8418 = sst [smem:[#allocation46_spill]] %s7331_s14  ;;  %s5735_s24 = sshll.u32 %s6882_s30, 8 }
  0xdf   : > { %8417 = sst [smem:[#allocation45_spill]] %s8416_s1  ;;  %s664_s8 = scalar_lea.vmem [#allocation3], %s5290_s7 }
  0xe0   : > { %s8419_s0 = sld [smem:[#allocation52_spill]]  ;;  %s672_s23 = sshll.u32 %s664_s8, 4  ;;  %s7347_s23 = int_to_ptr.vmem [resolvable:$true] %s672_s23 }
  0xe1   : > { %p8421_p1 = scmp.lt.s32.totalorder %s6886_s5, 4 }
  0xe3   : > { %p7343_p4 = pnand %p8421_p1, %p7292_p7 }
  0xe5   : > { %p6596_p12 = pneg %p7343_p4 }
  0xe6   : > { %s8420_s17 = smov %s8419_s0  ;;  %s7337_s22 = scalar_lea.hbm %s8419_s0, %s5735_s24 }
  0xe7   : > { %s8423_s24 = sld [smem:[#allocation59_spill]]  ;;  %s661_s0 = scalar_lea.sflag [#allocation4], %s660_s16 }
  0xe8   : > { %s6594_s29 = scalar_lea.hbm %s7337_s22, 256  ;;  %s6599_s8 = scalar_lea.hbm %s8420_s17, 512 }
  0xe9   : > { %p6595_p10 = scmp.ne.s32.totalorder %s7337_s22, %s6594_s29  ;;  %p6600_p2 = scmp.lt.u32.totalorder %s7337_s22, %s8420_s17 }
  0xea   : > { %p6601_p5 = scmp.lt.u32.totalorder %s6599_s8, %s6594_s29  ;;  %p6603_p11 = scmp.lt.u32.totalorder %s6594_s29, %s7337_s22 }
  0xeb   : > { %p6597_p7 = pnand %p6596_p12, %p6595_p10 }
  0xec   : > { %p6602_p9 = por %p6601_p5, %p6600_p2 }
  0xed   : > { %s7353_s15 = scalar_lea.hbm %s8423_s24, %s7146_s10  ;;  %p6598_p13 = pneg %p6597_p7 }
  0xee   : > { %p6604_p0 = por %p6603_p11, %p6602_p9 }
  0xf0   : > { %p6605_p1 = pnand %p6604_p0, %p6598_p13 }
  0xf2   : > { %6608 = shalt.err (!%p6605_p1)
}
  0xf3   : > { %s6609_s16 = scalar_lea.vmem %s7347_s23, 256  ;;  %s6899_s21 = smov [#allocation3]  }
  0xf4   : > { %p6610_p10 = scmp.ne.s32.totalorder %s7347_s23, %s6609_s16  ;;  %s6614_s11 = sshll.u32 %s6899_s21, 4  ;;  %s6615_s11 = int_to_ptr.vmem [resolvable:$false] %s6614_s11 }
  0xf5   : > { %s6616_s30 = scalar_lea.vmem %s6615_s11, 512  ;;  %p6617_p6 = scmp.lt.s32.totalorder %s7347_s23, %s6615_s11 }
  0xf6   : > { %p6612_p7 = pnand %p6610_p10, %p6596_p12  ;;  %p6618_p2 = scmp.lt.s32.totalorder %s6616_s30, %s6609_s16 }
  0xf8   : > { %p6613_p8 = pneg %p6612_p7  ;;  %p6619_p5 = por %p6618_p2, %p6617_p6 }
  0xfa   : > { %p6620_p9 = pnand %p6619_p5, %p6613_p8 }
  0xfc   : > { %6623 = shalt.err (!%p6620_p9)
}
  0xfd   : > { %5945 = dma.hbm_to_vmem [thread:$0]  (!%p7343_p4), %s7337_s22, 256, %s7347_s23, %s661_s0  }
  0xfe   : > { %s725_s29 = scalar_lea.vmem [#allocation11], %s7143_s6  ;;  %s8424_s8 = sld [smem:[#allocation61_spill]] }
  0xff   : > { %s732_s14 = sshll.u32 %s725_s29, 4  ;;  %s6624_s9 = scalar_lea.hbm %s7353_s15, 4096  ;;  %s7381_s14 = int_to_ptr.vmem [resolvable:$true] %s732_s14 }
 0x100   : > { %p6625_p6 = scmp.ne.s32.totalorder %s7353_s15, %s6624_s9  ;;  %p8425_p8 = scmp.ne.s32.totalorder %s8397_s25, 0 }
 0x101   : > { %s6629_s30 = scalar_lea.hbm %s8423_s24, 8192  ;;  %p6630_p4 = scmp.lt.u32.totalorder %s7353_s15, %s8423_s24 }
 0x102   : > { %p6627_p12 = pnand %p6625_p6, %p8425_p8  ;;  %p6631_p11 = scmp.lt.u32.totalorder %s6629_s30, %s6624_s9 }
 0x103   : > { %p6633_p1 = scmp.lt.u32.totalorder %s6624_s9, %s7353_s15 }
 0x104   : > { %s7387_s16 = scalar_lea.hbm %s8424_s8, %s7146_s10  ;;  %p6628_p13 = pneg %p6627_p12 }
 0x105   : > { %p6632_p0 = por %p6631_p11, %p6630_p4 }
 0x107   : > { %p6634_p10 = por %p6633_p1, %p6632_p0 }
 0x109   : > { %p6635_p7 = pnand %p6634_p10, %p6628_p13 }
 0x10b   : > { %6638 = shalt.err (!%p6635_p7)
}
 0x10c   : > { %s6639_s10 = scalar_lea.vmem %s7381_s14, 4096  ;;  %s6900_s23 = smov [#allocation11]  }
 0x10d   : > { %p6640_p2 = scmp.ne.s32.totalorder %s7381_s14, %s6639_s10  ;;  %s6644_s0 = sshll.u32 %s6900_s23, 4  ;;  %s6645_s0 = int_to_ptr.vmem [resolvable:$false] %s6644_s0 }
 0x10e   : > { %s6646_s17 = scalar_lea.vmem %s6645_s0, 8192  ;;  %p6647_p6 = scmp.lt.s32.totalorder %s7381_s14, %s6645_s0 }
 0x10f   : > { %p6642_p5 = pnand %p6640_p2, %p8425_p8  ;;  %p6648_p12 = scmp.lt.s32.totalorder %s6646_s17, %s6639_s10 }
 0x111   : > { %p6643_p9 = pneg %p6642_p5  ;;  %p6649_p4 = por %p6648_p12, %p6647_p6 }
 0x113   : > { %p6650_p11 = pnand %p6649_p4, %p6643_p9 }
 0x115   : > { %6653 = shalt.err (!%p6650_p11)
}
 0x116   : > { %p8426_p13 = scmp.ne.s32.totalorder %s8391_s2, 0  ;;  %s8427_s29 = smov 4  }
 0x117   : > { %s8428_s7 = smov 64   ;;  %s8429_s13 = scalar_lea.sflag [#allocation10], %s7115_s20 }
 0x118   : > { %5951 = dma.hbm_to_vmem [thread:$0]  (!%p8426_p13), %s7353_s15, 4096, %s7381_s14, %s8429_s13, %s8428_s7, %s8428_s7, %s8427_s29  }
 0x119   : > { %s767_s9 = scalar_lea.vmem [#allocation14], %s7143_s6  ;;  %s5308_s11 = sshll.u32 %s7118_s19, 10 }
 0x11a   : > { %s774_s21 = sshll.u32 %s767_s9, 4  ;;  %s6654_s30 = scalar_lea.hbm %s7387_s16, 4096  ;;  %s7417_s21 = int_to_ptr.vmem [resolvable:$true] %s774_s21 }
 0x11b   : > { %p6655_p0 = scmp.ne.s32.totalorder %s7387_s16, %s6654_s30  ;;  %s6659_s23 = scalar_lea.hbm %s8424_s8, 8192 }
 0x11c   : > { %p6660_p7 = scmp.lt.u32.totalorder %s7387_s16, %s8424_s8  ;;  %p6661_p2 = scmp.lt.u32.totalorder %s6659_s23, %s6654_s30 }
 0x11d   : > { %p6657_p1 = pnand %p6655_p0, %p8425_p8  ;;  %p6663_p9 = scmp.lt.u32.totalorder %s6654_s30, %s7387_s16 }
 0x11e   : > { %p6662_p5 = por %p6661_p2, %p6660_p7 }
 0x11f   : > { %p6658_p10 = pneg %p6657_p1 }
 0x120   : > { %p6664_p6 = por %p6663_p9, %p6662_p5 }
 0x122   : > { %p6665_p12 = pnand %p6664_p6, %p6658_p10 }
 0x124   : > { %6668 = shalt.err (!%p6665_p12)
}
 0x125   : > { %s6669_s6 = scalar_lea.vmem %s7417_s21, 4096  ;;  %s6901_s15 = smov [#allocation14]  }
 0x126   : > { %p6670_p4 = scmp.ne.s32.totalorder %s7417_s21, %s6669_s6  ;;  %s6674_s14 = sshll.u32 %s6901_s15, 4  ;;  %s6675_s14 = int_to_ptr.vmem [resolvable:$false] %s6674_s14 }
 0x127   : > { %s6676_s13 = scalar_lea.vmem %s6675_s14, 8192  ;;  %p6677_p1 = scmp.lt.s32.totalorder %s7417_s21, %s6675_s14 }
 0x128   : > { %p6672_p11 = pnand %p6670_p4, %p8425_p8  ;;  %p6678_p3 = scmp.lt.s32.totalorder %s6676_s13, %s6669_s6 }
 0x12a   : > { %p6673_p0 = pneg %p6672_p11  ;;  %p6679_p7 = por %p6678_p3, %p6677_p1 }
 0x12c   : > { %p6680_p2 = pnand %p6679_p7, %p6673_p0 }
 0x12e   : > { %6683 = shalt.err (!%p6680_p2)
}
 0x12f   : > { %s8430_s9 = scalar_lea.sflag [#allocation13], %s7115_s20  ;;  %s5741_s30 = sshll.u32 %s6878_s4, 14 }
 0x130   : > { %5957 = dma.hbm_to_vmem [thread:$0]  (!%p8426_p13), %s7387_s16, 4096, %s7417_s21, %s8430_s9, %s8428_s7, %s8428_s7, %s8427_s29  }
 0x131   : > { %s837_s22 = scalar_lea.vmem [#allocation17], %s5308_s11  ;;  %s8431_s17 = sld [smem:[#allocation67_spill]] }
 0x132   : > { %s844_s10 = sshll.u32 %s837_s22, 4  ;;  %s7455_s10 = int_to_ptr.vmem [resolvable:$true] %s844_s10 }
 0x137   : > { %s7453_s6 = scalar_lea.hbm %s8431_s17, %s5741_s30  ;;  %s6689_s7 = scalar_lea.hbm %s8431_s17, 32768 }
 0x138   : > { %s6684_s15 = scalar_lea.hbm %s7453_s6, 16384  ;;  %p6690_p9 = scmp.lt.u32.totalorder %s7453_s6, %s8431_s17 }
 0x139   : > { %p6685_p3 = scmp.ne.s32.totalorder %s7453_s6, %s6684_s15  ;;  %p6691_p6 = scmp.lt.u32.totalorder %s6689_s7, %s6684_s15 }
 0x13a   : > { %p6693_p4 = scmp.lt.u32.totalorder %s6684_s15, %s7453_s6 }
 0x13b   : > { %p6687_p10 = pnand %p6685_p3, %p8425_p8  ;;  %p6692_p12 = por %p6691_p6, %p6690_p9 }
 0x13d   : > { %p6688_p5 = pneg %p6687_p10  ;;  %p6694_p11 = por %p6693_p4, %p6692_p12 }
 0x13f   : > { %p6695_p0 = pnand %p6694_p11, %p6688_p5 }
 0x141   : > { %6698 = shalt.err (!%p6695_p0)
}
 0x142   : > { %s6699_s13 = scalar_lea.vmem %s7455_s10, 16384  ;;  %s6902_s9 = smov [#allocation17]  }
 0x143   : > { %p6700_p1 = scmp.ne.s32.totalorder %s7455_s10, %s6699_s13  ;;  %s6704_s22 = sshll.u32 %s6902_s9, 4  ;;  %s6705_s22 = int_to_ptr.vmem [resolvable:$false] %s6704_s22 }
 0x144   : > { %s6706_s23 = scalar_lea.vmem %s6705_s22, 32768  ;;  %p6707_p3 = scmp.lt.s32.totalorder %s7455_s10, %s6705_s22 }
 0x145   : > { %p6702_p7 = pnand %p6700_p1, %p8425_p8  ;;  %p6708_p10 = scmp.lt.s32.totalorder %s6706_s23, %s6699_s13 }
 0x147   : > { %p6703_p2 = pneg %p6702_p7  ;;  %p6709_p9 = por %p6708_p10, %p6707_p3 }
 0x149   : > { %p6710_p6 = pnand %p6709_p9, %p6703_p2 }
 0x14b   : > { %6713 = shalt.err (!%p6710_p6)
}
 0x14c   : > { %s6903_s0 = smov 512   ;;  %s6904_s15 = smov 32  }
 0x14d   : > { %s8432_s16 = scalar_lea.sflag [#allocation16], %s7115_s20  ;;  %s8433_s21 = sld [smem:[#allocation69_spill]] }
 0x14e   : > { %5963 = dma.hbm_to_vmem [thread:$0]  (!%p8426_p13), %s7453_s6, 16384, %s7455_s10, %s8432_s16, %s6903_s0, %s6903_s0, %s6904_s15  }
 0x14f   : > { %s865_s13 = scalar_lea.vmem [#allocation18], %s5308_s11  ;;  %s862_s22 = scalar_lea.sflag [#allocation19], %s7118_s19 }
 0x150   : > { %s872_s9 = sshll.u32 %s865_s13, 4  ;;  %s7489_s9 = int_to_ptr.vmem [resolvable:$true] %s872_s9 }
 0x153   : > { %s7485_s14 = scalar_lea.hbm %s8433_s21, %s5741_s30  ;;  %s6719_s30 = scalar_lea.hbm %s8433_s21, 32768 }
 0x154   : > { %s6714_s23 = scalar_lea.hbm %s7485_s14, 16384  ;;  %p6720_p11 = scmp.lt.u32.totalorder %s7485_s14, %s8433_s21 }
 0x155   : > { %p6715_p5 = scmp.ne.s32.totalorder %s7485_s14, %s6714_s23  ;;  %p6721_p0 = scmp.lt.u32.totalorder %s6719_s30, %s6714_s23 }
 0x156   : > { %p6723_p7 = scmp.lt.u32.totalorder %s6714_s23, %s7485_s14 }
 0x157   : > { %p6717_p12 = pnand %p6715_p5, %p8425_p8  ;;  %p6722_p1 = por %p6721_p0, %p6720_p11 }
 0x159   : > { %p6718_p4 = pneg %p6717_p12  ;;  %p6724_p2 = por %p6723_p7, %p6722_p1 }
 0x15b   : > { %p6725_p3 = pnand %p6724_p2, %p6718_p4 }
 0x15d   : > { %6728 = shalt.err (!%p6725_p3)
}
 0x15e   : > { %s6729_s11 = scalar_lea.vmem %s7489_s9, 16384  ;;  %s6905_s15 = smov [#allocation18]  }
 0x15f   : > { %p6730_p10 = scmp.ne.s32.totalorder %s7489_s9, %s6729_s11  ;;  %s6734_s16 = sshll.u32 %s6905_s15, 4  ;;  %s6735_s16 = int_to_ptr.vmem [resolvable:$false] %s6734_s16 }
 0x160   : > { %s6736_s29 = scalar_lea.vmem %s6735_s16, 32768  ;;  %p6737_p5 = scmp.lt.s32.totalorder %s7489_s9, %s6735_s16 }
 0x161   : > { %p6732_p9 = pnand %p6730_p10, %p8425_p8  ;;  %p6738_p12 = scmp.lt.s32.totalorder %s6736_s29, %s6729_s11 }
 0x163   : > { %p6733_p6 = pneg %p6732_p9  ;;  %p6739_p11 = por %p6738_p12, %p6737_p5 }
 0x165   : > { %p6740_p0 = pnand %p6739_p11, %p6733_p6 }
 0x167   : > { %6743 = shalt.err (!%p6740_p0)
}
 0x168   : > { %s8434_s7 = smov 8   ;;  %s8435_s13 = smov 128  }
 0x169   : > { %5966 = dma.hbm_to_vmem [thread:$0]  (!%p8426_p13), %s7485_s14, 16384, %s7489_s9, %s862_s22, %s8435_s13, %s8435_s13, %s8434_s7  }
 0x16a   : > { %s8436_s25 = sld [smem:[#allocation40_spill]] }
 0x170   : > { %p8437_p8 = scmp.ne.s32.totalorder %s8436_s25, 0 }
 0x172   : > { %891 = sbr.rel (%p8437_p8) target bundleno = 3145 (0xc49), region = 104 }
 0x179   : > { %s7521_s23 = sand.u32 1, %s6862_s3   ;;  %p8439_p4 = scmp.ne.s32.totalorder %s8409_s12, 0 }
 0x17a   : > { %8438 = sst [smem:[#allocation47_spill]] %s7521_s23  ;;  %s5315_s20 = sshll.u32 %s7521_s23, 4 }
 0x17b   : > { %s894_s10 = scalar_lea.sflag [#allocation4], %s7521_s23  ;;  %s7525_s2 = scalar_lea.vmem [#allocation3], %s5315_s20 }
 0x17c   : > { %6817 = dma.done.wait (%p8439_p4), %s894_s10, 256  }
 0x17d   : > { %6819 = vsyncadd (%p8439_p4), %s894_s10, 4294967040  ;;  %s8440_s19 = sld [smem:[#allocation38_spill]] }
 0x183   : > { %p8441_p13 = scmp.eq.s32.totalorder %s8440_s19, 0 }
 0x185   : > { %6821 = dma.done.wait (%p8441_p13), [#allocation7], 256   ;;  %p8442_p1 = pmov %p8441_p13 }
 0x186   : > { %s8443_s14 = sld [smem:[#allocation28_spill]]  ;;  %s8444_s9 = sld [smem:[#allocation39_spill]] }
 0x187   : > { %6823 = vsyncadd (%p8442_p1), [#allocation7], 4294967040  ;;  %s910_s22 = sand.u32 1, %s8440_s19  }
 0x188   : > { %s911_s0 = scalar_lea.sflag [#allocation10], %s910_s22 }
 0x18c   : > { %s912_s30 = sand.u32 1, %s8443_s14   ;;  %p8445_p7 = scmp.ne.s32.totalorder %s8444_s9, 0 }
 0x18d   : > { %s5318_s6 = sshll.u32 %s912_s30, 8 }
 0x18e   : > { %s7537_s11 = scalar_lea.vmem [#allocation9], %s5318_s6 }
 0x18f   : > { %6825 = dma.done.wait (%p8445_p7), %s911_s0, 8192  }
 0x190   : > { %6827 = vsyncadd (%p8445_p7), %s911_s0, 4294959104  ;;  %s5320_s12 = sshll.u32 %s912_s30, 1  ;;  %s7543_s15 = scalar_lea.vmem [#allocation11], %s5318_s6 }
 0x191   : > { %s929_s16 = scalar_lea.sflag [#allocation13], %s910_s22  ;;  %s7545_s29 = scalar_lea.vmem [#allocation12], %s5320_s12 }
 0x192   : > { %6829 = dma.done.wait (%p8445_p7), %s929_s16, 4128  }
 0x193   : > { %6831 = vsyncadd (%p8445_p7), %s929_s16, 4294963168  ;;  %s7551_s7 = scalar_lea.vmem [#allocation14], %s5318_s6  ;;  %s947_s13 = scalar_lea.sflag [#allocation16], %s910_s22 }
 0x194   : > { %s7553_s25 = scalar_lea.vmem [#allocation15], %s5318_s6 }
 0x195   : > { %8446 = sst [smem:[#allocation48_spill]] %s7553_s25 }
 0x196   : > { %6833 = dma.done.wait (%p8445_p7), %s947_s13, 20480  }
 0x197   : > { %6835 = vsyncadd (%p8445_p7), %s947_s13, 4294946816  ;;  %s5323_s20 = sshll.u32 %s912_s30, 10  ;;  %s965_s19 = scalar_lea.sflag [#allocation19], %s912_s30 }
 0x198   : > { %s7559_s10 = scalar_lea.vmem [#allocation17], %s5323_s20  ;;  %s7561_s14 = scalar_lea.vmem [#allocation18], %s5323_s20 }
 0x199   : > { %8447 = sst [smem:[#allocation49_spill]] %s7559_s10 }
 0x19a   : > { %8448 = sst [smem:[#allocation50_spill]] %s7561_s14 }
 0x19b   : > { %6837 = dma.done.wait (%p8445_p7), %s965_s19, 16384  }
 0x19c   : > { %6839 = vsyncadd (%p8445_p7), %s965_s19, 4294950912  ;;  %s8449_s22 = sld [smem:[#allocation33_spill]]  ;;  %s5325_s6 = sshll.u32 %s7521_s23, 3 }
 0x19d   : > { %s8452_s28 = sld [smem:[#allocation58_spill]]  ;;  %s8453_s1 = sld [smem:[#allocation62_spill]] }
 0x19e   : > { %s8455_s23 = sld [smem:[#allocation64_spill]]  ;;  %s8456_s13 = sld [smem:[#allocation65_spill]] }
 0x19f   : > { %s8457_s19 = sld [smem:[#allocation66_spill]]  ;;  %s8458_s24 = sld [smem:[#allocation68_spill]] }
 0x1a0   : > { %s8459_s18 = sld [smem:[#allocation70_spill]] }
 0x1a2   : > { %p1098_p2 = scmp.lt.s32.totalorder %s8449_s22, 1  ;;  %p5335_p3 = scmp.ne.s32.totalorder %s8449_s22, 0 }
 0x1a3   : > { %v1139_v0 = vld [vmem:[%s7525_s2] sm:$0xff] (!%p5335_p3)  ;;  %v1140_v1 = vld [vmem:[%s7525_s2 + $0x8] sm:$0xff] (!%p5335_p3) }
 0x1a4   : > { %s1099_s0 = scalar_select %p1098_p2, %s8449_s22, 1 }
 0x1a5   : > { %1138 = sbr.rel (%p5335_p3) target bundleno = 428 (0x1ac), region = 148  ;;  %1141 = vst [vmem:[#allocation2] sm:$0xff] (!%p5335_p3), %v1139_v0  ;;  %1142 = vst [vmem:[#allocation2 + $0x8] sm:$0xff] (!%p5335_p3), %v1140_v1 }
 0x1a6   : > { %s7570_s12 = sshll.u32 %s1099_s0, 1  ;;  %s5333_s30 = sshll.u32 %s1099_s0, 3 }
 0x1a7   : > { %s7584_s3 = scalar_lea.vmem %s8452_s28, %s7570_s12  ;;  %s7590_s27 = scalar_lea.vmem %s8453_s1, %s7570_s12 }
 0x1a8   : > { %8454 = sst [smem:[#allocation51_spill]] %s7590_s27  ;;  %s1117_s14 = scalar_lea.vmem %s8455_s23, %s7570_s12 }
 0x1a9   : > { %s1121_s20 = scalar_lea.vmem %s8456_s13, %s7570_s12  ;;  %s1125_s21 = scalar_lea.vmem %s8457_s19, %s7570_s12 }
 0x1aa   : > { %s7607_s10 = scalar_lea.vmem %s8458_s24, %s5333_s30  ;;  %s1133_s25 = scalar_lea.vmem %s8459_s18, %s7570_s12 }
 0x1ab   : > { %s7613_s27 = scalar_lea.vmem [#allocation20], %s5325_s6 }
 0x1ac PF: > { %v1143_v2 = vld [vmem:[#allocation2] sm:$0xff]  ;;  %v1144_v3 = vld [vmem:[#allocation2 + $0x8] sm:$0xff]  ;;  %v6088_v13 = vld [vmem:[%s7537_s11 + $0x50] sm:$0xff]   ;;  %v1165_v48 = vlaneseq  ;;  %s8460_s2 = sld [smem:[#allocation55_spill]]  ;;  %s8462_s30 = sld [smem:[#allocation56_spill]]  ;;  %vm6909_vm0 = vmmov 0  }
 0x1ad   : > { %v1147_v4 = vadd.f32 %v1144_v3, %v1143_v2  ;;  %v6080_v5 = vld [vmem:[%s7537_s11 + $0x40] sm:$0xff]   ;;  %v6084_v9 = vld [vmem:[%s7537_s11 + $0x48] sm:$0xff]   ;;  %v6089_v14 = vld [vmem:[%s7537_s11 + $0xd0] sm:$0xff]   ;;  %vm2416_vm2 = vcmask 1043456   ;;  %vm2392_vm4 = vcmask 64512   ;;  %s8469_s8 = sld [smem:[#allocation49_spill]] }
 0x1ae   : > { %v6081_v6 = vld [vmem:[%s7537_s11 + $0xc0] sm:$0xff]   ;;  %v6085_v10 = vld [vmem:[%s7537_s11 + $0xc8] sm:$0xff]   ;;  %5745 = vmatprep.subr.bf16.mxu0 %v6080_v5  ;;  %v6090_v22 = vld [vmem:[%s7537_s11 + $0x10] sm:$0xff]   ;;  %v7661_v50 = vshrl.u32 %v1165_v48, 7 }
 0x1af   : > { %1148 = vadd.xlane.f32.xlu0 %v1147_v4  ;;  %v6082_v7 = vld [vmem:[%s7537_s11] sm:$0xff]   ;;  %5767 = vmatprep.subr.bf16.mxu1 %v6081_v6  ;;  %v6086_v11 = vld [vmem:[%s7537_s11 + $0x8] sm:$0xff]   ;;  %v6091_v23 = vld [vmem:[%s7537_s11 + $0x90] sm:$0xff]  }
 0x1b0   : > { %v6083_v8 = vld [vmem:[%s7537_s11 + $0x80] sm:$0xff]   ;;  %5746 = vmatpush3.bf16.msra.mxu0 %v6082_v7  ;;  %v6087_v12 = vld [vmem:[%s7537_s11 + $0x88] sm:$0xff]   ;;  %v6092_v24 = vld [vmem:[%s7537_s11 + $0x58] sm:$0xff]   ;;  %v7664_v51 = vsub.s32 0, %v7661_v50  ;;  %v7667_v52 = vsub.s32 1, %v7661_v50 }
 0x1b1   : > { %5768 = vmatpush3.bf16.msra.mxu1 %v6083_v8  ;;  %5747 = vmatprep.subr.bf16.mxu0 %v6084_v9  ;;  %v6093_v25 = vld [vmem:[%s7537_s11 + $0xd8] sm:$0xff]   ;;  %v6096_v28 = vld [vmem:[%s7537_s11 + $0x60] sm:$0xff]   ;;  %v6100_v32 = vld [vmem:[%s7537_s11 + $0x68] sm:$0xff]  }
 0x1b2   : > { %5769 = vmatprep.subr.bf16.mxu1 %v6085_v10  ;;  %v6094_v26 = vld [vmem:[%s7537_s11 + $0x18] sm:$0xff]   ;;  %v6097_v29 = vld [vmem:[%s7537_s11 + $0xe0] sm:$0xff]   ;;  %v6101_v33 = vld [vmem:[%s7537_s11 + $0xe8] sm:$0xff]   ;;  %s8463_s0 = scalar_lea.vmem %s8462_s30, %s7570_s12 }
 0x1b3   : > { %v6095_v27 = vld [vmem:[%s7537_s11 + $0x98] sm:$0xff]   ;;  %v6098_v30 = vld [vmem:[%s7537_s11 + $0x20] sm:$0xff]   ;;  %v6102_v34 = vld [vmem:[%s7537_s11 + $0x28] sm:$0xff]  }
 0x1b4   : > { %5748 = vmatpush3.bf16.msra.mxu0 %v6086_v11  ;;  %v6099_v31 = vld [vmem:[%s7537_s11 + $0xa0] sm:$0xff]   ;;  %v6103_v35 = vld [vmem:[%s7537_s11 + $0xa8] sm:$0xff]   ;;  %v6104_v36 = vld [vmem:[%s7537_s11 + $0x70] sm:$0xff]  }
 0x1b5   : > { %5770 = vmatpush3.bf16.msra.mxu1 %v6087_v12  ;;  %5749 = vmatprep.subr.bf16.mxu0 %v6088_v13  ;;  %v6105_v37 = vld [vmem:[%s7537_s11 + $0xf0] sm:$0xff]   ;;  %v6108_v40 = vld [vmem:[%s7537_s11 + $0x78] sm:$0xff]   ;;  %v6112_v44 = vld [vmem:[%s7543_s15 + $0x40] sm:$0xff]  }
 0x1b6   : > { %5771 = vmatprep.subr.bf16.mxu1 %v6089_v14  ;;  %v6106_v38 = vld [vmem:[%s7537_s11 + $0x30] sm:$0xff]   ;;  %v6109_v41 = vld [vmem:[%s7537_s11 + $0xf8] sm:$0xff]   ;;  %v6113_v45 = vld [vmem:[%s7543_s15 + $0xc0] sm:$0xff]  }
 0x1b7   : > { %v6107_v39 = vld [vmem:[%s7537_s11 + $0xb0] sm:$0xff]   ;;  %v6110_v42 = vld [vmem:[%s7537_s11 + $0x38] sm:$0xff]   ;;  %v1146_v54 = vld [vmem:[%s8463_s0] sm:$0x3] }
 0x1b8   : > { %5750 = vmatpush3.bf16.msra.mxu0 %v6090_v22  ;;  %v6111_v43 = vld [vmem:[%s7537_s11 + $0xb8] sm:$0xff]   ;;  %s8461_s11 = scalar_lea.vmem %s8460_s2, %s7570_s12  ;;  %v1181_v58 = vrot.slane %v1146_v54, %v7664_v51  ;;  %v1185_v59 = vrot.slane %v1146_v54, %v7667_v52  ;;  %v6114_v4 = vld [vmem:[%s7543_s15] sm:$0xff]   ;;  %v6116_v6 = vld [vmem:[%s7543_s15 + $0x48] sm:$0xff]  }
 0x1b9   : > { %5772 = vmatpush3.bf16.msra.mxu1 %v6091_v23  ;;  %5751 = vmatprep.subr.bf16.mxu0 %v6092_v24  ;;  %v1145_v53 = vld [vmem:[%s8461_s11] sm:$0x3]  ;;  %v6117_v7 = vld [vmem:[%s7543_s15 + $0xc8] sm:$0xff]   ;;  %v6120_v10 = vld [vmem:[%s7543_s15 + $0x50] sm:$0xff]  }
 0x1ba   : > { %5773 = vmatprep.subr.bf16.mxu1 %v6093_v25  ;;  %v1168_v55 = vrot.slane %v1145_v53, %v7664_v51  ;;  %v1172_v56 = vrot.slane %v1145_v53, %v7667_v52  ;;  %v6115_v5 = vld [vmem:[%s7543_s15 + $0x80] sm:$0xff]   ;;  %v6118_v8 = vld [vmem:[%s7543_s15 + $0x8] sm:$0xff]   ;;  %v6121_v11 = vld [vmem:[%s7543_s15 + $0xd0] sm:$0xff]  }
 0x1bb   : > { %v6119_v9 = vld [vmem:[%s7543_s15 + $0x88] sm:$0xff]   ;;  %v6122_v12 = vld [vmem:[%s7543_s15 + $0x10] sm:$0xff]   ;;  %v6124_v14 = vld [vmem:[%s7543_s15 + $0x58] sm:$0xff]  }
 0x1bc   : > { %5752 = vmatpush3.bf16.msra.mxu0 %v6094_v26  ;;  %v6123_v13 = vld [vmem:[%s7543_s15 + $0x90] sm:$0xff]   ;;  %v6132_v22 = vld [vmem:[%s7543_s15 + $0x68] sm:$0xff]   ;;  %v6159_v53 = vld [vmem:[%s7551_s7 + $0x98] sm:$0xff]  }
 0x1bd   : > { %5774 = vmatpush3.bf16.msra.mxu1 %v6095_v27  ;;  %5753 = vmatprep.subr.bf16.mxu0 %v6096_v28  ;;  %v6133_v23 = vld [vmem:[%s7543_s15 + $0xe8] sm:$0xff]   ;;  %v6136_v26 = vld [vmem:[%s7543_s15 + $0x70] sm:$0xff]  }
 0x1be   : > { %5775 = vmatprep.subr.bf16.mxu1 %v6097_v29  ;;  %v6134_v24 = vld [vmem:[%s7543_s15 + $0x28] sm:$0xff]   ;;  %v6137_v27 = vld [vmem:[%s7543_s15 + $0xf0] sm:$0xff]  }
 0x1bf   : > { %v6135_v25 = vld [vmem:[%s7543_s15 + $0xa8] sm:$0xff]   ;;  %v6138_v28 = vld [vmem:[%s7543_s15 + $0x30] sm:$0xff]  }
 0x1c0   : > { %5754 = vmatpush3.bf16.msra.mxu0 %v6098_v30  ;;  %v6139_v29 = vld [vmem:[%s7543_s15 + $0xb0] sm:$0xff]   ;;  %v6140_v30 = vld [vmem:[%s7543_s15 + $0x78] sm:$0xff]   ;;  %v6160_v54 = vld [vmem:[%s7551_s7 + $0x60] sm:$0xff]  }
 0x1c1   : > { %5776 = vmatpush3.bf16.msra.mxu1 %v6099_v31  ;;  %5755 = vmatprep.subr.bf16.mxu0 %v6100_v32  ;;  %v6141_v31 = vld [vmem:[%s7543_s15 + $0xf8] sm:$0xff]  }
 0x1c2   : > { %5777 = vmatprep.subr.bf16.mxu1 %v6101_v33  ;;  %v6142_v32 = vld [vmem:[%s7543_s15 + $0x38] sm:$0xff]  }
 0x1c3   : > { %v6143_v33 = vld [vmem:[%s7543_s15 + $0xb8] sm:$0xff]  }
 0x1c4   : > { %5756 = vmatpush3.bf16.msra.mxu0 %v6102_v34  ;;  %v6144_v34 = vld [vmem:[%s7551_s7 + $0x40] sm:$0xff]  }
 0x1c5   : > { %5778 = vmatpush3.bf16.msra.mxu1 %v6103_v35  ;;  %5757 = vmatprep.subr.bf16.mxu0 %v6104_v36  ;;  %v6145_v35 = vld [vmem:[%s7551_s7 + $0xc0] sm:$0xff]  }
 0x1c6   : > { %5779 = vmatprep.subr.bf16.mxu1 %v6105_v37  ;;  %v6146_v36 = vld [vmem:[%s7551_s7] sm:$0xff]  }
 0x1c7   : > { %v6147_v37 = vld [vmem:[%s7551_s7 + $0x80] sm:$0xff]  }
 0x1c8   : > { %5758 = vmatpush3.bf16.msra.mxu0 %v6106_v38  ;;  %v6148_v38 = vld [vmem:[%s7551_s7 + $0x48] sm:$0xff]  }
 0x1c9   : > { %5780 = vmatpush3.bf16.msra.mxu1 %v6107_v39  ;;  %5759 = vmatprep.subr.bf16.mxu0 %v6108_v40  ;;  %v6149_v39 = vld [vmem:[%s7551_s7 + $0xc8] sm:$0xff]  }
 0x1ca   : > { %5781 = vmatprep.subr.bf16.mxu1 %v6109_v41  ;;  %v6150_v40 = vld [vmem:[%s7551_s7 + $0x8] sm:$0xff]  }
 0x1cb   : > { %v6151_v41 = vld [vmem:[%s7551_s7 + $0x88] sm:$0xff]  }
 0x1cc   : > { %5760 = vmatpush3.bf16.msra.mxu0 %v6110_v42  ;;  %v6152_v42 = vld [vmem:[%s7551_s7 + $0x50] sm:$0xff]  }
 0x1cd   : > { %5782 = vmatpush3.bf16.msra.mxu1 %v6111_v43  ;;  %5789 = vmatprep.subr.bf16.mxu0 %v6112_v44  ;;  %v6153_v43 = vld [vmem:[%s7551_s7 + $0xd0] sm:$0xff]  }
 0x1ce   : > { %5811 = vmatprep.subr.bf16.mxu1 %v6113_v45  ;;  %v6154_v44 = vld [vmem:[%s7551_s7 + $0x10] sm:$0xff]  }
 0x1cf   : > { %v6155_v45 = vld [vmem:[%s7551_s7 + $0x90] sm:$0xff]  }
 0x23c   : > { %v1149_v15 = vpop.xlane.xlu0 %1148 }
 0x23d   : > { %v1151_v16 = vmul.f32 0.00390625, %v1149_v15  ;;  %v6125_v15 = vld [vmem:[%s7543_s15 + $0xd8] sm:$0xff]  }
 0x23f   : > { %v7628_v17 = vsub.f32 %v1143_v2, %v1151_v16  ;;  %v7630_v18 = vsub.f32 %v1144_v3, %v1151_v16  ;;  %v6126_v16 = vld [vmem:[%s7543_s15 + $0x18] sm:$0xff]  }
 0x241   : > { %v1154_v19 = vmul.f32 %v7628_v17, %v7628_v17  ;;  %v1155_v20 = vmul.f32 %v7630_v18, %v7630_v18 }
 0x243   : > { %v1156_v21 = vadd.f32 %v1155_v20, %v1154_v19  ;;  %v6129_v19 = vld [vmem:[%s7543_s15 + $0xe0] sm:$0xff]  }
 0x244   : > { %v6130_v20 = vld [vmem:[%s7543_s15 + $0x20] sm:$0xff]  }
 0x245   : > { %1157 = vadd.xlane.f32.xlu0 %v1156_v21  ;;  %v6131_v21 = vld [vmem:[%s7543_s15 + $0xa0] sm:$0xff]  }
 0x2d2   : > { %v1158_v46 = vpop.xlane.xlu0 %1157 }
 0x2d3   : > { %v1159_v47 = vmul.f32 0.00390625, %v1158_v46  ;;  %v6156_v46 = vld [vmem:[%s7551_s7 + $0x58] sm:$0xff]  }
 0x2d5   : > { %v1160_v49 = vadd.f32 1e-05, %v1159_v47  ;;  %v6157_v47 = vld [vmem:[%s7551_s7 + $0xd8] sm:$0xff]  }
 0x2d7   : > { %6416 = vrsqrt.f32 %v1160_v49  ;;  %v6158_v49 = vld [vmem:[%s7551_s7 + $0x18] sm:$0xff]  }
 0x2e1   : > { %v6417_v57 = vpop.eup %6416 }
 0x2e2   : > { %v1162_v60 = vmul.f32 %v6417_v57, %v7628_v17  ;;  %v1163_v61 = vmul.f32 %v6417_v57, %v7630_v18  ;;  %v6127_v17 = vld [vmem:[%s7543_s15 + $0x98] sm:$0xff]   ;;  %v6128_v18 = vld [vmem:[%s7543_s15 + $0x60] sm:$0xff]   ;;  %s6907_s15 = smov 1  }
 0x2e3   : > { %v6163_v57 = vld [vmem:[%s7551_s7 + $0xa0] sm:$0xff]  }
 0x2e4   : > { %v1175_v62 = vmul.f32 %v1168_v55, %v1162_v60  ;;  %v1176_v63 = vmul.f32 %v1172_v56, %v1163_v61  ;;  %v6161_v55 = vld [vmem:[%s7551_s7 + $0xe0] sm:$0xff]   ;;  %v6166_v60 = vld [vmem:[%s7551_s7 + $0x28] sm:$0xff]  }
 0x2e5   : > { %v6162_v56 = vld [vmem:[%s7551_s7 + $0x20] sm:$0xff]   ;;  %v6167_v61 = vld [vmem:[%s7551_s7 + $0xa8] sm:$0xff]  }
 0x2e6   : > { %v1188_v0 = vadd.f32 %v1181_v58, %v1175_v62  ;;  %v1189_v1 = vadd.f32 %v1185_v59, %v1176_v63  ;;  %v6164_v58 = vld [vmem:[%s7551_s7 + $0x68] sm:$0xff]   ;;  %v6168_v62 = vld [vmem:[%s7551_s7 + $0x70] sm:$0xff]  }
 0x2e7   : > { %v6165_v59 = vld [vmem:[%s7551_s7 + $0xe8] sm:$0xff]   ;;  %v6169_v63 = vld [vmem:[%s7551_s7 + $0xf0] sm:$0xff]  }
 0x2e8   : > { %v7685_v2 = vpack.c.bf16 %v1188_v0, %v1188_v0  ;;  %v7687_v3 = vpack.c.bf16 %v1189_v1, %v1189_v1  ;;  %v6170_v0 = vld [vmem:[%s7551_s7 + $0x30] sm:$0xff]  }
 0x2e9   : > { %v6171_v1 = vld [vmem:[%s7551_s7 + $0xb0] sm:$0xff]  }
 0x2ea   : > { %1398 = vmatprep.mubr.bf16.mxu0 %v7687_v3  ;;  %1534 = vmatprep.mubr.bf16.mxu1 %v7687_v3 }
 0x2eb   : > { %1399 = vmatmul.mubr.bf16.vlgmr.msra.gmra.mrb[0].mxu0 %v7685_v2  ;;  %1535 = vmatmul.mubr.bf16.vlgmr.msra.gmra.mrb[0].mxu1 %v7685_v2 }
 0x2ec   : > { %5790 = vmatpush3.bf16.msra.mxu0 %v6114_v4  ;;  %5812 = vmatpush3.bf16.msra.mxu1 %v6115_v5  ;;  %v6173_v4 = vld [vmem:[%s7551_s7 + $0xf8] sm:$0xff]  }
 0x2ed   : > { %1748 = vmatprep.mubr.bf16.mxu0 %v7687_v3  ;;  %1884 = vmatprep.mubr.bf16.mxu1 %v7687_v3  ;;  %v6174_v5 = vld [vmem:[%s7551_s7 + $0x38] sm:$0xff]  }
 0x2ee   : > { %5791 = vmatprep.subr.bf16.mxu0 %v6116_v6  ;;  %5813 = vmatprep.subr.bf16.mxu1 %v6117_v7  ;;  %v6175_v6 = vld [vmem:[%s7551_s7 + $0xb8] sm:$0xff]  }
 0x2f0   : > { %5792 = vmatpush3.bf16.msra.mxu0 %v6118_v8  ;;  %5814 = vmatpush3.bf16.msra.mxu1 %v6119_v9 }
 0x2f1   : > { %5793 = vmatprep.subr.bf16.mxu0 %v6120_v10  ;;  %5815 = vmatprep.subr.bf16.mxu1 %v6121_v11 }
 0x2f4   : > { %5794 = vmatpush3.bf16.msra.mxu0 %v6122_v12  ;;  %5816 = vmatpush3.bf16.msra.mxu1 %v6123_v13 }
 0x2f5   : > { %5795 = vmatprep.subr.bf16.mxu0 %v6124_v14  ;;  %5817 = vmatprep.subr.bf16.mxu1 %v6125_v15 }
 0x2f8   : > { %5796 = vmatpush3.bf16.msra.mxu0 %v6126_v16  ;;  %5818 = vmatpush3.bf16.msra.mxu1 %v6127_v17 }
 0x2f9   : > { %5797 = vmatprep.subr.bf16.mxu0 %v6128_v18  ;;  %5819 = vmatprep.subr.bf16.mxu1 %v6129_v19  ;;  %v5370_v19 = vld [vmem:[%s7545_s29] ss:$0 sm:$0xff] }
 0x2fc   : > { %5798 = vmatpush3.bf16.msra.mxu0 %v6130_v20  ;;  %5820 = vmatpush3.bf16.msra.mxu1 %v6131_v21 }
 0x2fd   : > { %5799 = vmatprep.subr.bf16.mxu0 %v6132_v22  ;;  %5821 = vmatprep.subr.bf16.mxu1 %v6133_v23 }
 0x300   : > { %5800 = vmatpush3.bf16.msra.mxu0 %v6134_v24  ;;  %5822 = vmatpush3.bf16.msra.mxu1 %v6135_v25  ;;  %v6906_v25 = vmov 0.0  }
 0x301   : > { %5801 = vmatprep.subr.bf16.mxu0 %v6136_v26  ;;  %5823 = vmatprep.subr.bf16.mxu1 %v6137_v27 }
 0x304   : > { %5802 = vmatpush3.bf16.msra.mxu0 %v6138_v28  ;;  %5824 = vmatpush3.bf16.msra.mxu1 %v6139_v29  ;;  %v5371_v29 = vld [vmem:[%s7545_s29 + $0x1] ss:$0 sm:$0xff]  ;;  %s8467_s29 = sld [smem:[#allocation48_spill]] }
 0x305   : > { %5803 = vmatprep.subr.bf16.mxu0 %v6140_v30  ;;  %5825 = vmatprep.subr.bf16.mxu1 %v6141_v31  ;;  %v5336_v31 = vld [vmem:[%s7584_s3] ss:$0 sm:$0xff] }
 0x308   : > { %5804 = vmatpush3.bf16.msra.mxu0 %v6142_v32  ;;  %5826 = vmatpush3.bf16.msra.mxu1 %v6143_v33  ;;  %v5337_v33 = vld [vmem:[%s7584_s3 + $0x1] ss:$0 sm:$0xff]  ;;  %s8466_s3 = sld [smem:[#allocation51_spill]] }
 0x309   : > { %5833 = vmatprep.subr.bf16.mxu0 %v6144_v34  ;;  %5855 = vmatprep.subr.bf16.mxu1 %v6145_v35 }
 0x30b   : > { %1749 = vmatmul.mubr.bf16.vlgmr.msra.gmra.mrb[4].mxu0 %v7685_v2  ;;  %1885 = vmatmul.mubr.bf16.vlgmr.msra.gmra.mrb[4].mxu1 %v7685_v2 }
 0x30c   : > { %5834 = vmatpush3.bf16.msra.mxu0 %v6146_v36  ;;  %2098 = vmatprep.mubr.bf16.mxu0 %v7687_v3 }
 0x30d   : > { %5856 = vmatpush3.bf16.msra.mxu1 %v6147_v37  ;;  %2234 = vmatprep.mubr.bf16.mxu1 %v7687_v3  ;;  %v6172_v3 = vld [vmem:[%s7551_s7 + $0x78] sm:$0xff]   ;;  %s6908_s7 = smov 127  }
 0x30e   : > { %5835 = vmatprep.subr.bf16.mxu0 %v6148_v38  ;;  %5857 = vmatprep.subr.bf16.mxu1 %v6149_v39 }
 0x310   : > { %5836 = vmatpush3.bf16.msra.mxu0 %v6150_v40 }
 0x311   : > { %5858 = vmatpush3.bf16.msra.mxu1 %v6151_v41  ;;  %5837 = vmatprep.subr.bf16.mxu0 %v6152_v42 }
 0x312   : > { %5859 = vmatprep.subr.bf16.mxu1 %v6153_v43 }
 0x314   : > { %5838 = vmatpush3.bf16.msra.mxu0 %v6154_v44 }
 0x315   : > { %5860 = vmatpush3.bf16.msra.mxu1 %v6155_v45  ;;  %5839 = vmatprep.subr.bf16.mxu0 %v6156_v46  ;;  %v7774_v45 = vand.u32 127, %v1165_v48 }
 0x316   : > { %5861 = vmatprep.subr.bf16.mxu1 %v6157_v47 }
 0x317   : > { %v2250_v46 = vand.u32 1, %v7774_v45  ;;  %vm2387_vm3 = vcmp.le.s32.totalorder %v7774_v45, %v7661_v50 }
 0x318   : > { %5840 = vmatpush3.bf16.msra.mxu0 %v6158_v49 }
 0x319   : > { %5862 = vmatpush3.bf16.msra.mxu1 %v6159_v53  ;;  %5841 = vmatprep.subr.bf16.mxu0 %v6160_v54  ;;  %vm7777_vm1 = vcmp.eq.s32.totalorder %v2250_v46, 0  ;;  %v2243_v53 = vld [vmem:[#allocation8] sm:$0xff] }
 0x31a   : > { %5863 = vmatprep.subr.bf16.mxu1 %v6161_v55 }
 0x31c   : > { %5842 = vmatpush3.bf16.msra.mxu0 %v6162_v56  ;;  %v2242_v56 = vld [vmem:[#allocation6] sm:$0xff] }
 0x31d   : > { %5864 = vmatpush3.bf16.msra.mxu1 %v6163_v57  ;;  %5843 = vmatprep.subr.bf16.mxu0 %v6164_v58 }
 0x31e   : > { %5865 = vmatprep.subr.bf16.mxu1 %v6165_v59 }
 0x320   : > { %5844 = vmatpush3.bf16.msra.mxu0 %v6166_v60 }
 0x321   : > { %5866 = vmatpush3.bf16.msra.mxu1 %v6167_v61  ;;  %5845 = vmatprep.subr.bf16.mxu0 %v6168_v62 }
 0x322   : > { %5867 = vmatprep.subr.bf16.mxu1 %v6169_v63 }
 0x324   : > { %5846 = vmatpush3.bf16.msra.mxu0 %v6170_v0 }
 0x325   : > { %5868 = vmatpush3.bf16.msra.mxu1 %v6171_v1  ;;  %5847 = vmatprep.subr.bf16.mxu0 %v6172_v3 }
 0x326   : > { %5869 = vmatprep.subr.bf16.mxu1 %v6173_v4 }
 0x328   : > { %5848 = vmatpush3.bf16.msra.mxu0 %v6174_v5 }
 0x329   : > { %5870 = vmatpush3.bf16.msra.mxu1 %v6175_v6  ;;  %5885 = vmatprep.subr.bf16.mxu0 %v6906_v25  ;;  %v5404_v6 = vld [vmem:[%s8466_s3] ss:$0 sm:$0xff] }
 0x32a   : > { %5891 = vmatprep.subr.bf16.mxu1 %v6906_v25 }
 0x32b   : > { %2099 = vmatmul.mubr.bf16.vlgmr.msra.gmra.mrb[8].mxu0 %v7685_v2 }
 0x32c   : > { %2235 = vmatmul.mubr.bf16.vlgmr.msra.gmra.mrb[8].mxu1 %v7685_v2  ;;  %5887 = vmatprep.mubr.msk.bf16.mxu0 %vm6909_vm0, %v6906_v25 }
 0x32d   : > { %5893 = vmatprep.mubr.msk.bf16.mxu1 %vm6909_vm0, %v6906_v25 }
 0x3be   : > { %v5761_v7 = vpop.f32.mrb[0].mxu0  ;;  %v5783_v8 = vpop.f32.mrb[0].mxu1 }
 0x3bf   : > { %v5762_v9 = vpop.f32.mrb[1].mxu0  ;;  %v5784_v10 = vpop.f32.mrb[1].mxu1 }
 0x3c0   : > { %v5763_v11 = vadd.f32 %v5762_v9, %v5761_v7  ;;  %v5785_v12 = vadd.f32 %v5784_v10, %v5783_v8  ;;  %v5764_v13 = vpop.f32.mrb[2].mxu0  ;;  %v5786_v14 = vpop.f32.mrb[2].mxu1 }
 0x3c1   : > { %v5765_v15 = vpop.f32.mrb[3].mxu0  ;;  %v5787_v16 = vpop.f32.mrb[3].mxu1 }
 0x3c2   : > { %v1401_v32 = vadd.f32 %v5763_v11, %v5336_v31  ;;  %v1537_v34 = vadd.f32 %v5785_v12, %v5337_v33  ;;  %v5405_v15 = vld [vmem:[%s8466_s3 + $0x1] ss:$0 sm:$0xff] }
 0x3c4   : > { %v2273_v13 = vmul.f32 %v2242_v56, %v1401_v32 }
 0x3de   : > { %v5805_v17 = vpop.f32.mrb[4].mxu0  ;;  %v5827_v18 = vpop.f32.mrb[4].mxu1 }
 0x3df   : > { %v5806_v20 = vpop.f32.mrb[5].mxu0  ;;  %v5828_v21 = vpop.f32.mrb[5].mxu1 }
 0x3e0   : > { %v5807_v22 = vadd.f32 %v5806_v20, %v5805_v17  ;;  %v5829_v23 = vadd.f32 %v5828_v21, %v5827_v18  ;;  %v5808_v2 = vpop.f32.mrb[6].mxu0  ;;  %v5830_v24 = vpop.f32.mrb[6].mxu1 }
 0x3e1   : > { %v5809_v26 = vpop.f32.mrb[7].mxu0  ;;  %v5831_v27 = vpop.f32.mrb[7].mxu1 }
 0x3e2   : > { %v1751_v28 = vadd.f32 %v5807_v22, %v5370_v19  ;;  %v1887_v30 = vadd.f32 %v5829_v23, %v5371_v29  ;;  %v2274_v19 = vmul.f32 %v2242_v56, %v1537_v34 }
 0x3e4   : > { %2287 = vrot.lane.b32.xlu0 %v1751_v28, %s6907_s15  ;;  %2283 = vrot.lane.b32.xlu1 %v1751_v28, %s6908_s7  ;;  %v2295_v58 = vmul.f32 %v2242_v56, %v1751_v28  ;;  %v2296_v4 = vmul.f32 %v2242_v56, %v1887_v30 }
 0x3e8   : > { %2285 = vrot.lane.b32.xlu1 %v1887_v30, %s6908_s7 }
 0x3ec   : > { %2259 = vrot.lane.b32.xlu1 %v1401_v32, %s6908_s7 }
 0x3f0   : > { %2261 = vrot.lane.b32.xlu1 %v1537_v34, %s6908_s7 }
 0x3f4   : > { %2289 = vrot.lane.b32.xlu1 %v1887_v30, %s6907_s15 }
 0x3f8   : > { %2263 = vrot.lane.b32.xlu1 %v1401_v32, %s6907_s15 }
 0x3fc   : > { %2265 = vrot.lane.b32.xlu1 %v1537_v34, %s6907_s15 }
 0x3fe   : > { %v5849_v35 = vpop.f32.mrb[8].mxu0 }
 0x3ff   : > { %v5871_v36 = vpop.f32.mrb[8].mxu1  ;;  %v5850_v37 = vpop.f32.mrb[9].mxu0 }
 0x400   : > { %v5851_v38 = vadd.f32 %v5850_v37, %v5849_v35  ;;  %v5872_v39 = vpop.f32.mrb[9].mxu1  ;;  %v5852_v40 = vpop.f32.mrb[10].mxu0 }
 0x401   : > { %v5873_v41 = vadd.f32 %v5872_v39, %v5871_v36  ;;  %v5874_v42 = vpop.f32.mrb[10].mxu1  ;;  %v5853_v43 = vpop.f32.mrb[11].mxu0 }
 0x402   : > { %v5875_v44 = vpop.f32.mrb[11].mxu1  ;;  %v2101_v11 = vadd.f32 %v5851_v38, %v5404_v6  ;;  %v6193_v6 = vld [vmem:[%s8467_s29 + $0x34] ss:$8 sps:$4 sm:$0xff]  }
 0x403   : > { %v2237_v22 = vadd.f32 %v5873_v41, %v5405_v15  ;;  %v6206_v15 = vld [vmem:[%s8467_s29 + $0xc0] ss:$8 sps:$4 sm:$0xff]  }
 0x404   : > { %v2303_v21 = vpack.c.bf16 %v2101_v11, %v2101_v11  ;;  %v6200_v11 = vld [vmem:[%s8467_s29 + $0xb0] ss:$8 sps:$4 sm:$0xff]  }
 0x405   : > { %v2304_v27 = vpack.c.bf16 %v2237_v22, %v2237_v22  ;;  %v6220_v22 = vld [vmem:[%s8467_s29 + $0xe4] ss:$8 sps:$4 sm:$0xff]  }
 0x406   : > { %v2418_v29 = vsel %vm2416_vm2, %v2303_v21, 0  ;;  %v6217_v21 = vld [vmem:[%s8467_s29 + $0x74] ss:$8 sps:$4 sm:$0xff]  }
 0x407   : > { %v2464_v31 = vsel %vm2416_vm2, %v2304_v27, 0  ;;  %v6221_v27 = vld [vmem:[%s8467_s29 + $0xf0] ss:$8 sps:$4 sm:$0xff]  }
 0x456   : > { %v2284_v49 = vpop.permute.xlu1 %2283  ;;  %v2288_v55 = vpop.permute.xlu0 %2287 }
 0x457   : > { %v2291_v54 = vsub.f32 0.0, %v2284_v49 }
 0x459   : > { %v2293_v57 = vsel %vm7777_vm1, %v2291_v54, %v2288_v55 }
 0x45a   : > { %v2297_v59 = vmul.f32 %v2293_v57, %v2243_v53  ;;  %v2286_v60 = vpop.permute.xlu1 %2285 }
 0x45b   : > { %v2292_v0 = vsub.f32 0.0, %v2286_v60  ;;  %v6178_v60 = vld [vmem:[%s8467_s29 + $0x4] ss:$8 sps:$4 sm:$0xff]  }
 0x45c   : > { %v2299_v48 = vadd.f32 %v2297_v59, %v2295_v58  ;;  %v6176_v59 = vld [vmem:[%s8467_s29] ss:$8 sps:$4 sm:$0xff]  }
 0x45e   : > { %v2260_v61 = vpop.permute.xlu1 %2259  ;;  %v2301_v62 = vpack.c.bf16 %v2299_v48, %v2299_v48  ;;  %v6181_v48 = vld [vmem:[%s8467_s29 + $0x14] ss:$8 sps:$4 sm:$0xff]  }
 0x45f   : > { %v2267_v7 = vsub.f32 0.0, %v2260_v61  ;;  %v6182_v61 = vld [vmem:[%s8467_s29 + $0x80] ss:$8 sps:$4 sm:$0xff]  }
 0x460   : > { %5886 = vmatpush3.bf16.xpose.msra.mxu0 %v2301_v62  ;;  %v6184_v62 = vld [vmem:[%s8467_s29 + $0x84] ss:$8 sps:$4 sm:$0xff]  }
 0x461   : > { %5897 = vmatprep.subr.bf16.mxu0 %v6906_v25 }
 0x462   : > { %v2262_v63 = vpop.permute.xlu1 %2261 }
 0x463   : > { %v2268_v16 = vsub.f32 0.0, %v2262_v63  ;;  %v6179_v63 = vld [vmem:[%s8467_s29 + $0x10] ss:$8 sps:$4 sm:$0xff]  }
 0x466   : > { %v2290_v1 = vpop.permute.xlu1 %2289 }
 0x467   : > { %v2294_v3 = vsel %vm7777_vm1, %v2292_v0, %v2290_v1  ;;  %v6190_v0 = vld [vmem:[%s8467_s29 + $0x94] ss:$8 sps:$4 sm:$0xff]   ;;  %v6187_v1 = vld [vmem:[%s8467_s29 + $0x24] ss:$8 sps:$4 sm:$0xff]  }
 0x468   : > { %v2298_v5 = vmul.f32 %v2294_v3, %v2243_v53  ;;  %v6188_v3 = vld [vmem:[%s8467_s29 + $0x90] ss:$8 sps:$4 sm:$0xff]  }
 0x46a   : > { %v2300_v8 = vadd.f32 %v2298_v5, %v2296_v4  ;;  %v2264_v9 = vpop.permute.xlu1 %2263  ;;  %v6196_v4 = vld [vmem:[%s8467_s29 + $0xa4] ss:$8 sps:$4 sm:$0xff]   ;;  %v6185_v5 = vld [vmem:[%s8467_s29 + $0x20] ss:$8 sps:$4 sm:$0xff]  }
 0x46b   : > { %v2271_v10 = vsel %vm7777_vm1, %v2267_v7, %v2264_v9  ;;  %v6194_v7 = vld [vmem:[%s8467_s29 + $0xa0] ss:$8 sps:$4 sm:$0xff]   ;;  %v6191_v9 = vld [vmem:[%s8467_s29 + $0x30] ss:$8 sps:$4 sm:$0xff]  }
 0x46c   : > { %v2302_v12 = vpack.c.bf16 %v2300_v8, %v2300_v8  ;;  %v2275_v14 = vmul.f32 %v2271_v10, %v2243_v53  ;;  %v6202_v8 = vld [vmem:[%s8467_s29 + $0xb4] ss:$8 sps:$4 sm:$0xff]   ;;  %v6199_v10 = vld [vmem:[%s8467_s29 + $0x44] ss:$8 sps:$4 sm:$0xff]  }
 0x46e   : > { %v2277_v17 = vadd.f32 %v2275_v14, %v2273_v13  ;;  %5892 = vmatpush3.bf16.xpose.msra.mxu1 %v2302_v12  ;;  %v2266_v18 = vpop.permute.xlu1 %2265  ;;  %v6208_v12 = vld [vmem:[%s8467_s29 + $0xc4] ss:$8 sps:$4 sm:$0xff]   ;;  %v6197_v13 = vld [vmem:[%s8467_s29 + $0x40] ss:$8 sps:$4 sm:$0xff]   ;;  %v6205_v14 = vld [vmem:[%s8467_s29 + $0x54] ss:$8 sps:$4 sm:$0xff]  }
 0x46f   : > { %v2272_v20 = vsel %vm7777_vm1, %v2268_v16, %v2266_v18  ;;  %5903 = vmatprep.subr.bf16.mxu1 %v6906_v25  ;;  %v6214_v16 = vld [vmem:[%s8467_s29 + $0xd4] ss:$8 sps:$4 sm:$0xff]   ;;  %v6211_v18 = vld [vmem:[%s8467_s29 + $0x64] ss:$8 sps:$4 sm:$0xff]  }
 0x470   : > { %v2279_v23 = vmul.f32 0.088388346, %v2277_v17  ;;  %v2276_v2 = vmul.f32 %v2272_v20, %v2243_v53  ;;  %v6203_v17 = vld [vmem:[%s8467_s29 + $0x50] ss:$8 sps:$4 sm:$0xff]   ;;  %v6209_v20 = vld [vmem:[%s8467_s29 + $0x60] ss:$8 sps:$4 sm:$0xff]  }
 0x472   : > { %v2281_v24 = vpack.c.bf16 %v2279_v23, %v2279_v23  ;;  %v2278_v26 = vadd.f32 %v2276_v2, %v2274_v19  ;;  %v6212_v19 = vld [vmem:[%s8467_s29 + $0xd0] ss:$8 sps:$4 sm:$0xff]   ;;  %v6218_v2 = vld [vmem:[%s8467_s29 + $0xe0] ss:$8 sps:$4 sm:$0xff]  }
 0x473   : > { %v6215_v23 = vld [vmem:[%s8467_s29 + $0x70] ss:$8 sps:$4 sm:$0xff]  }
 0x474   : > { %v2280_v28 = vmul.f32 0.088388346, %v2278_v26  ;;  %5888 = vmatmul.mubr.bf16.vlgmr.msra.gmra.mrb[12].mxu0 %v2281_v24  ;;  %v6223_v24 = vld [vmem:[%s8467_s29 + $0xf4] ss:$8 sps:$4 sm:$0xff]   ;;  %v6910_v26 = vmov 0  }
 0x475   : > { %5898 = vmatpush3.bf16.msra.mxu0 %v2418_v29  ;;  %5899 = vmatprep.mubr.msk.bf16.mxu0 %vm6909_vm0, %v6906_v25 }
 0x476   : > { %v2282_v30 = vpack.c.bf16 %v2280_v28, %v2280_v28  ;;  %2624 = vmatprep.subr.bf16.mxu0 %v6178_v60 }
 0x478   : > { %5894 = vmatmul.mubr.bf16.vlgmr.msra.gmra.mrb[12].mxu1 %v2282_v30 }
 0x479   : > { %5904 = vmatpush3.bf16.msra.mxu1 %v2464_v31  ;;  %5905 = vmatprep.mubr.msk.bf16.mxu1 %vm6909_vm0, %v6906_v25 }
 0x47a   : > { %2745 = vmatprep.subr.bf16.mxu1 %v6184_v62 }
 0x547   : > { %v2339_v32 = vpop.f32.mrb[12].mxu0 }
 0x548   : > { %v2390_v33 = vsel %vm2387_vm3, %v2339_v32, -inf  ;;  %v5889_v34 = vpop.f32.mrb[13].mxu0 }
 0x549   : > { %v2342_v35 = vpop.f32.mrb[14].mxu0  ;;  %v2393_v36 = vsel %vm2392_vm4, %v2390_v33, -inf }
 0x54a   : > { %2394 = vmax.xlane.f32.xlu1 %v2393_v36  ;;  %v5890_v37 = vpop.f32.mrb[15].mxu0 }
 0x54b   : > { %v2379_v38 = vpop.f32.mrb[12].mxu1 }
 0x54c   : > { %v2391_v39 = vsel %vm2387_vm3, %v2379_v38, -inf  ;;  %v5895_v40 = vpop.f32.mrb[13].mxu1 }
 0x54d   : > { %v2382_v41 = vpop.f32.mrb[14].mxu1  ;;  %v2396_v42 = vsel %vm2392_vm4, %v2391_v39, -inf }
 0x54e   : > { %2397 = vmax.xlane.f32.xlu0 %v2396_v42  ;;  %v5896_v25 = vpop.f32.mrb[15].mxu1 }
 0x5d7   : > { %v2395_v43 = vpop.xlane.xlu1 %2394 }
 0x5d8   : > { %v2399_v44 = vsub.f32 %v2390_v33, %v2395_v43 }
 0x5da   : > { %v2401_v45 = vmul.f32 1.442695, %v2399_v44 }
 0x5db   : > { %v2398_v46 = vpop.xlane.xlu0 %2397 }
 0x5dc   : > { %6418 = vpow2.f32 %v2401_v45  ;;  %v2400_v47 = vsub.f32 %v2391_v39, %v2398_v46  ;;  %v2790_v46 = vld [vmem:[%s1117_s14] sm:$0x3] }
 0x5de   : > { %v2403_v49 = vmul.f32 1.442695, %v2400_v47 }
 0x5e0   : > { %6420 = vpow2.f32 %v2403_v49 }
 0x5e6   : > { %v6419_v53 = vpop.eup %6418 }
 0x5e7   : > { %v2405_v54 = vsel %vm2392_vm4, %v6419_v53, 0.0  ;;  %v2411_v55 = vpack.c.bf16 %v6419_v53, %v6419_v53 }
 0x5e8   : > { %2406 = vadd.xlane.f32.xlu0 %v2405_v54  ;;  %v2795_v54 = vrot.slane %v2790_v46, %v7664_v51 }
 0x5e9   : > { %5900 = vmatmul.mubr.msk.bf16.vlgmr.msra.gmra.mrb[16].mxu0 %vm2392_vm4, %v2411_v55 }
 0x5ea   : > { %v6421_v56 = vpop.eup %6420  ;;  %2625 = vmatpush1.bf16.msra.mxu0 %v6176_v59  ;;  %2656 = vmatprep.mubr.bf16.mxu0 %v6910_v26  ;;  %v6444_v59 = vld [vmem:[#allocation2] sm:$0xff] }
 0x5eb   : > { %v2408_v57 = vsel %vm2392_vm4, %v6421_v56, 0.0  ;;  %v2412_v58 = vpack.c.bf16 %v6421_v56, %v6421_v56  ;;  %2626 = vmatprep.subr.bf16.mxu0 %v6181_v48 }
 0x5ec   : > { %2409 = vadd.xlane.f32.xlu1 %v2408_v57  ;;  %v2799_v57 = vrot.slane %v2790_v46, %v7667_v52 }
 0x5ed   : > { %5906 = vmatmul.mubr.msk.bf16.vlgmr.msra.gmra.mrb[16].mxu1 %vm2392_vm4, %v2412_v58 }
 0x5ee   : > { %2746 = vmatpush1.bf16.msra.mxu1 %v6182_v61  ;;  %2627 = vmatpush1.bf16.msra.mxu0 %v6179_v63  ;;  %v6445_v61 = vld [vmem:[#allocation2 + $0x8] sm:$0xff] }
 0x5ef   : > { %2747 = vmatprep.subr.bf16.mxu1 %v6190_v0  ;;  %2628 = vmatprep.subr.bf16.mxu0 %v6187_v1 }
 0x5f0   : > { %2777 = vmatprep.mubr.bf16.mxu1 %v6910_v26  ;;  %v2878_v26 = vld [vmem:[%s8469_s8 + $0xe0] sm:$0xff] }
 0x5f2   : > { %2748 = vmatpush1.bf16.msra.mxu1 %v6188_v3  ;;  %2629 = vmatpush1.bf16.msra.mxu0 %v6185_v5  ;;  %v2850_v3 = vld [vmem:[%s8469_s8] sm:$0xff]  ;;  %v2851_v5 = vld [vmem:[%s8469_s8 + $0x8] sm:$0xff] }
 0x5f3   : > { %2749 = vmatprep.subr.bf16.mxu1 %v6196_v4  ;;  %2630 = vmatprep.subr.bf16.mxu0 %v6193_v6  ;;  %v2854_v4 = vld [vmem:[%s8469_s8 + $0x20] sm:$0xff] }
 0x5f4   : > { %v5472_v6 = vcombine.low %v2850_v3, %v2854_v4 }
 0x5f6   : > { %2750 = vmatpush1.bf16.msra.mxu1 %v6194_v7  ;;  %2631 = vmatpush1.bf16.msra.mxu0 %v6191_v9  ;;  %v5473_v7 = vcombine.high %v2850_v3, %v2854_v4  ;;  %v2858_v9 = vld [vmem:[%s8469_s8 + $0x40] sm:$0xff] }
 0x5f7   : > { %2751 = vmatprep.subr.bf16.mxu1 %v6202_v8  ;;  %2632 = vmatprep.subr.bf16.mxu0 %v6199_v10  ;;  %v2855_v8 = vld [vmem:[%s8469_s8 + $0x28] sm:$0xff]  ;;  %v2862_v10 = vld [vmem:[%s8469_s8 + $0x60] sm:$0xff] }
 0x5fa   : > { %2752 = vmatpush1.bf16.msra.mxu1 %v6200_v11  ;;  %2633 = vmatpush1.bf16.msra.mxu0 %v6197_v13  ;;  %v5474_v11 = vcombine.low %v2851_v5, %v2855_v8  ;;  %v5481_v13 = vcombine.high %v2858_v9, %v2862_v10 }
 0x5fb   : > { %2753 = vmatprep.subr.bf16.mxu1 %v6208_v12  ;;  %2634 = vmatprep.subr.bf16.mxu0 %v6205_v14  ;;  %v5475_v12 = vcombine.high %v2851_v5, %v2855_v8  ;;  %v2859_v14 = vld [vmem:[%s8469_s8 + $0x48] sm:$0xff] }
 0x5fc   : > { %v2915_v8 = vld [vmem:[%s8469_s8 + $0x208] sm:$0xff] }
 0x5fe   : > { %2754 = vmatpush1.bf16.msra.mxu1 %v6206_v15  ;;  %2635 = vmatpush1.bf16.msra.mxu0 %v6203_v17  ;;  %v2863_v15 = vld [vmem:[%s8469_s8 + $0x68] sm:$0xff] }
 0x5ff   : > { %2755 = vmatprep.subr.bf16.mxu1 %v6214_v16  ;;  %2636 = vmatprep.subr.bf16.mxu0 %v6211_v18  ;;  %v2866_v16 = vld [vmem:[%s8469_s8 + $0x80] sm:$0xff]  ;;  %v5483_v17 = vcombine.high %v2859_v14, %v2863_v15 }
 0x600   : > { %v2870_v18 = vld [vmem:[%s8469_s8 + $0xa0] sm:$0xff] }
 0x602   : > { %2756 = vmatpush1.bf16.msra.mxu1 %v6212_v19  ;;  %2637 = vmatpush1.bf16.msra.mxu0 %v6209_v20  ;;  %v2867_v19 = vld [vmem:[%s8469_s8 + $0x88] sm:$0xff] }
 0x603   : > { %2638 = vmatprep.subr.bf16.mxu0 %v6217_v21  ;;  %2757 = vmatprep.subr.bf16.mxu1 %v6220_v22  ;;  %v2871_v20 = vld [vmem:[%s8469_s8 + $0xa8] sm:$0xff]  ;;  %v5480_v21 = vcombine.low %v2858_v9, %v2862_v10  ;;  %v5482_v22 = vcombine.low %v2859_v14, %v2863_v15  ;;  %v2922_v14 = vld [vmem:[%s8469_s8 + $0x240] sm:$0xff] }
 0x604   : > { %v2919_v9 = vld [vmem:[%s8469_s8 + $0x228] sm:$0xff]  ;;  %v2926_v15 = vld [vmem:[%s8469_s8 + $0x260] sm:$0xff] }
 0x606   : > { %2639 = vmatpush1.bf16.msra.mxu0 %v6215_v23  ;;  %2758 = vmatpush1.bf16.msra.mxu1 %v6218_v2  ;;  %v5489_v23 = vcombine.high %v2866_v16, %v2870_v18  ;;  %v5491_v2 = vcombine.high %v2867_v19, %v2871_v20 }
 0x607   : > { %2759 = vmatprep.subr.bf16.mxu1 %v6223_v24  ;;  %3660 = vmatprep.subr.bf16.mxu0 %v5473_v7  ;;  %v2874_v24 = vld [vmem:[%s8469_s8 + $0xc0] sm:$0xff] }
 0x608   : > { %v2918_v7 = vld [vmem:[%s8469_s8 + $0x220] sm:$0xff] }
 0x60a   : > { %2760 = vmatpush1.bf16.msra.mxu1 %v6221_v27  ;;  %v2875_v27 = vld [vmem:[%s8469_s8 + $0xc8] sm:$0xff] }
 0x60b   : > { %3701 = vmatprep.subr.bf16.mxu1 %v5475_v12 }
 0x675   : > { %v2407_v28 = vpop.xlane.xlu0 %2406 }
 0x676   : > { %6422 = vrcp.f32 %v2407_v28  ;;  %v2879_v28 = vld [vmem:[%s8469_s8 + $0xe8] sm:$0xff] }
 0x679   : > { %v2410_v29 = vpop.xlane.xlu1 %2409 }
 0x67a   : > { %6424 = vrcp.f32 %v2410_v29  ;;  %v5488_v29 = vcombine.low %v2866_v16, %v2870_v18  ;;  %v2923_v16 = vld [vmem:[%s8469_s8 + $0x248] sm:$0xff] }
 0x680   : > { %v6423_v30 = vpop.eup %6422 }
 0x684   : > { %v6425_v37 = vpop.eup %6424 }
 0x6bc   : > { %v2454_v31 = vpop.f32.mrb[16].mxu0 }
 0x6bd   : > { %v2508_v32 = vmul.f32 %v6423_v30, %v2454_v31  ;;  %v5901_v33 = vpop.f32.mrb[17].mxu0  ;;  %v5490_v30 = vcombine.low %v2867_v19, %v2871_v20  ;;  %v5497_v31 = vcombine.high %v2874_v24, %v2878_v26  ;;  %v5538_v19 = vcombine.low %v2915_v8, %v2919_v9 }
 0x6be   : > { %v2457_v34 = vpop.f32.mrb[18].mxu0  ;;  %v2882_v33 = vld [vmem:[%s8469_s8 + $0x100] sm:$0xff]  ;;  %v5545_v20 = vcombine.high %v2922_v14, %v2926_v15 }
 0x6bf   : > { %v2510_v35 = vpack.c.bf16 %v2508_v32, %v2508_v32  ;;  %v5902_v36 = vpop.f32.mrb[19].mxu0  ;;  %v5499_v32 = vcombine.high %v2875_v27, %v2879_v28  ;;  %v2886_v34 = vld [vmem:[%s8469_s8 + $0x120] sm:$0xff] }
 0x6c0   : > { %v2500_v38 = vpop.f32.mrb[16].mxu1  ;;  %v2887_v36 = vld [vmem:[%s8469_s8 + $0x128] sm:$0xff] }
 0x6c1   : > { %v2509_v39 = vmul.f32 %v6425_v37, %v2500_v38  ;;  %v5907_v40 = vpop.f32.mrb[17].mxu1  ;;  %2657 = vmatmul.mubr.bf16.vlgmr.msra.gmra.mrb[20].mxu0 %v2510_v35  ;;  %v2883_v35 = vld [vmem:[%s8469_s8 + $0x108] sm:$0xff]  ;;  %v5496_v37 = vcombine.low %v2874_v24, %v2878_v26  ;;  %v5498_v38 = vcombine.low %v2875_v27, %v2879_v28  ;;  %v5544_v26 = vcombine.low %v2922_v14, %v2926_v15 }
 0x6c2   : > { %v2503_v41 = vpop.f32.mrb[18].mxu1  ;;  %3661 = vmatpush1.bf16.msra.mxu0 %v5472_v6  ;;  %v5507_v40 = vcombine.high %v2883_v35, %v2887_v36  ;;  %v2914_v6 = vld [vmem:[%s8469_s8 + $0x200] sm:$0xff]  ;;  %v2935_v24 = vld [vmem:[%s8469_s8 + $0x2a8] sm:$0xff] }
 0x6c3   : > { %v2511_v42 = vpack.c.bf16 %v2509_v39, %v2509_v39  ;;  %v5908_v25 = vpop.f32.mrb[19].mxu1  ;;  %3662 = vmatprep.subr.bf16.mxu0 %v5481_v13  ;;  %v5505_v39 = vcombine.high %v2882_v33, %v2886_v34  ;;  %v2890_v41 = vld [vmem:[%s8469_s8 + $0x140] sm:$0xff]  ;;  %v5537_v12 = vcombine.high %v2914_v6, %v2918_v7  ;;  %v5539_v13 = vcombine.high %v2915_v8, %v2919_v9  ;;  %v2967_v8 = vld [vmem:[%s8469_s8 + $0x3a8] sm:$0xff] }
 0x6c4   : > { %v2891_v25 = vld [vmem:[%s8469_s8 + $0x148] sm:$0xff]  ;;  %v5536_v18 = vcombine.low %v2914_v6, %v2918_v7 }
 0x6c5   : > { %2778 = vmatmul.mubr.bf16.vlgmr.msra.gmra.mrb[20].mxu1 %v2511_v42  ;;  %v2894_v42 = vld [vmem:[%s8469_s8 + $0x160] sm:$0xff]  ;;  %v2963_v6 = vld [vmem:[%s8469_s8 + $0x388] sm:$0xff] }
 0x6c6   : > { %3702 = vmatpush1.bf16.msra.mxu1 %v5474_v11  ;;  %3663 = vmatpush1.bf16.msra.mxu0 %v5480_v21  ;;  %v5513_v46 = vcombine.high %v2890_v41, %v2894_v42  ;;  %v2971_v14 = vld [vmem:[%s8469_s8 + $0x3c8] sm:$0xff] }
 0x6c7   : > { %3703 = vmatprep.subr.bf16.mxu1 %v5483_v17  ;;  %3664 = vmatprep.subr.bf16.mxu0 %v5489_v23  ;;  %v2927_v17 = vld [vmem:[%s8469_s8 + $0x268] sm:$0xff]  ;;  %v2934_v23 = vld [vmem:[%s8469_s8 + $0x2a0] sm:$0xff] }
 0x6c8   : > { %v5547_v21 = vcombine.high %v2923_v16, %v2927_v17  ;;  %v5546_v27 = vcombine.low %v2923_v16, %v2927_v17  ;;  %v2975_v16 = vld [vmem:[%s8469_s8 + $0x3e8] sm:$0xff] }
 0x6ca   : > { %3704 = vmatpush1.bf16.msra.mxu1 %v5482_v22  ;;  %3665 = vmatpush1.bf16.msra.mxu0 %v5488_v29  ;;  %v2930_v22 = vld [vmem:[%s8469_s8 + $0x280] sm:$0xff] }
 0x6cb   : > { %3705 = vmatprep.subr.bf16.mxu1 %v5491_v2  ;;  %3666 = vmatprep.subr.bf16.mxu0 %v5497_v31  ;;  %v2931_v2 = vld [vmem:[%s8469_s8 + $0x288] sm:$0xff]  ;;  %v5553_v28 = vcombine.high %v2930_v22, %v2934_v23 }
 0x6cc   : > { %v5555_v29 = vcombine.high %v2931_v2, %v2935_v24  ;;  %v5554_v31 = vcombine.low %v2931_v2, %v2935_v24  ;;  %v2857_v2 = vld [vmem:[%s8469_s8 + $0x38] sm:$0xff] }
 0x6ce   : > { %3706 = vmatpush1.bf16.msra.mxu1 %v5490_v30  ;;  %3667 = vmatpush1.bf16.msra.mxu0 %v5496_v37  ;;  %v5552_v30 = vcombine.low %v2930_v22, %v2934_v23  ;;  %v2853_v22 = vld [vmem:[%s8469_s8 + $0x18] sm:$0xff] }
 0x6cf   : > { %3707 = vmatprep.subr.bf16.mxu1 %v5499_v32  ;;  %3668 = vmatprep.subr.bf16.mxu0 %v5505_v39  ;;  %v2938_v39 = vld [vmem:[%s8469_s8 + $0x2c0] sm:$0xff] }
 0x6d2   : > { %3708 = vmatpush1.bf16.msra.mxu1 %v5498_v38 }
 0x6d3   : > { %3709 = vmatprep.subr.bf16.mxu1 %v5507_v40  ;;  %v2942_v40 = vld [vmem:[%s8469_s8 + $0x2e0] sm:$0xff] }
 0x794   : > { %v2658_v43 = vpop.f32.mrb[20].mxu0 }
 0x795   : > { %v2660_v44 = vpop.f32.mrb[21].mxu0 }
 0x796   : > { %v2662_v45 = vpop.f32.mrb[22].mxu0 }
 0x797   : > { %v2663_v47 = vpop.f32.mrb[23].mxu0  ;;  %v5506_v45 = vcombine.low %v2883_v35, %v2887_v36 }
 0x798   : > { %v2779_v49 = vpop.f32.mrb[20].mxu1 }
 0x799   : > { %v2786_v53 = vadd.f32 %v2779_v49, %v2658_v43  ;;  %v2781_v55 = vpop.f32.mrb[21].mxu1  ;;  %v2895_v43 = vld [vmem:[%s8469_s8 + $0x168] sm:$0xff]  ;;  %v2898_v49 = vld [vmem:[%s8469_s8 + $0x180] sm:$0xff]  ;;  %3710 = vmatpush1.bf16.msra.mxu1 %v5506_v45 }
 0x79a   : > { %v2787_v56 = vadd.f32 %v2781_v55, %v2660_v44  ;;  %v2783_v58 = vpop.f32.mrb[22].mxu1  ;;  %v5504_v44 = vcombine.low %v2882_v33, %v2886_v34  ;;  %v5515_v47 = vcombine.high %v2891_v25, %v2895_v43  ;;  %v2903_v55 = vld [vmem:[%s8469_s8 + $0x1a8] sm:$0xff] }
 0x79b   : > { %v2788_v60 = vadd.f32 %v6444_v59, %v2786_v53  ;;  %v2784_v48 = vpop.f32.mrb[23].mxu1  ;;  %v2902_v53 = vld [vmem:[%s8469_s8 + $0x1a0] sm:$0xff] }
 0x79c   : > { %v2789_v62 = vadd.f32 %v6445_v61, %v2787_v56  ;;  %3669 = vmatpush1.bf16.msra.mxu0 %v5504_v44  ;;  %v5512_v56 = vcombine.low %v2890_v41, %v2894_v42  ;;  %v5521_v58 = vcombine.high %v2898_v49, %v2902_v53  ;;  %3711 = vmatprep.subr.bf16.mxu1 %v5515_v47  ;;  %v2910_v48 = vld [vmem:[%s8469_s8 + $0x1e0] sm:$0xff]  ;;  %v2907_v61 = vld [vmem:[%s8469_s8 + $0x1c8] sm:$0xff] }
 0x79d   : > { %v7844_v63 = vadd.f32 %v2795_v54, %v2788_v60  ;;  %v2899_v54 = vld [vmem:[%s8469_s8 + $0x188] sm:$0xff]  ;;  %3670 = vmatprep.subr.bf16.mxu0 %v5513_v46  ;;  %v2906_v60 = vld [vmem:[%s8469_s8 + $0x1c0] sm:$0xff]  ;;  %v5561_v42 = vcombine.high %v2938_v39, %v2942_v40 }
 0x79e   : > { %v7846_v0 = vadd.f32 %v2799_v57, %v2789_v62  ;;  %v5514_v57 = vcombine.low %v2891_v25, %v2895_v43  ;;  %v5523_v59 = vcombine.high %v2899_v54, %v2903_v55  ;;  %v2911_v62 = vld [vmem:[%s8469_s8 + $0x1e8] sm:$0xff]  ;;  %v5522_v3 = vcombine.low %v2899_v54, %v2903_v55  ;;  %v2946_v46 = vld [vmem:[%s8469_s8 + $0x300] sm:$0xff] }
 0x79f   : > { %v5529_v4 = vcombine.high %v2906_v60, %v2910_v48  ;;  %v5531_v5 = vcombine.high %v2907_v61, %v2911_v62  ;;  %v5528_v10 = vcombine.low %v2906_v60, %v2910_v48  ;;  %v5530_v11 = vcombine.low %v2907_v61, %v2911_v62  ;;  %v2939_v41 = vld [vmem:[%s8469_s8 + $0x2c8] sm:$0xff]  ;;  %v2950_v47 = vld [vmem:[%s8469_s8 + $0x320] sm:$0xff] }
 0x7a0   : > { %v2806_v1 = vadd.f32 %v7846_v0, %v7844_v63  ;;  %3671 = vmatpush1.bf16.msra.mxu0 %v5512_v56  ;;  %3712 = vmatpush1.bf16.msra.mxu1 %v5514_v57  ;;  %v2943_v25 = vld [vmem:[%s8469_s8 + $0x2e8] sm:$0xff]  ;;  %v5560_v43 = vcombine.low %v2938_v39, %v2942_v40  ;;  %v5568_v55 = vcombine.low %v2946_v46, %v2950_v47 }
 0x7a1   : > { %3672 = vmatprep.subr.bf16.mxu0 %v5521_v58  ;;  %3713 = vmatprep.subr.bf16.mxu1 %v5523_v59  ;;  %v5562_v44 = vcombine.low %v2939_v41, %v2943_v25  ;;  %v5563_v45 = vcombine.high %v2939_v41, %v2943_v25  ;;  %v2951_v54 = vld [vmem:[%s8469_s8 + $0x328] sm:$0xff]  ;;  %v2954_v58 = vld [vmem:[%s8469_s8 + $0x340] sm:$0xff] }
 0x7a2   : > { %2807 = vadd.xlane.f32.xlu0 %v2806_v1  ;;  %v5520_v1 = vcombine.low %v2898_v49, %v2902_v53  ;;  %v2947_v49 = vld [vmem:[%s8469_s8 + $0x308] sm:$0xff]  ;;  %v5569_v53 = vcombine.high %v2946_v46, %v2950_v47  ;;  %v2958_v59 = vld [vmem:[%s8469_s8 + $0x360] sm:$0xff]  ;;  %v2864_v46 = vld [vmem:[%s8469_s8 + $0x70] sm:$0xff] }
 0x7a3   : > { %v5570_v56 = vcombine.low %v2947_v49, %v2951_v54  ;;  %v5571_v57 = vcombine.high %v2947_v49, %v2951_v54  ;;  %v2955_v60 = vld [vmem:[%s8469_s8 + $0x348] sm:$0xff]  ;;  %v5577_v48 = vcombine.high %v2954_v58, %v2958_v59  ;;  %v5576_v62 = vcombine.low %v2954_v58, %v2958_v59  ;;  %v2861_v47 = vld [vmem:[%s8469_s8 + $0x58] sm:$0xff] }
 0x7a4   : > { %3673 = vmatpush1.bf16.msra.mxu0 %v5520_v1  ;;  %3714 = vmatpush1.bf16.msra.mxu1 %v5522_v3  ;;  %v2959_v61 = vld [vmem:[%s8469_s8 + $0x368] sm:$0xff]  ;;  %v2865_v49 = vld [vmem:[%s8469_s8 + $0x78] sm:$0xff] }
 0x7a5   : > { %3674 = vmatprep.subr.bf16.mxu0 %v5529_v4  ;;  %3715 = vmatprep.subr.bf16.mxu1 %v5531_v5  ;;  %v5578_v1 = vcombine.low %v2955_v60, %v2959_v61  ;;  %v5579_v3 = vcombine.high %v2955_v60, %v2959_v61  ;;  %v2962_v4 = vld [vmem:[%s8469_s8 + $0x380] sm:$0xff]  ;;  %v2873_v58 = vld [vmem:[%s8469_s8 + $0xb8] sm:$0xff]  ;;  %v5486_v60 = vcombine.low %v2861_v47, %v2865_v49 }
 0x7a6   : > { %v2966_v5 = vld [vmem:[%s8469_s8 + $0x3a0] sm:$0xff] }
 0x7a7   : > { %v5585_v7 = vcombine.high %v2962_v4, %v2966_v5  ;;  %v5584_v9 = vcombine.low %v2962_v4, %v2966_v5  ;;  %v2881_v4 = vld [vmem:[%s8469_s8 + $0xf8] sm:$0xff] }
 0x7a8   : > { %3675 = vmatpush1.bf16.msra.mxu0 %v5528_v10  ;;  %3716 = vmatpush1.bf16.msra.mxu1 %v5530_v11  ;;  %v5586_v10 = vcombine.low %v2963_v6, %v2967_v8  ;;  %v5587_v11 = vcombine.high %v2963_v6, %v2967_v8 }
 0x7a9   : > { %3676 = vmatprep.subr.bf16.mxu0 %v5537_v12  ;;  %3717 = vmatprep.subr.bf16.mxu1 %v5539_v13  ;;  %v2970_v12 = vld [vmem:[%s8469_s8 + $0x3c0] sm:$0xff] }
 0x7aa   : > { %v2974_v13 = vld [vmem:[%s8469_s8 + $0x3e0] sm:$0xff] }
 0x7ab   : > { %v5593_v15 = vcombine.high %v2970_v12, %v2974_v13  ;;  %v5592_v17 = vcombine.low %v2970_v12, %v2974_v13  ;;  %v2889_v12 = vld [vmem:[%s8469_s8 + $0x138] sm:$0xff] }
 0x7ac   : > { %3677 = vmatpush1.bf16.msra.mxu0 %v5536_v18  ;;  %3718 = vmatpush1.bf16.msra.mxu1 %v5538_v19  ;;  %v5595_v18 = vcombine.high %v2971_v14, %v2975_v16  ;;  %v5594_v19 = vcombine.low %v2971_v14, %v2975_v16 }
 0x7ad   : > { %3678 = vmatprep.subr.bf16.mxu0 %v5545_v20  ;;  %3719 = vmatprep.subr.bf16.mxu1 %v5547_v21  ;;  %v2852_v20 = vld [vmem:[%s8469_s8 + $0x10] sm:$0xff] }
 0x7ae   : > { %v2856_v21 = vld [vmem:[%s8469_s8 + $0x30] sm:$0xff] }
 0x7af   : > { %v5477_v23 = vcombine.high %v2852_v20, %v2856_v21  ;;  %v5476_v24 = vcombine.low %v2852_v20, %v2856_v21  ;;  %v2897_v20 = vld [vmem:[%s8469_s8 + $0x178] sm:$0xff] }
 0x7b0   : > { %3679 = vmatpush1.bf16.msra.mxu0 %v5544_v26  ;;  %3720 = vmatpush1.bf16.msra.mxu1 %v5546_v27  ;;  %v5478_v26 = vcombine.low %v2853_v22, %v2857_v2  ;;  %v5479_v27 = vcombine.high %v2853_v22, %v2857_v2 }
 0x7b1   : > { %3680 = vmatprep.subr.bf16.mxu0 %v5553_v28  ;;  %3721 = vmatprep.subr.bf16.mxu1 %v5555_v29 }
 0x7b4   : > { %3681 = vmatpush1.bf16.msra.mxu0 %v5552_v30  ;;  %3722 = vmatpush1.bf16.msra.mxu1 %v5554_v31  ;;  %v2804_v31 = vld [vmem:[%s1121_s20] sm:$0x3] }
 0x7b5   : > { %3682 = vmatprep.subr.bf16.mxu0 %v5561_v42  ;;  %3723 = vmatprep.subr.bf16.mxu1 %v5563_v45  ;;  %v2860_v45 = vld [vmem:[%s8469_s8 + $0x50] sm:$0xff] }
 0x7b6   : > { %v5484_v59 = vcombine.low %v2860_v45, %v2864_v46 }
 0x7b8   : > { %3683 = vmatpush1.bf16.msra.mxu0 %v5560_v43  ;;  %3724 = vmatpush1.bf16.msra.mxu1 %v5562_v44 }
 0x7b9   : > { %3684 = vmatprep.subr.bf16.mxu0 %v5569_v53  ;;  %3725 = vmatprep.subr.bf16.mxu1 %v5571_v57  ;;  %v2869_v57 = vld [vmem:[%s8469_s8 + $0x98] sm:$0xff] }
 0x7ba   : > { %v5495_v61 = vcombine.high %v2869_v57, %v2873_v58  ;;  %v5494_v6 = vcombine.low %v2869_v57, %v2873_v58 }
 0x7bc   : > { %3685 = vmatpush1.bf16.msra.mxu0 %v5568_v55  ;;  %3726 = vmatpush1.bf16.msra.mxu1 %v5570_v56  ;;  %v5487_v55 = vcombine.high %v2861_v47, %v2865_v49  ;;  %v2872_v56 = vld [vmem:[%s8469_s8 + $0xb0] sm:$0xff] }
 0x7bd   : > { %3686 = vmatprep.subr.bf16.mxu0 %v5577_v48  ;;  %3727 = vmatprep.subr.bf16.mxu1 %v5579_v3  ;;  %v2877_v3 = vld [vmem:[%s8469_s8 + $0xd8] sm:$0xff] }
 0x7be   : > { %v5503_v8 = vcombine.high %v2877_v3, %v2881_v4  ;;  %v5502_v14 = vcombine.low %v2877_v3, %v2881_v4 }
 0x7c0   : > { %3687 = vmatpush1.bf16.msra.mxu0 %v5576_v62  ;;  %3728 = vmatpush1.bf16.msra.mxu1 %v5578_v1  ;;  %v2876_v62 = vld [vmem:[%s8469_s8 + $0xd0] sm:$0xff] }
 0x7c1   : > { %3688 = vmatprep.subr.bf16.mxu0 %v5585_v7  ;;  %3729 = vmatprep.subr.bf16.mxu1 %v5587_v11  ;;  %v2880_v1 = vld [vmem:[%s8469_s8 + $0xf0] sm:$0xff]  ;;  %v2885_v11 = vld [vmem:[%s8469_s8 + $0x118] sm:$0xff] }
 0x7c2   : > { %v5501_v7 = vcombine.high %v2876_v62, %v2880_v1  ;;  %v5500_v13 = vcombine.low %v2876_v62, %v2880_v1  ;;  %v5511_v16 = vcombine.high %v2885_v11, %v2889_v12  ;;  %v5510_v22 = vcombine.low %v2885_v11, %v2889_v12  ;;  %v2933_v62 = vld [vmem:[%s8469_s8 + $0x298] sm:$0xff] }
 0x7c3   : > { %v2937_v1 = vld [vmem:[%s8469_s8 + $0x2b8] sm:$0xff] }
 0x7c4   : > { %3689 = vmatpush1.bf16.msra.mxu0 %v5584_v9  ;;  %3730 = vmatpush1.bf16.msra.mxu1 %v5586_v10  ;;  %v2884_v9 = vld [vmem:[%s8469_s8 + $0x110] sm:$0xff]  ;;  %v5558_v12 = vcombine.low %v2933_v62, %v2937_v1 }
 0x7c5   : > { %3690 = vmatprep.subr.bf16.mxu0 %v5593_v15  ;;  %3731 = vmatprep.subr.bf16.mxu1 %v5595_v18  ;;  %v2888_v10 = vld [vmem:[%s8469_s8 + $0x130] sm:$0xff] }
 0x7c6   : > { %v5509_v15 = vcombine.high %v2884_v9, %v2888_v10  ;;  %v2896_v18 = vld [vmem:[%s8469_s8 + $0x170] sm:$0xff]  ;;  %v5508_v21 = vcombine.low %v2884_v9, %v2888_v10  ;;  %v2941_v9 = vld [vmem:[%s8469_s8 + $0x2d8] sm:$0xff] }
 0x7c7   : > { %v2945_v10 = vld [vmem:[%s8469_s8 + $0x2f8] sm:$0xff] }
 0x7c8   : > { %3691 = vmatpush1.bf16.msra.mxu0 %v5592_v17  ;;  %3732 = vmatpush1.bf16.msra.mxu1 %v5594_v19  ;;  %v2892_v17 = vld [vmem:[%s8469_s8 + $0x150] sm:$0xff]  ;;  %v2893_v19 = vld [vmem:[%s8469_s8 + $0x158] sm:$0xff] }
 0x7c9   : > { %3742 = vmatprep.subr.bf16.mxu0 %v5477_v23  ;;  %3783 = vmatprep.subr.bf16.mxu1 %v5479_v27  ;;  %v5517_v23 = vcombine.high %v2892_v17, %v2896_v18  ;;  %v5519_v2 = vcombine.high %v2893_v19, %v2897_v20  ;;  %v2901_v27 = vld [vmem:[%s8469_s8 + $0x198] sm:$0xff] }
 0x82f   : > { %v2808_v32 = vpop.xlane.xlu0 %2807 }
 0x830   : > { %v2809_v33 = vmul.f32 0.00390625, %v2808_v32  ;;  %v2805_v32 = vld [vmem:[%s1125_s21] sm:$0x3]  ;;  %s8472_s21 = sld [smem:[#allocation50_spill]] }
 0x831   : > { %v2843_v40 = vrot.slane %v2805_v32, %v7667_v52  ;;  %v2839_v41 = vrot.slane %v2805_v32, %v7664_v51 }
 0x832   : > { %v7895_v34 = vsub.f32 %v7844_v63, %v2809_v33  ;;  %v7898_v35 = vsub.f32 %v7846_v0, %v2809_v33  ;;  %v2830_v33 = vrot.slane %v2804_v31, %v7667_v52 }
 0x834   : > { %v2812_v36 = vmul.f32 %v7895_v34, %v7895_v34  ;;  %v2813_v37 = vmul.f32 %v7898_v35, %v7898_v35 }
 0x836   : > { %v2814_v38 = vadd.f32 %v2813_v37, %v2812_v36  ;;  %v2826_v36 = vrot.slane %v2804_v31, %v7664_v51 }
 0x838   : > { %2815 = vadd.xlane.f32.xlu1 %v2814_v38 }
 0x8c5   : > { %v2816_v28 = vpop.xlane.xlu1 %2815 }
 0x8c6   : > { %v2817_v29 = vmul.f32 0.00390625, %v2816_v28  ;;  %v2905_v28 = vld [vmem:[%s8469_s8 + $0x1b8] sm:$0xff] }
 0x8c7   : > { %v5527_v32 = vcombine.high %v2901_v27, %v2905_v28 }
 0x8c8   : > { %v2818_v30 = vadd.f32 1e-05, %v2817_v29  ;;  %v5516_v29 = vcombine.low %v2892_v17, %v2896_v18  ;;  %v2949_v17 = vld [vmem:[%s8469_s8 + $0x318] sm:$0xff] }
 0x8c9   : > { %v2953_v18 = vld [vmem:[%s8469_s8 + $0x338] sm:$0xff] }
 0x8ca   : > { %6426 = vrsqrt.f32 %v2818_v30  ;;  %v5518_v30 = vcombine.low %v2893_v19, %v2897_v20  ;;  %v5566_v20 = vcombine.low %v2941_v9, %v2945_v10 }
 0x8d4   : > { %v6427_v37 = vpop.eup %6426 }
 0x8d5   : > { %v2820_v38 = vmul.f32 %v6427_v37, %v7895_v34  ;;  %v2821_v39 = vmul.f32 %v6427_v37, %v7898_v35  ;;  %v2868_v34 = vld [vmem:[%s8469_s8 + $0x90] sm:$0xff]  ;;  %v5485_v35 = vcombine.high %v2860_v45, %v2864_v46  ;;  %v2909_v37 = vld [vmem:[%s8469_s8 + $0x1d8] sm:$0xff] }
 0x8d6   : > { %v5493_v48 = vcombine.high %v2868_v34, %v2872_v56  ;;  %v5492_v5 = vcombine.low %v2868_v34, %v2872_v56  ;;  %v2921_v45 = vld [vmem:[%s8469_s8 + $0x238] sm:$0xff]  ;;  %v2924_v34 = vld [vmem:[%s8469_s8 + $0x250] sm:$0xff] }
 0x8d7   : > { %v2834_v42 = vmul.f32 %v2830_v33, %v2821_v39  ;;  %v2833_v25 = vmul.f32 %v2826_v36, %v2820_v38  ;;  %v2908_v33 = vld [vmem:[%s8469_s8 + $0x1d0] sm:$0xff]  ;;  %v2913_v38 = vld [vmem:[%s8469_s8 + $0x1f8] sm:$0xff] }
 0x8d8   : > { %v2912_v36 = vld [vmem:[%s8469_s8 + $0x1f0] sm:$0xff]  ;;  %v5534_v47 = vcombine.low %v2909_v37, %v2913_v38  ;;  %v2929_v56 = vld [vmem:[%s8469_s8 + $0x278] sm:$0xff] }
 0x8d9   : > { %v2847_v43 = vadd.f32 %v2843_v40, %v2834_v42  ;;  %v2846_v44 = vadd.f32 %v2839_v41, %v2833_v25  ;;  %v5526_v40 = vcombine.low %v2901_v27, %v2905_v28  ;;  %v5533_v41 = vcombine.high %v2908_v33, %v2912_v36  ;;  %v2916_v25 = vld [vmem:[%s8469_s8 + $0x210] sm:$0xff] }
 0x8da   : > { %v5535_v42 = vcombine.high %v2909_v37, %v2913_v38  ;;  %v5532_v46 = vcombine.low %v2908_v33, %v2912_v36  ;;  %v5574_v28 = vcombine.low %v2949_v17, %v2953_v18  ;;  %v2965_v33 = vld [vmem:[%s8469_s8 + $0x398] sm:$0xff] }
 0x8db   : > { %v2849_v53 = vpack.c.bf16 %v2847_v43, %v2847_v43  ;;  %v7948_v54 = vpack.c.bf16 %v2846_v44, %v2846_v44  ;;  %v2920_v43 = vld [vmem:[%s8469_s8 + $0x230] sm:$0xff]  ;;  %v2917_v44 = vld [vmem:[%s8469_s8 + $0x218] sm:$0xff] }
 0x8dc   : > { %v5541_v49 = vcombine.high %v2916_v25, %v2920_v43  ;;  %v5540_v57 = vcombine.low %v2916_v25, %v2920_v43  ;;  %v5542_v58 = vcombine.low %v2917_v44, %v2921_v45  ;;  %v2969_v36 = vld [vmem:[%s8469_s8 + $0x3b8] sm:$0xff] }
 0x8dd   : > { %3692 = vmatprep.mubr.bf16.mxu0 %v2849_v53  ;;  %3733 = vmatprep.mubr.bf16.mxu1 %v2849_v53  ;;  %v2973_v25 = vld [vmem:[%s8469_s8 + $0x3d8] sm:$0xff] }
 0x8de   : > { %3693 = vmatmul.mubr.bf16.vlgmr.msra.gmra.mrb[24].mxu0 %v7948_v54  ;;  %3734 = vmatmul.mubr.bf16.vlgmr.msra.gmra.mrb[24].mxu1 %v7948_v54  ;;  %v2977_v43 = vld [vmem:[%s8469_s8 + $0x3f8] sm:$0xff] }
 0x8df   : > { %3743 = vmatpush1.bf16.msra.mxu0 %v5476_v24  ;;  %3784 = vmatpush1.bf16.msra.mxu1 %v5478_v26  ;;  %v2900_v24 = vld [vmem:[%s8469_s8 + $0x190] sm:$0xff] }
 0x8e0   : > { %3774 = vmatprep.mubr.bf16.mxu0 %v2849_v53  ;;  %3815 = vmatprep.mubr.bf16.mxu1 %v2849_v53  ;;  %v2904_v26 = vld [vmem:[%s8469_s8 + $0x1b0] sm:$0xff]  ;;  %v5543_v53 = vcombine.high %v2917_v44, %v2921_v45  ;;  %v5590_v45 = vcombine.low %v2965_v33, %v2969_v36 }
 0x8e1   : > { %3744 = vmatprep.subr.bf16.mxu0 %v5485_v35  ;;  %3785 = vmatprep.subr.bf16.mxu1 %v5487_v55  ;;  %v5525_v31 = vcombine.high %v2900_v24, %v2904_v26  ;;  %v5524_v39 = vcombine.low %v2900_v24, %v2904_v26  ;;  %v2928_v35 = vld [vmem:[%s8469_s8 + $0x270] sm:$0xff]  ;;  %v2925_v55 = vld [vmem:[%s8469_s8 + $0x258] sm:$0xff] }
 0x8e2   : > { %v5548_v3 = vcombine.low %v2924_v34, %v2928_v35  ;;  %v5550_v4 = vcombine.low %v2925_v55, %v2929_v56  ;;  %v2957_v24 = vld [vmem:[%s8469_s8 + $0x358] sm:$0xff] }
 0x8e3   : > { %3745 = vmatpush1.bf16.msra.mxu0 %v5484_v59  ;;  %3786 = vmatpush1.bf16.msra.mxu1 %v5486_v60  ;;  %v5549_v59 = vcombine.high %v2924_v34, %v2928_v35  ;;  %v5551_v60 = vcombine.high %v2925_v55, %v2929_v56  ;;  %v2961_v26 = vld [vmem:[%s8469_s8 + $0x378] sm:$0xff]  ;;  %v6226_v34 = vld [vmem:[%s8472_s21 + $0x4] ss:$8 sps:$4 sm:$0xff]   ;;  %v6224_v55 = vld [vmem:[%s8472_s21] ss:$8 sps:$4 sm:$0xff]  }
 0x8e4   : > { %3746 = vmatprep.subr.bf16.mxu0 %v5493_v48  ;;  %3787 = vmatprep.subr.bf16.mxu1 %v5495_v61  ;;  %v2932_v48 = vld [vmem:[%s8469_s8 + $0x290] sm:$0xff]  ;;  %v5582_v38 = vcombine.low %v2957_v24, %v2961_v26  ;;  %v6229_v35 = vld [vmem:[%s8472_s21 + $0x104] ss:$8 sps:$4 sm:$0xff]   ;;  %v6227_v56 = vld [vmem:[%s8472_s21 + $0x100] ss:$8 sps:$4 sm:$0xff]  }
 0x8e5   : > { %v2936_v61 = vld [vmem:[%s8469_s8 + $0x2b0] sm:$0xff] }
 0x8e6   : > { %v5556_v11 = vcombine.low %v2932_v48, %v2936_v61 }
 0x8e7   : > { %3747 = vmatpush1.bf16.msra.mxu0 %v5492_v5  ;;  %3788 = vmatpush1.bf16.msra.mxu1 %v5494_v6  ;;  %v5557_v5 = vcombine.high %v2932_v48, %v2936_v61  ;;  %v5559_v6 = vcombine.high %v2933_v62, %v2937_v1  ;;  %v6238_v48 = vld [vmem:[%s8472_s21 + $0x24] ss:$8 sps:$4 sm:$0xff]   ;;  %v6236_v62 = vld [vmem:[%s8472_s21 + $0x20] ss:$8 sps:$4 sm:$0xff]  }
 0x8e8   : > { %3748 = vmatprep.subr.bf16.mxu0 %v5501_v7  ;;  %3789 = vmatprep.subr.bf16.mxu1 %v5503_v8  ;;  %v2940_v7 = vld [vmem:[%s8469_s8 + $0x2d0] sm:$0xff]  ;;  %v6241_v61 = vld [vmem:[%s8472_s21 + $0x124] ss:$8 sps:$4 sm:$0xff]   ;;  %v6239_v1 = vld [vmem:[%s8472_s21 + $0x120] ss:$8 sps:$4 sm:$0xff]  }
 0x8e9   : > { %v2944_v8 = vld [vmem:[%s8469_s8 + $0x2f0] sm:$0xff] }
 0x8ea   : > { %v5564_v19 = vcombine.low %v2940_v7, %v2944_v8 }
 0x8eb   : > { %3749 = vmatpush1.bf16.msra.mxu0 %v5500_v13  ;;  %3790 = vmatpush1.bf16.msra.mxu1 %v5502_v14  ;;  %v5565_v13 = vcombine.high %v2940_v7, %v2944_v8  ;;  %v5567_v14 = vcombine.high %v2941_v9, %v2945_v10  ;;  %v6253_v7 = vld [vmem:[%s8472_s21 + $0x144] ss:$8 sps:$4 sm:$0xff]   ;;  %v6248_v8 = vld [vmem:[%s8472_s21 + $0x40] ss:$8 sps:$4 sm:$0xff]   ;;  %v6256_v10 = vld [vmem:[%s8472_s21 + $0x54] ss:$8 sps:$4 sm:$0xff]  }
 0x8ec   : > { %3750 = vmatprep.subr.bf16.mxu0 %v5509_v15  ;;  %3791 = vmatprep.subr.bf16.mxu1 %v5511_v16  ;;  %v2948_v15 = vld [vmem:[%s8469_s8 + $0x310] sm:$0xff]  ;;  %v6251_v9 = vld [vmem:[%s8472_s21 + $0x140] ss:$8 sps:$4 sm:$0xff]  }
 0x8ed   : > { %v2952_v16 = vld [vmem:[%s8469_s8 + $0x330] sm:$0xff] }
 0x8ee   : > { %v5572_v27 = vcombine.low %v2948_v15, %v2952_v16 }
 0x8ef   : > { %3751 = vmatpush1.bf16.msra.mxu0 %v5508_v21  ;;  %3792 = vmatpush1.bf16.msra.mxu1 %v5510_v22  ;;  %v5573_v21 = vcombine.high %v2948_v15, %v2952_v16  ;;  %v5575_v22 = vcombine.high %v2949_v17, %v2953_v18  ;;  %v6265_v15 = vld [vmem:[%s8472_s21 + $0x164] ss:$8 sps:$4 sm:$0xff]   ;;  %v6260_v16 = vld [vmem:[%s8472_s21 + $0x60] ss:$8 sps:$4 sm:$0xff]   ;;  %v6268_v18 = vld [vmem:[%s8472_s21 + $0x74] ss:$8 sps:$4 sm:$0xff]  }
 0x8f0   : > { %3752 = vmatprep.subr.bf16.mxu0 %v5517_v23  ;;  %3793 = vmatprep.subr.bf16.mxu1 %v5519_v2  ;;  %v2956_v23 = vld [vmem:[%s8469_s8 + $0x350] sm:$0xff]  ;;  %v6263_v17 = vld [vmem:[%s8472_s21 + $0x160] ss:$8 sps:$4 sm:$0xff]  }
 0x8f1   : > { %v2960_v2 = vld [vmem:[%s8469_s8 + $0x370] sm:$0xff] }
 0x8f2   : > { %v5580_v37 = vcombine.low %v2956_v23, %v2960_v2 }
 0x8f3   : > { %3753 = vmatpush1.bf16.msra.mxu0 %v5516_v29  ;;  %3794 = vmatpush1.bf16.msra.mxu1 %v5518_v30  ;;  %v5581_v29 = vcombine.high %v2956_v23, %v2960_v2  ;;  %v5583_v30 = vcombine.high %v2957_v24, %v2961_v26  ;;  %v6277_v23 = vld [vmem:[%s8472_s21 + $0x184] ss:$8 sps:$4 sm:$0xff]   ;;  %v6272_v2 = vld [vmem:[%s8472_s21 + $0x80] ss:$8 sps:$4 sm:$0xff]   ;;  %v6280_v26 = vld [vmem:[%s8472_s21 + $0x94] ss:$8 sps:$4 sm:$0xff]  }
 0x8f4   : > { %3754 = vmatprep.subr.bf16.mxu0 %v5525_v31  ;;  %3795 = vmatprep.subr.bf16.mxu1 %v5527_v32  ;;  %v2964_v31 = vld [vmem:[%s8469_s8 + $0x390] sm:$0xff]  ;;  %v6275_v24 = vld [vmem:[%s8472_s21 + $0x180] ss:$8 sps:$4 sm:$0xff]  }
 0x8f5   : > { %v2968_v32 = vld [vmem:[%s8469_s8 + $0x3b0] sm:$0xff] }
 0x8f6   : > { %v5588_v44 = vcombine.low %v2964_v31, %v2968_v32 }
 0x8f7   : > { %3755 = vmatpush1.bf16.msra.mxu0 %v5524_v39  ;;  %3796 = vmatpush1.bf16.msra.mxu1 %v5526_v40  ;;  %v5589_v39 = vcombine.high %v2964_v31, %v2968_v32  ;;  %v5591_v40 = vcombine.high %v2965_v33, %v2969_v36  ;;  %v6289_v31 = vld [vmem:[%s8472_s21 + $0x1a4] ss:$8 sps:$4 sm:$0xff]   ;;  %v6284_v32 = vld [vmem:[%s8472_s21 + $0xa0] ss:$8 sps:$4 sm:$0xff]   ;;  %v6292_v36 = vld [vmem:[%s8472_s21 + $0xb4] ss:$8 sps:$4 sm:$0xff]  }
 0x8f8   : > { %3756 = vmatprep.subr.bf16.mxu0 %v5533_v41  ;;  %3797 = vmatprep.subr.bf16.mxu1 %v5535_v42  ;;  %v2972_v41 = vld [vmem:[%s8469_s8 + $0x3d0] sm:$0xff]  ;;  %v6287_v33 = vld [vmem:[%s8472_s21 + $0x1a0] ss:$8 sps:$4 sm:$0xff]  }
 0x8f9   : > { %v2976_v42 = vld [vmem:[%s8469_s8 + $0x3f0] sm:$0xff] }
 0x8fb   : > { %3757 = vmatpush1.bf16.msra.mxu0 %v5532_v46  ;;  %3798 = vmatpush1.bf16.msra.mxu1 %v5534_v47  ;;  %v5597_v46 = vcombine.high %v2972_v41, %v2976_v42  ;;  %v5599_v47 = vcombine.high %v2973_v25, %v2977_v43 }
 0x8fc   : > { %3758 = vmatprep.subr.bf16.mxu0 %v5541_v49  ;;  %3799 = vmatprep.subr.bf16.mxu1 %v5543_v53  ;;  %v5596_v49 = vcombine.low %v2972_v41, %v2976_v42  ;;  %v5598_v53 = vcombine.low %v2973_v25, %v2977_v43  ;;  %v6301_v41 = vld [vmem:[%s8472_s21 + $0x1c4] ss:$8 sps:$4 sm:$0xff]   ;;  %v6296_v42 = vld [vmem:[%s8472_s21 + $0xc0] ss:$8 sps:$4 sm:$0xff]   ;;  %v6304_v43 = vld [vmem:[%s8472_s21 + $0xd4] ss:$8 sps:$4 sm:$0xff]  }
 0x8fd   : > { %v6299_v25 = vld [vmem:[%s8472_s21 + $0x1c0] ss:$8 sps:$4 sm:$0xff]  }
 0x8ff   : > { %3759 = vmatpush1.bf16.msra.mxu0 %v5540_v57  ;;  %3800 = vmatpush1.bf16.msra.mxu1 %v5542_v58  ;;  %v6232_v57 = vld [vmem:[%s8472_s21 + $0x14] ss:$8 sps:$4 sm:$0xff]  }
 0x900   : > { %3760 = vmatprep.subr.bf16.mxu0 %v5549_v59  ;;  %3801 = vmatprep.subr.bf16.mxu1 %v5551_v60  ;;  %v6235_v58 = vld [vmem:[%s8472_s21 + $0x114] ss:$8 sps:$4 sm:$0xff]   ;;  %v6230_v59 = vld [vmem:[%s8472_s21 + $0x10] ss:$8 sps:$4 sm:$0xff]  }
 0x901   : > { %v6233_v60 = vld [vmem:[%s8472_s21 + $0x110] ss:$8 sps:$4 sm:$0xff]  }
 0x903   : > { %3761 = vmatpush1.bf16.msra.mxu0 %v5548_v3  ;;  %3802 = vmatpush1.bf16.msra.mxu1 %v5550_v4  ;;  %v6247_v3 = vld [vmem:[%s8472_s21 + $0x134] ss:$8 sps:$4 sm:$0xff]   ;;  %v6242_v4 = vld [vmem:[%s8472_s21 + $0x30] ss:$8 sps:$4 sm:$0xff]  }
 0x904   : > { %3762 = vmatprep.subr.bf16.mxu0 %v5557_v5  ;;  %3803 = vmatprep.subr.bf16.mxu1 %v5559_v6  ;;  %v6245_v5 = vld [vmem:[%s8472_s21 + $0x130] ss:$8 sps:$4 sm:$0xff]   ;;  %v6250_v6 = vld [vmem:[%s8472_s21 + $0x44] ss:$8 sps:$4 sm:$0xff]  }
 0x907   : > { %3763 = vmatpush1.bf16.msra.mxu0 %v5556_v11  ;;  %3804 = vmatpush1.bf16.msra.mxu1 %v5558_v12  ;;  %v6259_v11 = vld [vmem:[%s8472_s21 + $0x154] ss:$8 sps:$4 sm:$0xff]   ;;  %v6254_v12 = vld [vmem:[%s8472_s21 + $0x50] ss:$8 sps:$4 sm:$0xff]  }
 0x908   : > { %3764 = vmatprep.subr.bf16.mxu0 %v5565_v13  ;;  %3805 = vmatprep.subr.bf16.mxu1 %v5567_v14  ;;  %v6257_v13 = vld [vmem:[%s8472_s21 + $0x150] ss:$8 sps:$4 sm:$0xff]   ;;  %v6262_v14 = vld [vmem:[%s8472_s21 + $0x64] ss:$8 sps:$4 sm:$0xff]  }
 0x90b   : > { %3765 = vmatpush1.bf16.msra.mxu0 %v5564_v19  ;;  %3806 = vmatpush1.bf16.msra.mxu1 %v5566_v20  ;;  %v6271_v19 = vld [vmem:[%s8472_s21 + $0x174] ss:$8 sps:$4 sm:$0xff]   ;;  %v6266_v20 = vld [vmem:[%s8472_s21 + $0x70] ss:$8 sps:$4 sm:$0xff]  }
 0x90c   : > { %3766 = vmatprep.subr.bf16.mxu0 %v5573_v21  ;;  %3807 = vmatprep.subr.bf16.mxu1 %v5575_v22  ;;  %v6269_v21 = vld [vmem:[%s8472_s21 + $0x170] ss:$8 sps:$4 sm:$0xff]   ;;  %v6274_v22 = vld [vmem:[%s8472_s21 + $0x84] ss:$8 sps:$4 sm:$0xff]  }
 0x90f   : > { %3767 = vmatpush1.bf16.msra.mxu0 %v5572_v27  ;;  %3808 = vmatpush1.bf16.msra.mxu1 %v5574_v28  ;;  %v6283_v27 = vld [vmem:[%s8472_s21 + $0x194] ss:$8 sps:$4 sm:$0xff]   ;;  %v6278_v28 = vld [vmem:[%s8472_s21 + $0x90] ss:$8 sps:$4 sm:$0xff]  }
 0x910   : > { %3768 = vmatprep.subr.bf16.mxu0 %v5581_v29  ;;  %3809 = vmatprep.subr.bf16.mxu1 %v5583_v30  ;;  %v6281_v29 = vld [vmem:[%s8472_s21 + $0x190] ss:$8 sps:$4 sm:$0xff]   ;;  %v6286_v30 = vld [vmem:[%s8472_s21 + $0xa4] ss:$8 sps:$4 sm:$0xff]  }
 0x913   : > { %3769 = vmatpush1.bf16.msra.mxu0 %v5580_v37  ;;  %3810 = vmatpush1.bf16.msra.mxu1 %v5582_v38  ;;  %v6295_v37 = vld [vmem:[%s8472_s21 + $0x1b4] ss:$8 sps:$4 sm:$0xff]   ;;  %v6290_v38 = vld [vmem:[%s8472_s21 + $0xb0] ss:$8 sps:$4 sm:$0xff]  }
 0x914   : > { %3770 = vmatprep.subr.bf16.mxu0 %v5589_v39  ;;  %3811 = vmatprep.subr.bf16.mxu1 %v5591_v40  ;;  %v6293_v39 = vld [vmem:[%s8472_s21 + $0x1b0] ss:$8 sps:$4 sm:$0xff]   ;;  %v6298_v40 = vld [vmem:[%s8472_s21 + $0xc4] ss:$8 sps:$4 sm:$0xff]  }
 0x917   : > { %3771 = vmatpush1.bf16.msra.mxu0 %v5588_v44  ;;  %3812 = vmatpush1.bf16.msra.mxu1 %v5590_v45  ;;  %v6307_v44 = vld [vmem:[%s8472_s21 + $0x1d4] ss:$8 sps:$4 sm:$0xff]   ;;  %v6302_v45 = vld [vmem:[%s8472_s21 + $0xd0] ss:$8 sps:$4 sm:$0xff]  }
 0x918   : > { %3772 = vmatprep.subr.bf16.mxu0 %v5597_v46  ;;  %3813 = vmatprep.subr.bf16.mxu1 %v5599_v47  ;;  %v6305_v46 = vld [vmem:[%s8472_s21 + $0x1d0] ss:$8 sps:$4 sm:$0xff]   ;;  %v6310_v47 = vld [vmem:[%s8472_s21 + $0xe4] ss:$8 sps:$4 sm:$0xff]  }
 0x91b   : > { %3773 = vmatpush1.bf16.msra.mxu0 %v5596_v49  ;;  %3814 = vmatpush1.bf16.msra.mxu1 %v5598_v53  ;;  %v6313_v49 = vld [vmem:[%s8472_s21 + $0x1e4] ss:$8 sps:$4 sm:$0xff]   ;;  %v6308_v53 = vld [vmem:[%s8472_s21 + $0xe0] ss:$8 sps:$4 sm:$0xff]  }
 0x91c   : > { %4684 = vmatprep.subr.bf16.mxu0 %v6226_v34  ;;  %4725 = vmatprep.subr.bf16.mxu1 %v6229_v35  ;;  %v6311_v34 = vld [vmem:[%s8472_s21 + $0x1e0] ss:$8 sps:$4 sm:$0xff]   ;;  %v6316_v35 = vld [vmem:[%s8472_s21 + $0xf4] ss:$8 sps:$4 sm:$0xff]  }
 0x91e   : > { %3775 = vmatmul.mubr.bf16.vlgmr.msra.gmra.mrb[28].mxu0 %v7948_v54  ;;  %3816 = vmatmul.mubr.bf16.vlgmr.msra.gmra.mrb[28].mxu1 %v7948_v54  ;;  %v6244_v54 = vld [vmem:[%s8472_s21 + $0x34] ss:$8 sps:$4 sm:$0xff]  }
 0x91f   : > { %4685 = vmatpush1.bf16.msra.mxu0 %v6224_v55  ;;  %4726 = vmatpush1.bf16.msra.mxu1 %v6227_v56  ;;  %v6319_v55 = vld [vmem:[%s8472_s21 + $0x1f4] ss:$8 sps:$4 sm:$0xff]   ;;  %v6314_v56 = vld [vmem:[%s8472_s21 + $0xf0] ss:$8 sps:$4 sm:$0xff]  }
 0x920   : > { %4686 = vmatprep.subr.bf16.mxu0 %v6232_v57  ;;  %4727 = vmatprep.subr.bf16.mxu1 %v6235_v58  ;;  %v6317_v57 = vld [vmem:[%s8472_s21 + $0x1f0] ss:$8 sps:$4 sm:$0xff]   ;;  %v6322_v58 = vld [vmem:[%s8472_s21 + $0x204] ss:$8 sps:$4 sm:$0xff]  }
 0x923   : > { %4687 = vmatpush1.bf16.msra.mxu0 %v6230_v59  ;;  %4728 = vmatpush1.bf16.msra.mxu1 %v6233_v60  ;;  %v6325_v59 = vld [vmem:[%s8472_s21 + $0x304] ss:$8 sps:$4 sm:$0xff]   ;;  %v2990_v60 = vsub.s32 2, %v7661_v50 }
 0x924   : > { %4688 = vmatprep.subr.bf16.mxu0 %v6238_v48  ;;  %4729 = vmatprep.subr.bf16.mxu1 %v6241_v61  ;;  %v8078_v48 = vld [vmem:[%s7607_s10] sm:$0xff]  ;;  %v2994_v61 = vsub.s32 3, %v7661_v50 }
 0x927   : > { %4689 = vmatpush1.bf16.msra.mxu0 %v6236_v62  ;;  %4730 = vmatpush1.bf16.msra.mxu1 %v6239_v1  ;;  %v2983_v62 = vrot.slane %v8078_v48, %v7664_v51  ;;  %v2991_v1 = vrot.slane %v8078_v48, %v2990_v60 }
 0x928   : > { %4690 = vmatprep.subr.bf16.mxu0 %v6244_v54  ;;  %4731 = vmatprep.subr.bf16.mxu1 %v6247_v3  ;;  %v2987_v54 = vrot.slane %v8078_v48, %v7667_v52  ;;  %v2995_v3 = vrot.slane %v8078_v48, %v2994_v61  ;;  %v6328_v61 = vld [vmem:[%s8472_s21 + $0x214] ss:$8 sps:$4 sm:$0xff]  }
 0x92b   : > { %4691 = vmatpush1.bf16.msra.mxu0 %v6242_v4  ;;  %4732 = vmatpush1.bf16.msra.mxu1 %v6245_v5 }
 0x92c   : > { %4692 = vmatprep.subr.bf16.mxu0 %v6250_v6  ;;  %4733 = vmatprep.subr.bf16.mxu1 %v6253_v7 }
 0x92f   : > { %4693 = vmatpush1.bf16.msra.mxu0 %v6248_v8  ;;  %4734 = vmatpush1.bf16.msra.mxu1 %v6251_v9 }
 0x930   : > { %4694 = vmatprep.subr.bf16.mxu0 %v6256_v10  ;;  %4735 = vmatprep.subr.bf16.mxu1 %v6259_v11 }
 0x933   : > { %4695 = vmatpush1.bf16.msra.mxu0 %v6254_v12  ;;  %4736 = vmatpush1.bf16.msra.mxu1 %v6257_v13 }
 0x934   : > { %4696 = vmatprep.subr.bf16.mxu0 %v6262_v14  ;;  %4737 = vmatprep.subr.bf16.mxu1 %v6265_v15 }
 0x937   : > { %4697 = vmatpush1.bf16.msra.mxu0 %v6260_v16  ;;  %4738 = vmatpush1.bf16.msra.mxu1 %v6263_v17 }
 0x938   : > { %4698 = vmatprep.subr.bf16.mxu0 %v6268_v18  ;;  %4739 = vmatprep.subr.bf16.mxu1 %v6271_v19 }
 0x93b   : > { %4699 = vmatpush1.bf16.msra.mxu0 %v6266_v20  ;;  %4740 = vmatpush1.bf16.msra.mxu1 %v6269_v21 }
 0x93c   : > { %4700 = vmatprep.subr.bf16.mxu0 %v6274_v22  ;;  %4741 = vmatprep.subr.bf16.mxu1 %v6277_v23 }
 0x93f   : > { %4701 = vmatpush1.bf16.msra.mxu0 %v6272_v2  ;;  %4742 = vmatpush1.bf16.msra.mxu1 %v6275_v24 }
 0x940   : > { %4702 = vmatprep.subr.bf16.mxu0 %v6280_v26  ;;  %4743 = vmatprep.subr.bf16.mxu1 %v6283_v27 }
 0x943   : > { %4703 = vmatpush1.bf16.msra.mxu0 %v6278_v28  ;;  %4744 = vmatpush1.bf16.msra.mxu1 %v6281_v29 }
 0x944   : > { %4704 = vmatprep.subr.bf16.mxu0 %v6286_v30  ;;  %4745 = vmatprep.subr.bf16.mxu1 %v6289_v31 }
 0x947   : > { %4705 = vmatpush1.bf16.msra.mxu0 %v6284_v32  ;;  %4746 = vmatpush1.bf16.msra.mxu1 %v6287_v33 }
 0x948   : > { %4706 = vmatprep.subr.bf16.mxu0 %v6292_v36  ;;  %4747 = vmatprep.subr.bf16.mxu1 %v6295_v37 }
 0x94b   : > { %4707 = vmatpush1.bf16.msra.mxu0 %v6290_v38  ;;  %4748 = vmatpush1.bf16.msra.mxu1 %v6293_v39 }
 0x94c   : > { %4708 = vmatprep.subr.bf16.mxu0 %v6298_v40  ;;  %4749 = vmatprep.subr.bf16.mxu1 %v6301_v41 }
 0x94f   : > { %4709 = vmatpush1.bf16.msra.mxu0 %v6296_v42  ;;  %4750 = vmatpush1.bf16.msra.mxu1 %v6299_v25 }
 0x950   : > { %4710 = vmatprep.subr.bf16.mxu0 %v6304_v43  ;;  %4751 = vmatprep.subr.bf16.mxu1 %v6307_v44 }
 0x953   : > { %4711 = vmatpush1.bf16.msra.mxu0 %v6302_v45  ;;  %4752 = vmatpush1.bf16.msra.mxu1 %v6305_v46 }
 0x954   : > { %4712 = vmatprep.subr.bf16.mxu0 %v6310_v47  ;;  %4753 = vmatprep.subr.bf16.mxu1 %v6313_v49 }
 0x957   : > { %4713 = vmatpush1.bf16.msra.mxu0 %v6308_v53  ;;  %4754 = vmatpush1.bf16.msra.mxu1 %v6311_v34 }
 0x958   : > { %4714 = vmatprep.subr.bf16.mxu0 %v6316_v35  ;;  %4755 = vmatprep.subr.bf16.mxu1 %v6319_v55 }
 0x95b   : > { %4715 = vmatpush1.bf16.msra.mxu0 %v6314_v56  ;;  %4756 = vmatpush1.bf16.msra.mxu1 %v6317_v57  ;;  %v6320_v57 = vld [vmem:[%s8472_s21 + $0x200] ss:$8 sps:$4 sm:$0xff]  }
 0x95c   : > { %4766 = vmatprep.subr.bf16.mxu0 %v6322_v58  ;;  %4807 = vmatprep.subr.bf16.mxu1 %v6325_v59  ;;  %v6323_v59 = vld [vmem:[%s8472_s21 + $0x300] ss:$8 sps:$4 sm:$0xff]  }
 0x9b1   : > { %v3694_v4 = vpop.f32.mrb[24].mxu0  ;;  %v3735_v5 = vpop.f32.mrb[24].mxu1 }
 0x9b2   : > { %v3695_v6 = vadd.f32 %v3694_v4, %v2983_v62  ;;  %v3736_v7 = vadd.f32 %v3735_v5, %v2991_v1  ;;  %v3696_v8 = vpop.f32.mrb[25].mxu0  ;;  %v3737_v9 = vpop.f32.mrb[25].mxu1  ;;  %v6331_v1 = vld [vmem:[%s8472_s21 + $0x314] ss:$8 sps:$4 sm:$0xff]   ;;  %v6334_v4 = vld [vmem:[%s8472_s21 + $0x224] ss:$8 sps:$4 sm:$0xff]  }
 0x9b3   : > { %v3697_v10 = vadd.f32 %v3696_v8, %v2987_v54  ;;  %v3738_v11 = vadd.f32 %v3737_v9, %v2995_v3  ;;  %v3698_v12 = vpop.f32.mrb[26].mxu0  ;;  %v3739_v13 = vpop.f32.mrb[26].mxu1  ;;  %v6326_v54 = vld [vmem:[%s8472_s21 + $0x210] ss:$8 sps:$4 sm:$0xff]   ;;  %v6337_v5 = vld [vmem:[%s8472_s21 + $0x324] ss:$8 sps:$4 sm:$0xff]  }
 0x9b4   : > { %v3824_v14 = vmul.f32 %v3695_v6, %v3695_v6  ;;  %v3826_v15 = vmul.f32 %v3736_v7, %v3736_v7  ;;  %v3699_v16 = vpop.f32.mrb[27].mxu0  ;;  %v3740_v17 = vpop.f32.mrb[27].mxu1  ;;  %v6329_v3 = vld [vmem:[%s8472_s21 + $0x310] ss:$8 sps:$4 sm:$0xff]   ;;  %v6340_v8 = vld [vmem:[%s8472_s21 + $0x234] ss:$8 sps:$4 sm:$0xff]  }
 0x9b5   : > { %v3825_v18 = vmul.f32 %v3697_v10, %v3697_v10  ;;  %v3827_v19 = vmul.f32 %v3738_v11, %v3738_v11  ;;  %v6343_v9 = vld [vmem:[%s8472_s21 + $0x334] ss:$8 sps:$4 sm:$0xff]   ;;  %v6346_v12 = vld [vmem:[%s8472_s21 + $0x244] ss:$8 sps:$4 sm:$0xff]  }
 0x9b6   : > { %v3832_v20 = vmul.f32 %v3824_v14, %v3695_v6  ;;  %v3834_v21 = vmul.f32 %v3826_v15, %v3736_v7  ;;  %v6349_v13 = vld [vmem:[%s8472_s21 + $0x344] ss:$8 sps:$4 sm:$0xff]   ;;  %v6344_v14 = vld [vmem:[%s8472_s21 + $0x240] ss:$8 sps:$4 sm:$0xff]   ;;  %v6352_v16 = vld [vmem:[%s8472_s21 + $0x254] ss:$8 sps:$4 sm:$0xff]  }
 0x9b7   : > { %v3833_v22 = vmul.f32 %v3825_v18, %v3697_v10  ;;  %v3835_v23 = vmul.f32 %v3827_v19, %v3738_v11  ;;  %v6347_v15 = vld [vmem:[%s8472_s21 + $0x340] ss:$8 sps:$4 sm:$0xff]   ;;  %v6355_v17 = vld [vmem:[%s8472_s21 + $0x354] ss:$8 sps:$4 sm:$0xff]   ;;  %v6350_v18 = vld [vmem:[%s8472_s21 + $0x250] ss:$8 sps:$4 sm:$0xff]  }
 0x9b8   : > { %v3840_v2 = vmul.f32 0.044715, %v3832_v20  ;;  %v3842_v24 = vmul.f32 0.044715, %v3834_v21  ;;  %v6353_v19 = vld [vmem:[%s8472_s21 + $0x350] ss:$8 sps:$4 sm:$0xff]  }
 0x9b9   : > { %v3841_v26 = vmul.f32 0.044715, %v3833_v22  ;;  %v3843_v27 = vmul.f32 0.044715, %v3835_v23  ;;  %v6358_v20 = vld [vmem:[%s8472_s21 + $0x264] ss:$8 sps:$4 sm:$0xff]  }
 0x9ba   : > { %v3848_v28 = vadd.f32 %v3840_v2, %v3695_v6  ;;  %v3850_v29 = vadd.f32 %v3842_v24, %v3736_v7  ;;  %v6361_v21 = vld [vmem:[%s8472_s21 + $0x364] ss:$8 sps:$4 sm:$0xff]   ;;  %v6356_v22 = vld [vmem:[%s8472_s21 + $0x260] ss:$8 sps:$4 sm:$0xff]   ;;  %v6364_v2 = vld [vmem:[%s8472_s21 + $0x274] ss:$8 sps:$4 sm:$0xff]  }
 0x9bb   : > { %v3849_v30 = vadd.f32 %v3841_v26, %v3697_v10  ;;  %v3851_v31 = vadd.f32 %v3843_v27, %v3738_v11  ;;  %v6359_v23 = vld [vmem:[%s8472_s21 + $0x360] ss:$8 sps:$4 sm:$0xff]   ;;  %v2998_v24 = vsub.s32 4, %v7661_v50  ;;  %v3006_v26 = vsub.s32 6, %v7661_v50  ;;  %v6367_v27 = vld [vmem:[%s8472_s21 + $0x374] ss:$8 sps:$4 sm:$0xff]  }
 0x9bc   : > { %v3856_v32 = vmul.f32 0.7978846, %v3848_v28  ;;  %v3858_v33 = vmul.f32 0.7978846, %v3850_v29  ;;  %v3002_v28 = vsub.s32 5, %v7661_v50  ;;  %v3010_v29 = vsub.s32 7, %v7661_v50 }
 0x9bd   : > { %v3857_v36 = vmul.f32 0.7978846, %v3849_v30  ;;  %v3859_v37 = vmul.f32 0.7978846, %v3851_v31  ;;  %v6362_v30 = vld [vmem:[%s8472_s21 + $0x270] ss:$8 sps:$4 sm:$0xff]  }
 0x9be   : > { %6428 = vtanh.f32 %v3856_v32  ;;  %v6365_v31 = vld [vmem:[%s8472_s21 + $0x370] ss:$8 sps:$4 sm:$0xff]   ;;  %v2999_v32 = vrot.slane %v8078_v48, %v2998_v24  ;;  %v6397_v24 = vld [vmem:[%s8472_s21 + $0x3c4] ss:$8 sps:$4 sm:$0xff]  }
 0x9bf   : > { %6430 = vtanh.f32 %v3858_v33  ;;  %v3007_v33 = vrot.slane %v8078_v48, %v3006_v26  ;;  %v6392_v26 = vld [vmem:[%s8472_s21 + $0x2c0] ss:$8 sps:$4 sm:$0xff]  }
 0x9c0   : > { %6432 = vtanh.f32 %v3857_v36  ;;  %v6370_v36 = vld [vmem:[%s8472_s21 + $0x284] ss:$8 sps:$4 sm:$0xff]  }
 0x9c1   : > { %6434 = vtanh.f32 %v3859_v37  ;;  %v3003_v37 = vrot.slane %v8078_v48, %v3002_v28  ;;  %v6400_v28 = vld [vmem:[%s8472_s21 + $0x2d4] ss:$8 sps:$4 sm:$0xff]  }
 0x9c8   : > { %v6429_v38 = vpop.eup %6428 }
 0x9c9   : > { %v6431_v39 = vpop.eup %6430  ;;  %v3872_v40 = vadd.f32 1.0, %v6429_v38  ;;  %v3011_v38 = vrot.slane %v8078_v48, %v3010_v29  ;;  %v6403_v29 = vld [vmem:[%s8472_s21 + $0x3d4] ss:$8 sps:$4 sm:$0xff]  }
 0x9ca   : > { %v6433_v41 = vpop.eup %6432  ;;  %v3874_v42 = vadd.f32 1.0, %v6431_v39  ;;  %v6373_v39 = vld [vmem:[%s8472_s21 + $0x384] ss:$8 sps:$4 sm:$0xff]  }
 0x9cb   : > { %v6435_v25 = vpop.eup %6434  ;;  %v3873_v43 = vadd.f32 1.0, %v6433_v41  ;;  %v3880_v44 = vmul.f32 0.5, %v3872_v40  ;;  %v6368_v41 = vld [vmem:[%s8472_s21 + $0x280] ss:$8 sps:$4 sm:$0xff]  }
 0x9cc   : > { %v3875_v45 = vadd.f32 1.0, %v6435_v25  ;;  %v3882_v46 = vmul.f32 0.5, %v3874_v42 }
 0x9cd   : > { %v3881_v47 = vmul.f32 0.5, %v3873_v43  ;;  %v3888_v53 = vmul.f32 %v3880_v44, %v3695_v6  ;;  %v6332_v6 = vld [vmem:[%s8472_s21 + $0x220] ss:$8 sps:$4 sm:$0xff]  }
 0x9ce   : > { %v3883_v49 = vmul.f32 0.5, %v3875_v45  ;;  %v3890_v35 = vmul.f32 %v3882_v46, %v3736_v7  ;;  %v6335_v7 = vld [vmem:[%s8472_s21 + $0x320] ss:$8 sps:$4 sm:$0xff]   ;;  %v6376_v46 = vld [vmem:[%s8472_s21 + $0x294] ss:$8 sps:$4 sm:$0xff]  }
 0x9cf   : > { %v3889_v34 = vmul.f32 %v3881_v47, %v3697_v10  ;;  %v3896_v60 = vpack.c.bf16 %v3888_v53, %v3888_v53  ;;  %v6338_v10 = vld [vmem:[%s8472_s21 + $0x230] ss:$8 sps:$4 sm:$0xff]   ;;  %v6371_v45 = vld [vmem:[%s8472_s21 + $0x380] ss:$8 sps:$4 sm:$0xff]  }
 0x9d0   : > { %v3891_v55 = vmul.f32 %v3883_v49, %v3738_v11  ;;  %v3898_v62 = vpack.c.bf16 %v3890_v35, %v3890_v35  ;;  %v6341_v11 = vld [vmem:[%s8472_s21 + $0x330] ss:$8 sps:$4 sm:$0xff]  }
 0x9d1   : > { %v3897_v56 = vpack.c.bf16 %v3889_v34, %v3889_v34  ;;  %v6379_v34 = vld [vmem:[%s8472_s21 + $0x394] ss:$8 sps:$4 sm:$0xff]  }
 0x9d2   : > { %v3899_v58 = vpack.c.bf16 %v3891_v55, %v3891_v55 }
 0x9d3   : > { %4716 = vmatprep.mubr.bf16.mxu0 %v3897_v56 }
 0x9d4   : > { %4757 = vmatprep.mubr.bf16.mxu1 %v3899_v58  ;;  %4717 = vmatmul.mubr.bf16.vlgmr.msra.gmra.mrb[32].mxu0 %v3896_v60  ;;  %v6374_v60 = vld [vmem:[%s8472_s21 + $0x290] ss:$8 sps:$4 sm:$0xff]  }
 0x9d5   : > { %4758 = vmatmul.mubr.bf16.vlgmr.msra.gmra.mrb[32].mxu1 %v3898_v62  ;;  %4767 = vmatpush1.bf16.msra.mxu0 %v6320_v57 }
 0x9d6   : > { %4808 = vmatpush1.bf16.msra.mxu1 %v6323_v59  ;;  %4768 = vmatprep.subr.bf16.mxu0 %v6328_v61 }
 0x9d7   : > { %4809 = vmatprep.subr.bf16.mxu1 %v6331_v1  ;;  %v6377_v1 = vld [vmem:[%s8472_s21 + $0x390] ss:$8 sps:$4 sm:$0xff]  }
 0x9d9   : > { %4769 = vmatpush1.bf16.msra.mxu0 %v6326_v54  ;;  %v6382_v54 = vld [vmem:[%s8472_s21 + $0x2a4] ss:$8 sps:$4 sm:$0xff]  }
 0x9da   : > { %4810 = vmatpush1.bf16.msra.mxu1 %v6329_v3  ;;  %4770 = vmatprep.subr.bf16.mxu0 %v6334_v4 }
 0x9db   : > { %4811 = vmatprep.subr.bf16.mxu1 %v6337_v5  ;;  %v6385_v5 = vld [vmem:[%s8472_s21 + $0x3a4] ss:$8 sps:$4 sm:$0xff]  }
 0x9dd   : > { %4771 = vmatpush1.bf16.msra.mxu0 %v6332_v6 }
 0x9de   : > { %4812 = vmatpush1.bf16.msra.mxu1 %v6335_v7  ;;  %4772 = vmatprep.subr.bf16.mxu0 %v6340_v8 }
 0x9df   : > { %4813 = vmatprep.subr.bf16.mxu1 %v6343_v9 }
 0x9e1   : > { %4773 = vmatpush1.bf16.msra.mxu0 %v6338_v10  ;;  %v6380_v10 = vld [vmem:[%s8472_s21 + $0x2a0] ss:$8 sps:$4 sm:$0xff]  }
 0x9e2   : > { %4814 = vmatpush1.bf16.msra.mxu1 %v6341_v11  ;;  %4774 = vmatprep.subr.bf16.mxu0 %v6346_v12 }
 0x9e3   : > { %4815 = vmatprep.subr.bf16.mxu1 %v6349_v13  ;;  %v6383_v13 = vld [vmem:[%s8472_s21 + $0x3a0] ss:$8 sps:$4 sm:$0xff]  }
 0x9e5   : > { %4775 = vmatpush1.bf16.msra.mxu0 %v6344_v14  ;;  %v6388_v14 = vld [vmem:[%s8472_s21 + $0x2b4] ss:$8 sps:$4 sm:$0xff]  }
 0x9e6   : > { %4816 = vmatpush1.bf16.msra.mxu1 %v6347_v15  ;;  %4776 = vmatprep.subr.bf16.mxu0 %v6352_v16 }
 0x9e7   : > { %4817 = vmatprep.subr.bf16.mxu1 %v6355_v17  ;;  %v6391_v17 = vld [vmem:[%s8472_s21 + $0x3b4] ss:$8 sps:$4 sm:$0xff]  }
 0x9e9   : > { %4777 = vmatpush1.bf16.msra.mxu0 %v6350_v18 }
 0x9ea   : > { %4818 = vmatpush1.bf16.msra.mxu1 %v6353_v19  ;;  %4778 = vmatprep.subr.bf16.mxu0 %v6358_v20 }
 0x9eb   : > { %4819 = vmatprep.subr.bf16.mxu1 %v6361_v21 }
 0x9ed   : > { %4779 = vmatpush1.bf16.msra.mxu0 %v6356_v22  ;;  %v6386_v22 = vld [vmem:[%s8472_s21 + $0x2b0] ss:$8 sps:$4 sm:$0xff]  }
 0x9ee   : > { %4820 = vmatpush1.bf16.msra.mxu1 %v6359_v23  ;;  %4780 = vmatprep.subr.bf16.mxu0 %v6364_v2  ;;  %v6389_v23 = vld [vmem:[%s8472_s21 + $0x3b0] ss:$8 sps:$4 sm:$0xff]   ;;  %v6394_v2 = vld [vmem:[%s8472_s21 + $0x2c4] ss:$8 sps:$4 sm:$0xff]  }
 0x9ef   : > { %4821 = vmatprep.subr.bf16.mxu1 %v6367_v27  ;;  %v6395_v27 = vld [vmem:[%s8472_s21 + $0x3c0] ss:$8 sps:$4 sm:$0xff]  }
 0x9f1   : > { %4781 = vmatpush1.bf16.msra.mxu0 %v6362_v30  ;;  %v3776_v50 = vpop.f32.mrb[28].mxu0  ;;  %v3817_v40 = vpop.f32.mrb[28].mxu1  ;;  %v6398_v30 = vld [vmem:[%s8472_s21 + $0x2d0] ss:$8 sps:$4 sm:$0xff]  }
 0x9f2   : > { %4822 = vmatpush1.bf16.msra.mxu1 %v6365_v31  ;;  %v8128_v42 = vadd.f32 %v3776_v50, %v2999_v32  ;;  %v8130_v25 = vadd.f32 %v3817_v40, %v3007_v33  ;;  %v3778_v43 = vpop.f32.mrb[29].mxu0  ;;  %v3819_v44 = vpop.f32.mrb[29].mxu1  ;;  %4782 = vmatprep.subr.bf16.mxu0 %v6370_v36  ;;  %v6401_v31 = vld [vmem:[%s8472_s21 + $0x3d0] ss:$8 sps:$4 sm:$0xff]   ;;  %v6406_v32 = vld [vmem:[%s8472_s21 + $0x2e4] ss:$8 sps:$4 sm:$0xff]  }
 0x9f3   : > { %v8134_v47 = vadd.f32 %v3778_v43, %v3003_v37  ;;  %v8136_v48 = vadd.f32 %v3819_v44, %v3011_v38  ;;  %v3780_v49 = vpop.f32.mrb[30].mxu0  ;;  %v3821_v53 = vpop.f32.mrb[30].mxu1  ;;  %4823 = vmatprep.subr.bf16.mxu1 %v6373_v39  ;;  %v6409_v33 = vld [vmem:[%s8472_s21 + $0x3e4] ss:$8 sps:$4 sm:$0xff]   ;;  %v6404_v38 = vld [vmem:[%s8472_s21 + $0x2e0] ss:$8 sps:$4 sm:$0xff]  }
 0x9f4   : > { %v3828_v35 = vmul.f32 %v8128_v42, %v8128_v42  ;;  %v3830_v55 = vmul.f32 %v8130_v25, %v8130_v25  ;;  %v3781_v56 = vpop.f32.mrb[31].mxu0  ;;  %v3822_v57 = vpop.f32.mrb[31].mxu1  ;;  %v6407_v40 = vld [vmem:[%s8472_s21 + $0x3e0] ss:$8 sps:$4 sm:$0xff]  }
 0x9f5   : > { %v3829_v58 = vmul.f32 %v8134_v47, %v8134_v47  ;;  %v3831_v59 = vmul.f32 %v8136_v48, %v8136_v48  ;;  %4783 = vmatpush1.bf16.msra.mxu0 %v6368_v41  ;;  %v6412_v41 = vld [vmem:[%s8472_s21 + $0x2f4] ss:$8 sps:$4 sm:$0xff]   ;;  %v6413_v56 = vld [vmem:[%s8472_s21 + $0x3f0] ss:$8 sps:$4 sm:$0xff]  }
 0x9f6   : > { %v3836_v61 = vmul.f32 %v3828_v35, %v8128_v42  ;;  %v3838_v62 = vmul.f32 %v3830_v55, %v8130_v25  ;;  %4824 = vmatpush1.bf16.msra.mxu1 %v6371_v45  ;;  %4784 = vmatprep.subr.bf16.mxu0 %v6376_v46  ;;  %v6415_v45 = vld [vmem:[%s8472_s21 + $0x3f4] ss:$8 sps:$4 sm:$0xff]   ;;  %v6410_v35 = vld [vmem:[%s8472_s21 + $0x2f0] ss:$8 sps:$4 sm:$0xff]  }
 0x9f7   : > { %v3837_v3 = vmul.f32 %v3829_v58, %v8134_v47  ;;  %v3839_v4 = vmul.f32 %v3831_v59, %v8136_v48  ;;  %4825 = vmatprep.subr.bf16.mxu1 %v6379_v34 }
 0x9f8   : > { %v3844_v6 = vmul.f32 0.044715, %v3836_v61  ;;  %v3846_v7 = vmul.f32 0.044715, %v3838_v62 }
 0x9f9   : > { %v3845_v8 = vmul.f32 0.044715, %v3837_v3  ;;  %v3847_v9 = vmul.f32 0.044715, %v3839_v4  ;;  %4785 = vmatpush1.bf16.msra.mxu0 %v6374_v60 }
 0x9fa   : > { %v3852_v11 = vadd.f32 %v3844_v6, %v8128_v42  ;;  %v3854_v12 = vadd.f32 %v3846_v7, %v8130_v25  ;;  %4826 = vmatpush1.bf16.msra.mxu1 %v6377_v1  ;;  %4786 = vmatprep.subr.bf16.mxu0 %v6382_v54 }
 0x9fb   : > { %v3853_v15 = vadd.f32 %v3845_v8, %v8134_v47  ;;  %v3855_v16 = vadd.f32 %v3847_v9, %v8136_v48  ;;  %4827 = vmatprep.subr.bf16.mxu1 %v6385_v5 }
 0x9fc   : > { %v3860_v18 = vmul.f32 0.7978846, %v3852_v11  ;;  %v3862_v19 = vmul.f32 0.7978846, %v3854_v12 }
 0x9fd   : > { %v3861_v20 = vmul.f32 0.7978846, %v3853_v15  ;;  %v3863_v21 = vmul.f32 0.7978846, %v3855_v16  ;;  %4787 = vmatpush1.bf16.msra.mxu0 %v6380_v10 }
 0x9fe   : > { %6436 = vtanh.f32 %v3860_v18  ;;  %4828 = vmatpush1.bf16.msra.mxu1 %v6383_v13  ;;  %4788 = vmatprep.subr.bf16.mxu0 %v6388_v14 }
 0x9ff   : > { %6438 = vtanh.f32 %v3862_v19  ;;  %4829 = vmatprep.subr.bf16.mxu1 %v6391_v17 }
 0xa00   : > { %6440 = vtanh.f32 %v3861_v20 }
 0xa01   : > { %6442 = vtanh.f32 %v3863_v21  ;;  %4789 = vmatpush1.bf16.msra.mxu0 %v6386_v22 }
 0xa02   : > { %4830 = vmatpush1.bf16.msra.mxu1 %v6389_v23  ;;  %4790 = vmatprep.subr.bf16.mxu0 %v6394_v2 }
 0xa03   : > { %4831 = vmatprep.subr.bf16.mxu1 %v6397_v24 }
 0xa05   : > { %4791 = vmatpush1.bf16.msra.mxu0 %v6392_v26 }
 0xa06   : > { %4832 = vmatpush1.bf16.msra.mxu1 %v6395_v27  ;;  %4792 = vmatprep.subr.bf16.mxu0 %v6400_v28 }
 0xa07   : > { %4833 = vmatprep.subr.bf16.mxu1 %v6403_v29 }
 0xa08   : > { %v6437_v36 = vpop.eup %6436 }
 0xa09   : > { %v6439_v37 = vpop.eup %6438  ;;  %4793 = vmatpush1.bf16.msra.mxu0 %v6398_v30  ;;  %v3876_v39 = vadd.f32 1.0, %v6437_v36 }
 0xa0a   : > { %v6441_v50 = vpop.eup %6440  ;;  %4834 = vmatpush1.bf16.msra.mxu1 %v6401_v31  ;;  %4794 = vmatprep.subr.bf16.mxu0 %v6406_v32  ;;  %v3878_v43 = vadd.f32 1.0, %v6439_v37 }
 0xa0b   : > { %v6443_v44 = vpop.eup %6442  ;;  %4835 = vmatprep.subr.bf16.mxu1 %v6409_v33  ;;  %v3877_v46 = vadd.f32 1.0, %v6441_v50  ;;  %v3884_v49 = vmul.f32 0.5, %v3876_v39 }
 0xa0c   : > { %v3879_v53 = vadd.f32 1.0, %v6443_v44  ;;  %v3886_v34 = vmul.f32 0.5, %v3878_v43 }
 0xa0d   : > { %4795 = vmatpush1.bf16.msra.mxu0 %v6404_v38  ;;  %v3885_v55 = vmul.f32 0.5, %v3877_v46  ;;  %v3892_v58 = vmul.f32 %v3884_v49, %v8128_v42  ;;  %v4032_v42 = vld [vmem:[%s1133_s25] sm:$0x3]  ;;  %s8474_s25 = sld [smem:[#allocation33_spill]] }
 0xa0e   : > { %4836 = vmatpush1.bf16.msra.mxu1 %v6407_v40  ;;  %4796 = vmatprep.subr.bf16.mxu0 %v6412_v41  ;;  %v3887_v57 = vmul.f32 0.5, %v3879_v53  ;;  %v3894_v60 = vmul.f32 %v3886_v34, %v8130_v25  ;;  %v4041_v25 = vrot.slane %v4032_v42, %v7667_v52 }
 0xa0f   : > { %4837 = vmatprep.subr.bf16.mxu1 %v6415_v45  ;;  %v3893_v59 = vmul.f32 %v3885_v55, %v8134_v47  ;;  %v3900_v54 = vpack.c.bf16 %v3892_v58, %v3892_v58  ;;  %v4037_v47 = vrot.slane %v4032_v42, %v7664_v51 }
 0xa10   : > { %v3895_v61 = vmul.f32 %v3887_v57, %v8136_v48  ;;  %v3902_v3 = vpack.c.bf16 %v3894_v60, %v3894_v60 }
 0xa11   : > { %4797 = vmatpush1.bf16.msra.mxu0 %v6410_v35  ;;  %v3901_v62 = vpack.c.bf16 %v3893_v59, %v3893_v59 }
 0xa12   : > { %4838 = vmatpush1.bf16.msra.mxu1 %v6413_v56  ;;  %v3903_v1 = vpack.c.bf16 %v3895_v61, %v3895_v61 }
 0xa13   : > { %4798 = vmatprep.mubr.bf16.mxu0 %v3901_v62  ;;  %p5728_p10 = scmp.ne.s32.totalorder %s8474_s25, 1 }
 0xa14   : > { %4839 = vmatprep.mubr.bf16.mxu1 %v3903_v1  ;;  %4799 = vmatmul.mubr.bf16.vlgmr.msra.gmra.mrb[36].mxu0 %v3900_v54  ;;  %s8475_s18 = sld [smem:[#allocation71_spill]] (!%p5728_p10)  ;;  %s8476_s2 = sld [smem:[#allocation72_spill]] (!%p5728_p10) }
 0xa15   : > { %4840 = vmatmul.mubr.bf16.vlgmr.msra.gmra.mrb[36].mxu1 %v3902_v3 }
 0xa1a   : > { %v4857_v40 = vld [vmem:[%s8476_s2] sm:$0x3] (!%p5728_p10) }
 0xa1b   : > { %v4891_v49 = vrot.slane (!%p5728_p10), %v4857_v40, %v7664_v51  ;;  %v4895_v53 = vrot.slane (!%p5728_p10), %v4857_v40, %v7667_v52 }
 0xaa7   : > { %v4718_v48 = vpop.f32.mrb[32].mxu0 }
 0xaa8   : > { %v4719_v4 = vadd.f32 %v4718_v48, %v4037_v47  ;;  %v4759_v5 = vpop.f32.mrb[32].mxu1  ;;  %v4720_v6 = vpop.f32.mrb[33].mxu0 }
 0xaa9   : > { %v4721_v7 = vadd.f32 %v4720_v6, %v4041_v25  ;;  %v4761_v8 = vpop.f32.mrb[33].mxu1  ;;  %v4722_v9 = vpop.f32.mrb[34].mxu0 }
 0xaaa   : > { %v4760_v10 = vadd.f32 %v4759_v5, %v4719_v4  ;;  %v4763_v11 = vpop.f32.mrb[34].mxu1  ;;  %v4723_v12 = vpop.f32.mrb[35].mxu0 }
 0xaab   : > { %v4762_v13 = vadd.f32 %v4761_v8, %v4721_v7  ;;  %v4764_v14 = vpop.f32.mrb[35].mxu1 }
 0xae7   : > { %v4800_v15 = vpop.f32.mrb[36].mxu0 }
 0xae8   : > { %v4801_v16 = vadd.f32 %v4800_v15, %v4760_v10  ;;  %v4841_v17 = vpop.f32.mrb[36].mxu1  ;;  %v4802_v18 = vpop.f32.mrb[37].mxu0 }
 0xae9   : > { %v4803_v19 = vadd.f32 %v4802_v18, %v4762_v13  ;;  %v4843_v20 = vpop.f32.mrb[37].mxu1  ;;  %v4804_v21 = vpop.f32.mrb[38].mxu0  ;;  %4855 = sbr.rel (%p5728_p10) target bundleno = 3117 (0xc2d), region = 152 }
 0xaea   : > { %v4842_v22 = vadd.f32 %v4841_v17, %v4801_v16  ;;  %v4845_v23 = vpop.f32.mrb[38].mxu1  ;;  %v4805_v2 = vpop.f32.mrb[39].mxu0 }
 0xaeb   : > { %v4844_v24 = vadd.f32 %v4843_v20, %v4803_v19  ;;  %v4846_v26 = vpop.f32.mrb[39].mxu1 }
 0xaec   : > { %v4848_v27 = vadd.f32 %v4842_v22, %v7844_v63 }
 0xaed   : > { %v4849_v28 = vadd.f32 %v4844_v24, %v7846_v0  ;;  %v4856_v0 = vld [vmem:[%s8475_s18] sm:$0x3] (!%p5728_p10) }
 0xaee   : > { %4850 = vst [vmem:[#allocation2] sm:$0xff] %v4848_v27  ;;  %v4878_v41 = vrot.slane (!%p5728_p10), %v4856_v0, %v7664_v51  ;;  %v4882_v43 = vrot.slane (!%p5728_p10), %v4856_v0, %v7667_v52 }
 0xaef   : > { %4851 = vst [vmem:[#allocation2 + $0x8] sm:$0xff] %v4849_v28  ;;  %v4858_v29 = vadd.f32 (!%p5728_p10), %v4849_v28, %v4848_v27 }
 0xaf1   : > { %4859 = vadd.xlane.f32.xlu0 %v4858_v29 }
 0xb7e   : > { %v4860_v30 = vpop.xlane.xlu0 %4859 }
 0xb7f   : > { %v4861_v31 = vmul.f32 0.00390625, %v4860_v30 }
 0xb81   : > { %v4862_v32 = vsub.f32 %v4848_v27, %v4861_v31  ;;  %v4863_v33 = vsub.f32 %v4849_v28, %v4861_v31 }
 0xb83   : > { %v4864_v36 = vmul.f32 %v4862_v32, %v4862_v32  ;;  %v4865_v37 = vmul.f32 %v4863_v33, %v4863_v33 }
 0xb85   : > { %v4866_v38 = vadd.f32 %v4865_v37, %v4864_v36 }
 0xb87   : > { %4867 = vadd.xlane.f32.xlu0 %v4866_v38 }
 0xc14   : > { %v4868_v39 = vpop.xlane.xlu0 %4867 }
 0xc15   : > { %v4869_v50 = vmul.f32 0.00390625, %v4868_v39 }
 0xc17   : > { %v4870_v63 = vadd.f32 1e-05, %v4869_v50 }
 0xc19   : > { %6446 = vrsqrt.f32 %v4870_v63 }
 0xc23   : > { %v6447_v44 = vpop.eup %6446 }
 0xc24   : > { %v4872_v45 = vmul.f32 %v6447_v44, %v4862_v32  ;;  %v4873_v46 = vmul.f32 %v6447_v44, %v4863_v33 }
 0xc26   : > { %v4885_v34 = vmul.f32 %v4878_v41, %v4872_v45  ;;  %v4886_v35 = vmul.f32 %v4882_v43, %v4873_v46 }
 0xc28   : > { %v4898_v55 = vadd.f32 %v4891_v49, %v4885_v34  ;;  %v4899_v56 = vadd.f32 %v4895_v53, %v4886_v35 }
 0xc2a   : > { %v5743_v57 = vpack.c.bf16 %v4899_v56, %v4898_v55 }
 0xc2c   : > { %4908 = vst [vmem:[%s7613_s27] sm:$0xff] %v5743_v57 }
 0xc2d PF: > { %s8477_s11 = sld [smem:[#allocation34_spill]]  ;;  %s8478_s22 = sld [smem:[#allocation47_spill]] }
 0xc2e   : > { %s8479_s6 = sld [smem:[#allocation42_spill]]  ;;  %s8480_s7 = sld [smem:[#allocation73_spill]] }
 0xc2f   : > { %s4924_s29 = sshll.u32 %s7613_s27, 4  ;;  %s6911_s13 = smov [#allocation20]   ;;  %s4925_s29 = int_to_ptr.vmem [resolvable:$true] %s4924_s29 }
 0xc30   : > { %s6744_s9 = scalar_lea.vmem %s4925_s29, 128  ;;  %s6748_s8 = sshll.u32 %s6911_s13, 4  ;;  %s6749_s8 = int_to_ptr.vmem [resolvable:$false] %s6748_s8 }
 0xc31   : > { %p6745_p9 = scmp.ne.s32.totalorder %s4925_s29, %s6744_s9  ;;  %s6750_s14 = scalar_lea.vmem %s6749_s8, 256 }
 0xc32   : > { %p6751_p11 = scmp.lt.s32.totalorder %s4925_s29, %s6749_s8  ;;  %p6752_p0 = scmp.lt.s32.totalorder %s6750_s14, %s6744_s9 }
 0xc33   : > { %s5744_s30 = sshll.u32 %s8477_s11, 7  ;;  %s4910_s16 = scalar_lea.sflag [#allocation5], %s8478_s22 }
 0xc34   : > { %s8210_s3 = scalar_lea.hbm %s8480_s7, %s5744_s30  ;;  %p8481_p6 = scmp.ne.s32.totalorder %s8479_s6, 0 }
 0xc35   : > { %p6753_p8 = por %p6752_p0, %p6751_p11 }
 0xc36   : > { %p6746_p5 = pnand %p6745_p9, %p8481_p6 }
 0xc38   : > { %p6747_p12 = pneg %p6746_p5 }
 0xc3a   : > { %p6754_p4 = pnand %p6753_p8, %p6747_p12 }
 0xc3c   : > { %6757 = shalt.err (!%p6754_p4)
}
 0xc3d   : > { %s6758_s27 = scalar_lea.hbm %s8210_s3, 128  ;;  %s6762_s4 = scalar_lea.hbm %s8480_s7, 256 }
 0xc3e   : > { %p6759_p13 = scmp.ne.s32.totalorder %s8210_s3, %s6758_s27  ;;  %p6763_p2 = scmp.lt.u32.totalorder %s8210_s3, %s8480_s7 }
 0xc3f   : > { %p6764_p3 = scmp.lt.u32.totalorder %s6762_s4, %s6758_s27  ;;  %p6766_p9 = scmp.lt.u32.totalorder %s6758_s27, %s8210_s3 }
 0xc40   : > { %p6760_p1 = pnand %p6759_p13, %p8481_p6 }
 0xc41   : > { %p6765_p10 = por %p6764_p3, %p6763_p2 }
 0xc42   : > { %p6761_p7 = pneg %p6760_p1 }
 0xc43   : > { %p6767_p5 = por %p6766_p9, %p6765_p10 }
 0xc45   : > { %p6768_p12 = pnand %p6767_p5, %p6761_p7 }
 0xc47   : > { %6771 = shalt.err (!%p6768_p12)
}
 0xc48   : > { %5933 = dma.vmem_to_hbm [thread:$0]  (%p8481_p6), %s4925_s29, 128, %s8210_s3, %s4910_s16  }
 0xc49 PF: > { %s8482_s21 = sld [smem:[#allocation37_spill]]  ;;  %s8483_s10 = sld [smem:[#allocation30_spill]] }
 0xc4a   : > { %s8484_s20 = sld [smem:[#allocation45_spill]] }
 0xc4f   : > { %p5976_p11 = scmp.ge.s32.totalorder %s8482_s21, 2  ;;  %s4936_s26 = sand.u32 1, %s8483_s10  }
 0xc50   : > { %p8485_p0 = scmp.ne.s32.totalorder %s8484_s20, 0  ;;  %s4937_s25 = scalar_lea.sflag [#allocation5], %s4936_s26 }
 0xc52   : > { %p5968_p8 = pnand %p5976_p11, %p8485_p0 }
 0xc54   : > { %6841 = dma.done.wait (!%p5968_p8), %s4937_s25, 128  }
 0xc55   : > { %6843 = vsyncadd (!%p5968_p8), %s4937_s25, 4294967168  ;;  %s50_s5 = sadd.s32 1, %s8482_s21   ;;  %s8486_s2 = sld [smem:[#allocation28_spill]] }
 0xc56   : > { %p47_p4 = scmp.ge.s32.totalorder %s50_s5, 6   ;;  %s8487_s25 = sld [smem:[#allocation29_spill]] }
 0xc57   : > { %s8488_s26 = sld [smem:[#allocation44_spill]]  ;;  %s8489_s27 = sld [smem:[#allocation31_spill]] }
 0xc58   : > { %s8490_s3 = sld [smem:[#allocation32_spill]]  ;;  %s8491_s28 = sld [smem:[#allocation46_spill]] }
 0xc59   : > { %s8492_s29 = sld [smem:[#allocation35_spill]]  ;;  %s8493_s0 = sld [smem:[#allocation36_spill]] }
 0xc5a   : > { %s8494_s4 = sld [smem:[#allocation41_spill]]  ;;  %s8495_s30 = sld [smem:[#allocation43_spill]] }
 0xc5b   :  { %49 = sbr.rel (!%p47_p4) target bundleno = 41 (0x29), region = 277 }
 0xc62   :  { %4942 = vsyncpa [#allocation4], 1 }
 0xc63   :  { %4944 = vsyncpa [#allocation4 + $0x1], 1 }
 0xc64   :  { %4945 = vsyncpa [#allocation7], 1 }
 0xc65   :  { %4946 = vsyncpa [#allocation10], 1 }
 0xc66   :  { %4948 = vsyncpa [#allocation10 + $0x1], 1 }
 0xc67   :  { %4949 = vsyncpa [#allocation13], 1 }
 0xc68   :  { %4951 = vsyncpa [#allocation13 + $0x1], 1 }
 0xc69   :  { %4952 = vsyncpa [#allocation16], 1 }
 0xc6a   :  { %4954 = vsyncpa [#allocation16 + $0x1], 1 }
 0xc6b   :  { %4955 = vsyncpa [#allocation19], 1 }
 0xc6c   :  { %4957 = vsyncpa [#allocation19 + $0x1], 1 }
 0xc6d   :  { %4958 = vsyncpa [#allocation5], 1 }
 0xc6e   :  { %4960 = vsyncpa [#allocation5 + $0x1], 1 }

</bundles_post_ra>
